<compile_context>
chip_gen: v7x
topology: tpu7x:2x2x1
jax: 0.10.0
libtpu: 0.0.40
codegen_flags: <defaults>
</compile_context>

<pallas_src>
import functools

import jax
import jax.numpy as jnp
from jax.experimental import pallas as pl
from jax.experimental.pallas import tpu as pltpu

R_REAL = 0.05
R_FAKE = 1.5


def _emb_contrast_kernel(x_ref, center_ref, mreal_ref, mfake_ref, out_ref,
                         acc_ref, *, inv_hw, lane_groups):
    # x_ref:      (TB, C, THW) native dtype (bf16/f32); spatial dim on lanes
    # center_ref: (1, C)       f32   (VMEM-resident across the HW grid axis)
    # mreal_ref:  (TB, 1)      f32   1.0 -> real sample
    # mfake_ref:  (TB, 1)      f32   1.0 -> fake sample (0/0 for padded rows)
    # out_ref:    (1, 8, 128)  f32   per-B-tile partials (lanes 0..3 used)
    # acc_ref:    (TB, C, 128) f32   scratch: running lane-group spatial sums
    h = pl.program_id(1)

    @pl.when(h == 0)
    def _():
        acc_ref[...] = jnp.zeros_like(acc_ref)

    # Spatial pooling with zero cross-lane (XLU) work on the hot path: fold
    # the 128-wide lane groups of this spatial tile with plain VALU adds
    # (static, lane-group-aligned ref slices -> no relayout), f32 accumulate.
    partial = x_ref[:, :, 0:128].astype(jnp.float32)           # (TB, C, 128)
    for g in range(1, lane_groups):
        partial = partial + x_ref[:, :, g * 128:(g + 1) * 128].astype(jnp.float32)
    acc_ref[...] += partial

    @pl.when(h == pl.num_programs(1) - 1)
    def _():
        # One small cross-lane reduce per batch tile (TB*C*128 values).
        pooled = jnp.sum(acc_ref[...], axis=-1) * inv_hw        # (TB, C)
        diff = pooled - center_ref[...]                          # (TB, C)
        dist = jnp.sqrt(jnp.sum(diff * diff, axis=-1, keepdims=True))  # (TB,1)

        mreal = mreal_ref[...]                                   # (TB, 1)
        mfake = mfake_ref[...]                                   # (TB, 1)
        real_term = jnp.maximum(dist - R_REAL, 0.0)              # clamp(d - r_real, 0)
        fake_term = jnp.maximum(R_FAKE - dist, 0.0)              # clamp(r_fake - d, 0)

        sum_real = jnp.sum(mreal * real_term)
        sum_fake = jnp.sum(mfake * fake_term)
        n_real = jnp.sum(mreal)
        n_fake = jnp.sum(mfake)

        # Lane-dense partial-result tile: lanes 0..3 carry the payload.
        lane = jax.lax.broadcasted_iota(jnp.int32, out_ref.shape, 2)
        vals = jnp.where(lane == 0, sum_real,
               jnp.where(lane == 1, sum_fake,
               jnp.where(lane == 2, n_real,
               jnp.where(lane == 3, n_fake, 0.0))))
        out_ref[...] = vals


def embedding_contrast_loss(x, idx, center, *, tb=8, thw=512):
    """x: (B, C, H, W) array (NCHW, any float dtype); idx: (B,) bool mask
    (True = real sample); center: (C,).  Returns the scalar loss (float32)."""
    B, C, H, W = x.shape
    HW = H * W

    # NCHW -> (B, C, HW) is a free reshape (contiguous) -- no transpose pass.
    x_r = x.reshape(B, C, HW)

    # Spatial tile: a multiple of 128 lanes so in-kernel pooling is pure
    # lane-group adds.  Pad HW with zeros only if needed (zeros don't change
    # the pooled sum; we divide by the true HW).
    hw128 = pl.cdiv(HW, 128) * 128
    thw = max(128, min(pl.cdiv(thw, 128) * 128, hw128))
    pad_hw = pl.cdiv(HW, thw) * thw

    # Batch tile: take the whole (small) batch as one tile to avoid a pad copy.
    if B % tb != 0:
        if B <= 2 * tb:
            tb = B
    pad_b = pl.cdiv(B, tb) * tb

    if pad_b != B or pad_hw != HW:
        x_r = jnp.pad(x_r, ((0, pad_b - B), (0, 0), (0, pad_hw - HW)))

    mreal = idx.astype(jnp.float32).reshape(B, 1)
    mfake = jnp.logical_not(idx).astype(jnp.float32).reshape(B, 1)
    if pad_b != B:
        # Padded rows belong to neither class -> contribute nothing.
        mreal = jnp.pad(mreal, ((0, pad_b - B), (0, 0)))
        mfake = jnp.pad(mfake, ((0, pad_b - B), (0, 0)))

    center_2d = center.reshape(1, C).astype(jnp.float32)

    nb = pad_b // tb
    nh = pad_hw // thw
    lane_groups = thw // 128

    kernel = functools.partial(_emb_contrast_kernel, inv_hw=1.0 / HW,
                               lane_groups=lane_groups)

    partials = pl.pallas_call(
        kernel,
        out_shape=jax.ShapeDtypeStruct((nb, 8, 128), jnp.float32),
        grid_spec=pltpu.PrefetchScalarGridSpec(
            num_scalar_prefetch=0,
            grid=(nb, nh),
            in_specs=[
                # x tile: new block every (b, h) step -> double-buffered DMA.
                pl.BlockSpec((tb, C, thw), lambda b, h: (b, 0, h)),
                # center: constant block index -> stays VMEM-resident.
                pl.BlockSpec((1, C), lambda b, h: (0, 0)),
                # masks: invariant over the HW axis -> no re-DMA per HW step.
                pl.BlockSpec((tb, 1), lambda b, h: (b, 0)),
                pl.BlockSpec((tb, 1), lambda b, h: (b, 0)),
            ],
            out_specs=pl.BlockSpec((1, 8, 128), lambda b, h: (b, 0, 0)),
            scratch_shapes=[pltpu.VMEM((tb, C, 128), jnp.float32)],
        ),
        compiler_params=pltpu.CompilerParams(
            dimension_semantics=("parallel", "arbitrary")),
    )(x_r, center_2d, mreal, mfake)

    sum_real = jnp.sum(partials[:, 0, 0])
    sum_fake = jnp.sum(partials[:, 0, 1])
    n_real = jnp.sum(partials[:, 0, 2])
    n_fake = jnp.sum(partials[:, 0, 3])

    # Matches torch: mean() over an empty selection -> NaN if a class is absent.
    return sum_real / n_real + sum_fake / n_fake


def reference_loss(x, idx, center):
    # Pure-JAX reference of the PyTorch forward (computed in f32).
    xf = x.astype(jnp.float32)
    pooled = jnp.mean(xf, axis=(2, 3))
    d = jnp.linalg.norm(pooled - center.astype(jnp.float32)[None, :], axis=1)
    real = jnp.maximum(d[idx] - R_REAL, 0.0).mean()
    fake = jnp.maximum(R_FAKE - d[~idx], 0.0).mean()
    return real + fake


if __name__ == "__main__":
    key = jax.random.PRNGKey(0)
    kx, kc = jax.random.split(key)

    B, C, H, W = 16, 128, 16, 16   # C=128 matches the nn.Parameter center shape
    x = jax.random.normal(kx, (B, C, H, W), dtype=jnp.bfloat16)  # native bf16 in HBM
    idx = (jnp.arange(B) % 2) == 0                               # mix of real / fake
    center = 0.1 * jax.random.normal(kc, (C,), dtype=jnp.float32)

    # thw=128 -> 2 spatial grid steps at this size, exercising the accumulator.
    loss = embedding_contrast_loss(x, idx, center, thw=128)
    loss = jax.block_until_ready(loss)

    ref = reference_loss(x, idx, center)
    assert jnp.allclose(loss, ref, rtol=1e-4, atol=1e-4), (loss, ref)

    print("KERNEL_OK")
</pallas_src>

<mosaic_0001>
module attributes {stable_mosaic.version = 11 : i64} {
  func.func @_emb_contrast_kernel(%arg0: i32, %arg1: i32, %arg2: memref<8x128x128xbf16, #tpu.memory_space<vmem>>, %arg3: memref<1x128xf32, #tpu.memory_space<vmem>>, %arg4: memref<8x1xf32, #tpu.memory_space<vmem>>, %arg5: memref<8x1xf32, #tpu.memory_space<vmem>>, %arg6: memref<1x8x128xf32, #tpu.memory_space<vmem>>, %arg7: memref<8x128x128xf32, #tpu.memory_space<vmem>>) attributes {dimension_semantics = [#tpu.dimension_semantics<parallel>, #tpu.dimension_semantics<arbitrary>], iteration_bounds = array<i64: 2, 2>, scalar_prefetch = 0 : i64, scratch_operands = 1 : i64, tpu.core_type = #tpu.core_type<tc>, window_params = [{transform_indices = @transform_0, window_bounds = array<i64: 8, 128, 128>}, {pipeline_mode = #tpu.pipeline_mode<synchronous>, transform_indices = @transform_1, window_bounds = array<i64: 1, 128>}, {transform_indices = @transform_2, window_bounds = array<i64: 8, 1>}, {transform_indices = @transform_3, window_bounds = array<i64: 8, 1>}, {transform_indices = @transform_4, window_bounds = array<i64: 1, 8, 128>}]} {
    %c0_i32 = arith.constant 0 : i32
    %0 = arith.cmpi eq, %arg1, %c0_i32 : i32
    %1 = arith.extui %0 : i1 to i32
    %c0_i32_0 = arith.constant 0 : i32
    %2 = arith.cmpi ne, %1, %c0_i32_0 : i32
    scf.if %2 {
      %cst = arith.constant 0.000000e+00 : f32
      %11 = vector.broadcast %cst : f32 to vector<8x128x128xf32>
      %c0_10 = arith.constant 0 : index
      %c0_11 = arith.constant 0 : index
      %c0_12 = arith.constant 0 : index
      %12 = vector.load %arg7[%c0_10, %c0_11, %c0_12] : memref<8x128x128xf32, #tpu.memory_space<vmem>>, vector<8x128x128xf32>
      tpu.vector_store %arg7[%c0_10, %c0_11, %c0_12], %11 {strides = array<i32>} : memref<8x128x128xf32, #tpu.memory_space<vmem>>, vector<8x128x128xf32>,
    } else {
    }
    %c0 = arith.constant 0 : index
    %c0_1 = arith.constant 0 : index
    %c0_2 = arith.constant 0 : index
    %3 = vector.load %arg2[%c0, %c0_1, %c0_2] : memref<8x128x128xbf16, #tpu.memory_space<vmem>>, vector<8x128x128xbf16>
    %4 = arith.extf %3 : vector<8x128x128xbf16> to vector<8x128x128xf32>
    %c0_3 = arith.constant 0 : index
    %c0_4 = arith.constant 0 : index
    %c0_5 = arith.constant 0 : index
    %5 = vector.load %arg7[%c0_3, %c0_4, %c0_5] : memref<8x128x128xf32, #tpu.memory_space<vmem>>, vector<8x128x128xf32>
    %6 = arith.addf %5, %4 : vector<8x128x128xf32>
    %c0_6 = arith.constant 0 : index
    %c0_7 = arith.constant 0 : index
    %c0_8 = arith.constant 0 : index
    %7 = vector.load %arg7[%c0_6, %c0_7, %c0_8] : memref<8x128x128xf32, #tpu.memory_space<vmem>>, vector<8x128x128xf32>
    tpu.vector_store %arg7[%c0_6, %c0_7, %c0_8], %6 {strides = array<i32>} : memref<8x128x128xf32, #tpu.memory_space<vmem>>, vector<8x128x128xf32>,
    %c1_i32 = arith.constant 1 : i32
    %8 = arith.cmpi eq, %arg1, %c1_i32 : i32
    %9 = arith.extui %8 : i1 to i32
    %c0_i32_9 = arith.constant 0 : i32
    %10 = arith.cmpi ne, %9, %c0_i32_9 : i32
    scf.if %10 {
      %c0_10 = arith.constant 0 : index
      %c0_11 = arith.constant 0 : index
      %c0_12 = arith.constant 0 : index
      %11 = vector.load %arg7[%c0_10, %c0_11, %c0_12] : memref<8x128x128xf32, #tpu.memory_space<vmem>>, vector<8x128x128xf32>
      %cst = arith.constant dense<0.000000e+00> : vector<8x128xf32>
      %12 = vector.multi_reduction <add>, %11, %cst [2] : vector<8x128x128xf32> to vector<8x128xf32>
      %cst_13 = arith.constant 3.906250e-03 : f32
      %13 = vector.broadcast %cst_13 : f32 to vector<8x128xf32>
      %14 = arith.mulf %12, %13 : vector<8x128xf32>
      %c0_14 = arith.constant 0 : index
      %c0_15 = arith.constant 0 : index
      %15 = vector.load %arg3[%c0_14, %c0_15] : memref<1x128xf32, #tpu.memory_space<vmem>>, vector<1x128xf32>
      %16 = vector.broadcast %15 : vector<1x128xf32> to vector<8x128xf32>
      %17 = arith.subf %14, %16 : vector<8x128xf32>
      %18 = arith.mulf %17, %17 : vector<8x128xf32>
      %cst_16 = arith.constant dense<0.000000e+00> : vector<8xf32>
      %19 = vector.multi_reduction <add>, %18, %cst_16 [1] : vector<8x128xf32> to vector<8xf32>
      %20 = vector.shape_cast %19 : vector<8xf32> to vector<8x1xf32>
      %21 = math.sqrt %20 : vector<8x1xf32>
      %c0_17 = arith.constant 0 : index
      %c0_18 = arith.constant 0 : index
      %22 = vector.load %arg4[%c0_17, %c0_18] : memref<8x1xf32, #tpu.memory_space<vmem>>, vector<8x1xf32>
      %c0_19 = arith.constant 0 : index
      %c0_20 = arith.constant 0 : index
      %23 = vector.load %arg5[%c0_19, %c0_20] : memref<8x1xf32, #tpu.memory_space<vmem>>, vector<8x1xf32>
      %cst_21 = arith.constant 5.000000e-02 : f32
      %24 = vector.broadcast %cst_21 : f32 to vector<8x1xf32>
      %25 = arith.subf %21, %24 : vector<8x1xf32>
      %cst_22 = arith.constant 0.000000e+00 : f32
      %26 = vector.broadcast %cst_22 : f32 to vector<8x1xf32>
      %27 = arith.maximumf %25, %26 : vector<8x1xf32>
      %cst_23 = arith.constant 1.500000e+00 : f32
      %28 = vector.broadcast %cst_23 : f32 to vector<8x1xf32>
      %29 = arith.subf %28, %21 : vector<8x1xf32>
      %cst_24 = arith.constant 0.000000e+00 : f32
      %30 = vector.broadcast %cst_24 : f32 to vector<8x1xf32>
      %31 = arith.maximumf %29, %30 : vector<8x1xf32>
      %32 = arith.mulf %22, %27 : vector<8x1xf32>
      %33 = vector.shape_cast %32 : vector<8x1xf32> to vector<1x8x1xf32>
      %cst_25 = arith.constant dense<0.000000e+00> : vector<1xf32>
      %34 = vector.multi_reduction <add>, %33, %cst_25 [1, 2] : vector<1x8x1xf32> to vector<1xf32>
      %35 = vector.shape_cast %34 : vector<1xf32> to vector<1x1x1xf32>
      %36 = vector.extract %35[0, 0, 0] : f32 from vector<1x1x1xf32>
      %37 = arith.mulf %23, %31 : vector<8x1xf32>
      %38 = vector.shape_cast %37 : vector<8x1xf32> to vector<1x8x1xf32>
      %cst_26 = arith.constant dense<0.000000e+00> : vector<1xf32>
      %39 = vector.multi_reduction <add>, %38, %cst_26 [1, 2] : vector<1x8x1xf32> to vector<1xf32>
      %40 = vector.shape_cast %39 : vector<1xf32> to vector<1x1x1xf32>
      %41 = vector.extract %40[0, 0, 0] : f32 from vector<1x1x1xf32>
      %42 = vector.shape_cast %22 : vector<8x1xf32> to vector<1x8x1xf32>
      %cst_27 = arith.constant dense<0.000000e+00> : vector<1xf32>
      %43 = vector.multi_reduction <add>, %42, %cst_27 [1, 2] : vector<1x8x1xf32> to vector<1xf32>
      %44 = vector.shape_cast %43 : vector<1xf32> to vector<1x1x1xf32>
      %45 = vector.extract %44[0, 0, 0] : f32 from vector<1x1x1xf32>
      %46 = vector.shape_cast %23 : vector<8x1xf32> to vector<1x8x1xf32>
      %cst_28 = arith.constant dense<0.000000e+00> : vector<1xf32>
      %47 = vector.multi_reduction <add>, %46, %cst_28 [1, 2] : vector<1x8x1xf32> to vector<1xf32>
      %48 = vector.shape_cast %47 : vector<1xf32> to vector<1x1x1xf32>
      %49 = vector.extract %48[0, 0, 0] : f32 from vector<1x1x1xf32>
      %50 = tpu.iota {dimensions = array<i32: 2>} : vector<1x8x128xi32>
      %c0_i32_29 = arith.constant 0 : i32
      %51 = vector.broadcast %c0_i32_29 : i32 to vector<1x8x128xi32>
      %52 = arith.cmpi eq, %50, %51 : vector<1x8x128xi32>
      %c1_i32_30 = arith.constant 1 : i32
      %53 = vector.broadcast %c1_i32_30 : i32 to vector<1x8x128xi32>
      %54 = arith.cmpi eq, %50, %53 : vector<1x8x128xi32>
      %c2_i32 = arith.constant 2 : i32
      %55 = vector.broadcast %c2_i32 : i32 to vector<1x8x128xi32>
      %56 = arith.cmpi eq, %50, %55 : vector<1x8x128xi32>
      %c3_i32 = arith.constant 3 : i32
      %57 = vector.broadcast %c3_i32 : i32 to vector<1x8x128xi32>
      %58 = arith.cmpi eq, %50, %57 : vector<1x8x128xi32>
      %cst_31 = arith.constant 0.000000e+00 : f32
      %59 = vector.broadcast %49 : f32 to vector<1x8x128xf32>
      %60 = vector.broadcast %cst_31 : f32 to vector<1x8x128xf32>
      %61 = arith.select %58, %59, %60 : vector<1x8x128xi1>, vector<1x8x128xf32>
      %62 = vector.broadcast %45 : f32 to vector<1x8x128xf32>
      %63 = arith.select %56, %62, %61 : vector<1x8x128xi1>, vector<1x8x128xf32>
      %64 = vector.broadcast %41 : f32 to vector<1x8x128xf32>
      %65 = arith.select %54, %64, %63 : vector<1x8x128xi1>, vector<1x8x128xf32>
      %66 = vector.broadcast %36 : f32 to vector<1x8x128xf32>
      %67 = arith.select %52, %66, %65 : vector<1x8x128xi1>, vector<1x8x128xf32>
      %c0_32 = arith.constant 0 : index
      %c0_33 = arith.constant 0 : index
      %c0_34 = arith.constant 0 : index
      %68 = vector.load %arg6[%c0_32, %c0_33, %c0_34] : memref<1x8x128xf32, #tpu.memory_space<vmem>>, vector<1x8x128xf32>
      tpu.vector_store %arg6[%c0_32, %c0_33, %c0_34], %67 {strides = array<i32>} : memref<1x8x128xf32, #tpu.memory_space<vmem>>, vector<1x8x128xf32>,
    } else {
    }
    return
  }
  func.func @transform_0(%arg0: i32, %arg1: i32) -> (i32, i32, i32) {
    %c0_i32 = arith.constant 0 : i32
    %c0_i32_0 = arith.constant 0 : i32
    return %arg0, %c0_i32, %arg1 : i32, i32, i32
  }
  func.func @transform_1(%arg0: i32, %arg1: i32) -> (i32, i32) {
    %c0_i32 = arith.constant 0 : i32
    %c0_i32_0 = arith.constant 0 : i32
    %c0_i32_1 = arith.constant 0 : i32
    return %c0_i32, %c0_i32_0 : i32, i32
  }
  func.func @transform_2(%arg0: i32, %arg1: i32) -> (i32, i32) {
    %c0_i32 = arith.constant 0 : i32
    %c0_i32_0 = arith.constant 0 : i32
    return %arg0, %c0_i32 : i32, i32
  }
  func.func @transform_3(%arg0: i32, %arg1: i32) -> (i32, i32) {
    %c0_i32 = arith.constant 0 : i32
    %c0_i32_0 = arith.constant 0 : i32
    return %arg0, %c0_i32 : i32, i32
  }
  func.func @transform_4(%arg0: i32, %arg1: i32) -> (i32, i32, i32) {
    %c0_i32 = arith.constant 0 : i32
    %c0_i32_0 = arith.constant 0 : i32
    %c0_i32_1 = arith.constant 0 : i32
    return %arg0, %c0_i32, %c0_i32_0 : i32, i32, i32
  }
}

</mosaic_0001>

<bundles_post_ra>
// kernel: tpu_custom_call.1
= control target key start
LH: loop header
LB: loop body
LE: loop exit
PB: predicated region body
PF: predicated region fallthrough
CT: control target
= control target key end

     0   :  { %9 = vsyncpa [#allocation4], 0  ;;  %s5405_s0 = inlined_call_operand.hbm [shape: bf16[16,128,256], index: 0, kind: input, shape index: {}]   ;;  %s5406_s1 = inlined_call_operand.vmem [shape: f32[1,128], index: 1, kind: input, shape index: {}]   ;;  %s5407_s2 = inlined_call_operand.vmem [shape: f32[16,1], index: 2, kind: input, shape index: {}]   ;;  %s5408_s3 = inlined_call_operand.vmem [shape: f32[16,1], index: 3, kind: input, shape index: {}]   ;;  %s5409_s4 = inlined_call_operand.hbm [shape: f32[2,8,128], index: 4, kind: output, shape index: {}]  }
   0x1   :  { %11 = vsyncpa [#allocation4 + $0x1], 0 }
   0x2   :  { %12 = vsyncpa [#allocation5], 0 }
   0x3   :  { %14 = vsyncpa [#allocation5 + $0x1], 0  ;;  %s3925_s15 = smov 0   ;;  %s3927_s16 = smov 0  }
   0x4   :  { %s3929_s17 = smov 0   ;;  %s3931_s18 = smov 0  }
   0x5   :  { %s3933_s19 = smov 0   ;;  %s3935_s20 = smov 0  }
   0x6   :  { %s3937_s21 = smov 0   ;;  %s3939_s22 = smov 0  }
   0x7   :  { %s3941_s23 = smov 0   ;;  %s3943_s24 = smov 0  }
   0x8   :  { %s3945_s25 = smov 0  }
   0x9 LB: > { %s3279_s26 = sadd.s32 4294967295, %s3891_s25   ;;  %s3280_s27 = sadd.s32 4294967294, %s3891_s25   ;;  %s3891_s25 = sphi %s3945_s25, %s20_s25   ;;  %s3887_s24 = sphi %s3943_s24, %s5623_s24   ;;  %s3883_s23 = sphi %s3941_s23, %s5622_s23   ;;  %s3879_s22 = sphi %s3939_s22, %s5621_s22   ;;  %s3875_s21 = sphi %s3937_s21, %s5620_s21   ;;  %s3871_s20 = sphi %s3935_s20, %s5619_s20   ;;  %s3867_s19 = sphi %s3933_s19, %s5618_s19   ;;  %s3863_s18 = sphi %s3931_s18, %s5617_s18   ;;  %s3859_s17 = sphi %s3929_s17, %s5616_s17   ;;  %s3855_s16 = sphi %s3927_s16, %s5615_s16   ;;  %s3851_s15 = sphi %s3925_s15, %s5614_s15  }
   0xa   : > { %s29_s28 = sadd.s32 1, %s3883_s23  ;;  %s32_s29 = sadd.s32 1, %s3887_s24 }
   0xb   : > { %p30_p0 = scmp.ge.s32.totalorder %s29_s28, 2  ;;  %s41_s30 = sadd.s32 1, %s3871_s20 }
   0xc   : > { %p48_p1 = scmp.ne.s32.totalorder %s3871_s20, %s3867_s19  ;;  %p49_p2 = scmp.eq.s32.totalorder %s3891_s25, 0 }
   0xd   : > { %s5625_s28 = smov (%p30_p0, %s29_s28), 0  ;;  %s5627_s29 = smov (!%p30_p0, %s32_s29), %s3887_s24 }
   0xe   : > { %5417 = sst [smem:[#allocation9_spill]] %s5625_s28  ;;  %s37_s5 = ssub.s32 %s3883_s23, %s5625_s28 }
   0xf   : > { %p3991_p3 = por %p49_p2, %p48_p1  ;;  %p34_p4 = scmp.ge.s32.totalorder %s5627_s29, 2 }
  0x10   : > { %p54_p5 = scmp.ne.s32.totalorder %s3867_s19, %s3863_s18  ;;  %p55_p6 = scmp.eq.s32.totalorder %s3279_s26, 0 }
  0x11   : > { %s140_s7 = sadd.s32 1, %s3859_s17  ;;  %s5629_s29 = smov (%p34_p4, %s5627_s29), 0 }
  0x12   : > { %5419 = sst [smem:[#allocation10_spill]] %s5629_s29  ;;  %p3999_p7 = por %p55_p6, %p54_p5 }
  0x13   : > { %p150_p8 = scmp.ne.s32.totalorder %s3859_s17, %s3855_s16  ;;  %s36_s9 = ssub.s32 %s3887_s24, %s5629_s29 }
  0x14   : > { %p151_p9 = scmp.eq.s32.totalorder %s3279_s26, 3  ;;  %s38_s10 = sor.u32 %s37_s5, %s36_s9 }
  0x15   : > { %p138_p10 = scmp.eq.s32.totalorder %s36_s9, 0  ;;  %p39_p11 = scmp.eq.s32.totalorder %s38_s10, 0 }
  0x16   : > { %p4007_p12 = por %p151_p9, %p150_p8  ;;  %p156_p13 = scmp.ne.s32.totalorder %s3855_s16, %s3851_s15 }
  0x17   : > { %s4012_s12 = scalar_select %p138_p10, %s3859_s17, %s140_s7  }
  0x18   : > { %s5421_s11 = scalar_select %p4007_p12, 1, 0 }
  0x19   : > { %5422 = sst [smem:[#allocation11_spill]] %s4012_s12  ;;  %p157_p0 = scmp.eq.s32.totalorder %s3280_s27, 3 }
  0x1a   : > { %s4015_s13 = scalar_select %p39_p11, %s3871_s20, %s41_s30  }
  0x1b   : > { %p3640_p1 = scmp.lt.s32.totalorder %s3891_s25, 4  ;;  %p4020_p2 = por %p157_p0, %p156_p13 }
  0x1c   : > { %s180_s18 = sand.u32 1, %s3871_s20   ;;  %s3300_s5 = sshll.u32 %s3887_s24, 8 }
  0x1d   : > { %s5423_s14 = scalar_select %p4020_p2, 1, 0 }
  0x1e   : > { %s3283_s26 = sshll.u32 %s180_s18, 9  ;;  %s190_s9 = sadd.s32 %s3883_s23, %s3300_s5 }
  0x1f   : > { %s184_s10 = scalar_lea.vmem [#allocation3], %s3283_s26  ;;  %s3286_s28 = sshll.u32 %s190_s9, 6 }
  0x20   : > { %s193_s29 = sshll.u32 %s184_s10, 4  ;;  %s4032_s30 = scalar_lea.hbm %s5405_s0, %s3286_s28  ;;  %s4027_s29 = int_to_ptr.vmem [resolvable:$true] %s193_s29 }
  0x21   : > { %p4036_p4 = pnand %p3640_p1, %p3991_p3  ;;  %s4040_s26 = scalar_lea.sflag [#allocation4], %s180_s18 }
  0x22   : > { %s3739_s5 = scalar_lea.hbm %s4032_s30, 8192  ;;  %s3744_s12 = scalar_lea.hbm %s5405_s0, 32768 }
  0x23   : > { %p3740_p5 = scmp.ne.s32.totalorder %s4032_s30, %s3739_s5  ;;  %p3741_p6 = pneg %p4036_p4 }
  0x24   : > { %p3745_p3 = scmp.lt.u32.totalorder %s4032_s30, %s5405_s0  ;;  %p3746_p10 = scmp.lt.u32.totalorder %s3744_s12, %s3739_s5 }
  0x25   : > { %p3742_p8 = pnand %p3741_p6, %p3740_p5  ;;  %p3748_p13 = scmp.lt.u32.totalorder %s3739_s5, %s4032_s30 }
  0x26   : > { %p3747_p11 = por %p3746_p10, %p3745_p3 }
  0x27   : > { %p3743_p9 = pneg %p3742_p8 }
  0x28   : > { %p3749_p0 = por %p3748_p13, %p3747_p11 }
  0x2a   : > { %p3750_p1 = pnand %p3749_p0, %p3743_p9 }
  0x2c   : > { %3753 = shalt.err (!%p3750_p1)
}
  0x2d   : > { %s3754_s18 = scalar_lea.vmem %s4027_s29, 8192  ;;  %s3893_s7 = smov [#allocation3]  }
  0x2e   : > { %p3755_p5 = scmp.ne.s32.totalorder %s4027_s29, %s3754_s18  ;;  %s3759_s28 = sshll.u32 %s3893_s7, 4  ;;  %s3760_s28 = int_to_ptr.vmem [resolvable:$false] %s3759_s28 }
  0x2f   : > { %s3761_s6 = scalar_lea.vmem %s3760_s28, 16384  ;;  %p3762_p12 = scmp.lt.s32.totalorder %s4027_s29, %s3760_s28 }
  0x30   : > { %p3757_p8 = pnand %p3755_p5, %p3741_p6  ;;  %p3763_p3 = scmp.lt.s32.totalorder %s3761_s6, %s3754_s18 }
  0x32   : > { %p3758_p2 = pneg %p3757_p8  ;;  %p3764_p10 = por %p3763_p3, %p3762_p12 }
  0x34   : > { %p3765_p11 = pnand %p3764_p10, %p3758_p2 }
  0x36   : > { %3768 = shalt.err (!%p3765_p11)
}
  0x37   : > { %s3894_s5 = smov 128   ;;  %s3895_s12 = smov 64  }
  0x38   : > { %s3896_s9 = smov 4   ;;  %p3287_p6 = scmp.ge.s32.totalorder %s3891_s25, 1 }
  0x39   : > { %3635 = dma.hbm_to_vmem [thread:$0]  (!%p4036_p4), %s4032_s30, 8192, %s4027_s29, %s4040_s26, %s3894_s5, %s3895_s12, %s3896_s9  }
  0x3a   : > { %p215_p9 = scmp.lt.s32.totalorder %s3891_s25, 5 }
  0x3c   : > { %p216_p13 = pnand %p3287_p6, %p215_p9 }
  0x3d   : > { %s221_s10 = sand.u32 (!%p216_p13), 1, %s3867_s19  }
  0x3e   : > { %219 = sbr.rel (%p216_p13) target bundleno = 1421 (0x58d), region = 36  ;;  %s3288_s18 = sshll.u32 (!%p216_p13), %s221_s10, 9 }
  0x3f   : > { %s222_s7 = scalar_lea.sflag (!%p216_p13), [#allocation4], %s221_s10  ;;  %s4071_s28 = scalar_lea.vmem (!%p216_p13), [#allocation3], %s3288_s18 }
  0x45   : > { %3842 = dma.done.wait (%p3999_p7), %s222_s7, 8192  }
  0x46   : > { %3844 = vsyncadd (%p3999_p7), %s222_s7, 4294959104  ;;  %s255_s29 = sand.u32 1, %s3855_s16   ;;  %p259_p12 = scmp.lt.s32.totalorder %s3879_s22, 1 }
  0x47   : > { %s4081_s30 = sshll.u32 %s255_s29, 3  ;;  %p3292_p7 = scmp.ne.s32.totalorder %s3875_s21, 0 }
  0x48   : > { %s260_s27 = scalar_select %p259_p12, %s3879_s22, 1 }
  0x49   : > { %s257_s18 = scalar_lea.vmem [#allocation6], %s4081_s30  ;;  %270 = sbr.rel (%p3292_p7) target bundleno = 138 (0x8a), region = 44  ;;  %v3897_v0 = vmov (!%p3292_p7), 0.0  }
  0x4a   : > { %s3290_s26 = sshll.u32 %s260_s27, 3  ;;  %271 = vst [vmem:[#allocation2] sm:$0xff] (!%p3292_p7), %v3897_v0  ;;  %272 = vst [vmem:[#allocation2 + $0x8] sm:$0xff] (!%p3292_p7), %v3897_v0 }
  0x4b   : > { %s4087_s12 = scalar_lea.vmem %s5407_s2, %s3290_s26  ;;  %s4092_s10 = scalar_lea.vmem %s5408_s3, %s3290_s26  ;;  %273 = vst [vmem:[#allocation2 + $0x10] sm:$0xff] (!%p3292_p7), %v3897_v0  ;;  %274 = vst [vmem:[#allocation2 + $0x18] sm:$0xff] (!%p3292_p7), %v3897_v0 }
  0x4c   : > { %275 = vst [vmem:[#allocation2 + $0x20] sm:$0xff] (!%p3292_p7), %v3897_v0  ;;  %276 = vst [vmem:[#allocation2 + $0x28] sm:$0xff] (!%p3292_p7), %v3897_v0 }
  0x4d   : > { %277 = vst [vmem:[#allocation2 + $0x30] sm:$0xff] (!%p3292_p7), %v3897_v0  ;;  %278 = vst [vmem:[#allocation2 + $0x38] sm:$0xff] (!%p3292_p7), %v3897_v0 }
  0x4e   : > { %279 = vst [vmem:[#allocation2 + $0x40] sm:$0xff] (!%p3292_p7), %v3897_v0  ;;  %280 = vst [vmem:[#allocation2 + $0x48] sm:$0xff] (!%p3292_p7), %v3897_v0 }
  0x4f   : > { %281 = vst [vmem:[#allocation2 + $0x50] sm:$0xff] (!%p3292_p7), %v3897_v0  ;;  %282 = vst [vmem:[#allocation2 + $0x58] sm:$0xff] (!%p3292_p7), %v3897_v0 }
  0x50   : > { %283 = vst [vmem:[#allocation2 + $0x60] sm:$0xff] %v3897_v0  ;;  %284 = vst [vmem:[#allocation2 + $0x68] sm:$0xff] %v3897_v0 }
  0x51   : > { %285 = vst [vmem:[#allocation2 + $0x70] sm:$0xff] %v3897_v0  ;;  %286 = vst [vmem:[#allocation2 + $0x78] sm:$0xff] %v3897_v0 }
  0x52   : > { %287 = vst [vmem:[#allocation2 + $0x80] sm:$0xff] %v3897_v0  ;;  %288 = vst [vmem:[#allocation2 + $0x88] sm:$0xff] %v3897_v0 }
  0x53   : > { %289 = vst [vmem:[#allocation2 + $0x90] sm:$0xff] %v3897_v0  ;;  %290 = vst [vmem:[#allocation2 + $0x98] sm:$0xff] %v3897_v0 }
  0x54   : > { %291 = vst [vmem:[#allocation2 + $0xa0] sm:$0xff] %v3897_v0  ;;  %292 = vst [vmem:[#allocation2 + $0xa8] sm:$0xff] %v3897_v0 }
  0x55   : > { %293 = vst [vmem:[#allocation2 + $0xb0] sm:$0xff] %v3897_v0  ;;  %294 = vst [vmem:[#allocation2 + $0xb8] sm:$0xff] %v3897_v0 }
  0x56   : > { %295 = vst [vmem:[#allocation2 + $0xc0] sm:$0xff] %v3897_v0  ;;  %296 = vst [vmem:[#allocation2 + $0xc8] sm:$0xff] %v3897_v0 }
  0x57   : > { %297 = vst [vmem:[#allocation2 + $0xd0] sm:$0xff] %v3897_v0  ;;  %298 = vst [vmem:[#allocation2 + $0xd8] sm:$0xff] %v3897_v0 }
  0x58   : > { %299 = vst [vmem:[#allocation2 + $0xe0] sm:$0xff] %v3897_v0  ;;  %300 = vst [vmem:[#allocation2 + $0xe8] sm:$0xff] %v3897_v0 }
  0x59   : > { %301 = vst [vmem:[#allocation2 + $0xf0] sm:$0xff] %v3897_v0  ;;  %302 = vst [vmem:[#allocation2 + $0xf8] sm:$0xff] %v3897_v0 }
  0x5a   : > { %303 = vst [vmem:[#allocation2 + $0x100] sm:$0xff] %v3897_v0  ;;  %304 = vst [vmem:[#allocation2 + $0x108] sm:$0xff] %v3897_v0 }
  0x5b   : > { %305 = vst [vmem:[#allocation2 + $0x110] sm:$0xff] %v3897_v0  ;;  %306 = vst [vmem:[#allocation2 + $0x118] sm:$0xff] %v3897_v0 }
  0x5c   : > { %307 = vst [vmem:[#allocation2 + $0x120] sm:$0xff] %v3897_v0  ;;  %308 = vst [vmem:[#allocation2 + $0x128] sm:$0xff] %v3897_v0 }
  0x5d   : > { %309 = vst [vmem:[#allocation2 + $0x130] sm:$0xff] %v3897_v0  ;;  %310 = vst [vmem:[#allocation2 + $0x138] sm:$0xff] %v3897_v0 }
  0x5e   : > { %311 = vst [vmem:[#allocation2 + $0x140] sm:$0xff] %v3897_v0  ;;  %312 = vst [vmem:[#allocation2 + $0x148] sm:$0xff] %v3897_v0 }
  0x5f   : > { %313 = vst [vmem:[#allocation2 + $0x150] sm:$0xff] %v3897_v0  ;;  %314 = vst [vmem:[#allocation2 + $0x158] sm:$0xff] %v3897_v0 }
  0x60   : > { %315 = vst [vmem:[#allocation2 + $0x160] sm:$0xff] %v3897_v0  ;;  %316 = vst [vmem:[#allocation2 + $0x168] sm:$0xff] %v3897_v0 }
  0x61   : > { %317 = vst [vmem:[#allocation2 + $0x170] sm:$0xff] %v3897_v0  ;;  %318 = vst [vmem:[#allocation2 + $0x178] sm:$0xff] %v3897_v0 }
  0x62   : > { %319 = vst [vmem:[#allocation2 + $0x180] sm:$0xff] %v3897_v0  ;;  %320 = vst [vmem:[#allocation2 + $0x188] sm:$0xff] %v3897_v0 }
  0x63   : > { %321 = vst [vmem:[#allocation2 + $0x190] sm:$0xff] %v3897_v0  ;;  %322 = vst [vmem:[#allocation2 + $0x198] sm:$0xff] %v3897_v0 }
  0x64   : > { %323 = vst [vmem:[#allocation2 + $0x1a0] sm:$0xff] %v3897_v0  ;;  %324 = vst [vmem:[#allocation2 + $0x1a8] sm:$0xff] %v3897_v0 }
  0x65   : > { %325 = vst [vmem:[#allocation2 + $0x1b0] sm:$0xff] %v3897_v0  ;;  %326 = vst [vmem:[#allocation2 + $0x1b8] sm:$0xff] %v3897_v0 }
  0x66   : > { %327 = vst [vmem:[#allocation2 + $0x1c0] sm:$0xff] %v3897_v0  ;;  %328 = vst [vmem:[#allocation2 + $0x1c8] sm:$0xff] %v3897_v0 }
  0x67   : > { %329 = vst [vmem:[#allocation2 + $0x1d0] sm:$0xff] %v3897_v0  ;;  %330 = vst [vmem:[#allocation2 + $0x1d8] sm:$0xff] %v3897_v0 }
  0x68   : > { %331 = vst [vmem:[#allocation2 + $0x1e0] sm:$0xff] %v3897_v0  ;;  %332 = vst [vmem:[#allocation2 + $0x1e8] sm:$0xff] %v3897_v0 }
  0x69   : > { %333 = vst [vmem:[#allocation2 + $0x1f0] sm:$0xff] %v3897_v0  ;;  %334 = vst [vmem:[#allocation2 + $0x1f8] sm:$0xff] %v3897_v0 }
  0x6a   : > { %335 = vst [vmem:[#allocation2 + $0x200] sm:$0xff] %v3897_v0  ;;  %336 = vst [vmem:[#allocation2 + $0x208] sm:$0xff] %v3897_v0 }
  0x6b   : > { %337 = vst [vmem:[#allocation2 + $0x210] sm:$0xff] %v3897_v0  ;;  %338 = vst [vmem:[#allocation2 + $0x218] sm:$0xff] %v3897_v0 }
  0x6c   : > { %339 = vst [vmem:[#allocation2 + $0x220] sm:$0xff] %v3897_v0  ;;  %340 = vst [vmem:[#allocation2 + $0x228] sm:$0xff] %v3897_v0 }
  0x6d   : > { %341 = vst [vmem:[#allocation2 + $0x230] sm:$0xff] %v3897_v0  ;;  %342 = vst [vmem:[#allocation2 + $0x238] sm:$0xff] %v3897_v0 }
  0x6e   : > { %343 = vst [vmem:[#allocation2 + $0x240] sm:$0xff] %v3897_v0  ;;  %344 = vst [vmem:[#allocation2 + $0x248] sm:$0xff] %v3897_v0 }
  0x6f   : > { %345 = vst [vmem:[#allocation2 + $0x250] sm:$0xff] %v3897_v0  ;;  %346 = vst [vmem:[#allocation2 + $0x258] sm:$0xff] %v3897_v0 }
  0x70   : > { %347 = vst [vmem:[#allocation2 + $0x260] sm:$0xff] %v3897_v0  ;;  %348 = vst [vmem:[#allocation2 + $0x268] sm:$0xff] %v3897_v0 }
  0x71   : > { %349 = vst [vmem:[#allocation2 + $0x270] sm:$0xff] %v3897_v0  ;;  %350 = vst [vmem:[#allocation2 + $0x278] sm:$0xff] %v3897_v0 }
  0x72   : > { %351 = vst [vmem:[#allocation2 + $0x280] sm:$0xff] %v3897_v0  ;;  %352 = vst [vmem:[#allocation2 + $0x288] sm:$0xff] %v3897_v0 }
  0x73   : > { %353 = vst [vmem:[#allocation2 + $0x290] sm:$0xff] %v3897_v0  ;;  %354 = vst [vmem:[#allocation2 + $0x298] sm:$0xff] %v3897_v0 }
  0x74   : > { %355 = vst [vmem:[#allocation2 + $0x2a0] sm:$0xff] %v3897_v0  ;;  %356 = vst [vmem:[#allocation2 + $0x2a8] sm:$0xff] %v3897_v0 }
  0x75   : > { %357 = vst [vmem:[#allocation2 + $0x2b0] sm:$0xff] %v3897_v0  ;;  %358 = vst [vmem:[#allocation2 + $0x2b8] sm:$0xff] %v3897_v0 }
  0x76   : > { %359 = vst [vmem:[#allocation2 + $0x2c0] sm:$0xff] %v3897_v0  ;;  %360 = vst [vmem:[#allocation2 + $0x2c8] sm:$0xff] %v3897_v0 }
  0x77   : > { %361 = vst [vmem:[#allocation2 + $0x2d0] sm:$0xff] %v3897_v0  ;;  %362 = vst [vmem:[#allocation2 + $0x2d8] sm:$0xff] %v3897_v0 }
  0x78   : > { %363 = vst [vmem:[#allocation2 + $0x2e0] sm:$0xff] %v3897_v0  ;;  %364 = vst [vmem:[#allocation2 + $0x2e8] sm:$0xff] %v3897_v0 }
  0x79   : > { %365 = vst [vmem:[#allocation2 + $0x2f0] sm:$0xff] %v3897_v0  ;;  %366 = vst [vmem:[#allocation2 + $0x2f8] sm:$0xff] %v3897_v0 }
  0x7a   : > { %367 = vst [vmem:[#allocation2 + $0x300] sm:$0xff] %v3897_v0  ;;  %368 = vst [vmem:[#allocation2 + $0x308] sm:$0xff] %v3897_v0 }
  0x7b   : > { %369 = vst [vmem:[#allocation2 + $0x310] sm:$0xff] %v3897_v0  ;;  %370 = vst [vmem:[#allocation2 + $0x318] sm:$0xff] %v3897_v0 }
  0x7c   : > { %371 = vst [vmem:[#allocation2 + $0x320] sm:$0xff] %v3897_v0  ;;  %372 = vst [vmem:[#allocation2 + $0x328] sm:$0xff] %v3897_v0 }
  0x7d   : > { %373 = vst [vmem:[#allocation2 + $0x330] sm:$0xff] %v3897_v0  ;;  %374 = vst [vmem:[#allocation2 + $0x338] sm:$0xff] %v3897_v0 }
  0x7e   : > { %375 = vst [vmem:[#allocation2 + $0x340] sm:$0xff] %v3897_v0  ;;  %376 = vst [vmem:[#allocation2 + $0x348] sm:$0xff] %v3897_v0 }
  0x7f   : > { %377 = vst [vmem:[#allocation2 + $0x350] sm:$0xff] %v3897_v0  ;;  %378 = vst [vmem:[#allocation2 + $0x358] sm:$0xff] %v3897_v0 }
  0x80   : > { %379 = vst [vmem:[#allocation2 + $0x360] sm:$0xff] %v3897_v0  ;;  %380 = vst [vmem:[#allocation2 + $0x368] sm:$0xff] %v3897_v0 }
  0x81   : > { %381 = vst [vmem:[#allocation2 + $0x370] sm:$0xff] %v3897_v0  ;;  %382 = vst [vmem:[#allocation2 + $0x378] sm:$0xff] %v3897_v0 }
  0x82   : > { %383 = vst [vmem:[#allocation2 + $0x380] sm:$0xff] %v3897_v0  ;;  %384 = vst [vmem:[#allocation2 + $0x388] sm:$0xff] %v3897_v0 }
  0x83   : > { %385 = vst [vmem:[#allocation2 + $0x390] sm:$0xff] %v3897_v0  ;;  %386 = vst [vmem:[#allocation2 + $0x398] sm:$0xff] %v3897_v0 }
  0x84   : > { %387 = vst [vmem:[#allocation2 + $0x3a0] sm:$0xff] %v3897_v0  ;;  %388 = vst [vmem:[#allocation2 + $0x3a8] sm:$0xff] %v3897_v0 }
  0x85   : > { %389 = vst [vmem:[#allocation2 + $0x3b0] sm:$0xff] %v3897_v0  ;;  %390 = vst [vmem:[#allocation2 + $0x3b8] sm:$0xff] %v3897_v0 }
  0x86   : > { %391 = vst [vmem:[#allocation2 + $0x3c0] sm:$0xff] %v3897_v0  ;;  %392 = vst [vmem:[#allocation2 + $0x3c8] sm:$0xff] %v3897_v0 }
  0x87   : > { %393 = vst [vmem:[#allocation2 + $0x3d0] sm:$0xff] %v3897_v0  ;;  %394 = vst [vmem:[#allocation2 + $0x3d8] sm:$0xff] %v3897_v0 }
  0x88   : > { %395 = vst [vmem:[#allocation2 + $0x3e0] sm:$0xff] %v3897_v0  ;;  %396 = vst [vmem:[#allocation2 + $0x3e8] sm:$0xff] %v3897_v0 }
  0x89   : > { %397 = vst [vmem:[#allocation2 + $0x3f0] sm:$0xff] %v3897_v0  ;;  %398 = vst [vmem:[#allocation2 + $0x3f8] sm:$0xff] %v3897_v0 }
  0x8a PF: > { %v3302_v1 = vld [vmem:[%s4071_s28] sm:$0xff]   ;;  %v3557_v6 = vld [vmem:[%s4071_s28 + $0x8] sm:$0xff]   ;;  %v3558_v11 = vld [vmem:[%s4071_s28 + $0x10] sm:$0xff]   ;;  %p3293_p2 = scmp.ne.s32.totalorder %s3875_s21, 1 }
  0x8b   : > { %v655_v2 = vld [vmem:[#allocation2] sm:$0xff]  ;;  %v656_v3 = vld [vmem:[#allocation2 + $0x8] sm:$0xff]  ;;  %v3303_v4 = vunpack.c.l.bf16 %v3302_v1  ;;  %v3304_v5 = vunpack.c.h.bf16 %v3302_v1  ;;  %v3307_v9 = vunpack.c.l.bf16 %v3557_v6  ;;  %v3308_v10 = vunpack.c.h.bf16 %v3557_v6  ;;  %v3559_v18 = vld [vmem:[%s4071_s28 + $0x18] sm:$0xff]  }
  0x8c   : > { %v657_v7 = vld [vmem:[#allocation2 + $0x10] sm:$0xff]  ;;  %v658_v8 = vld [vmem:[#allocation2 + $0x18] sm:$0xff]  ;;  %v3311_v16 = vunpack.c.l.bf16 %v3558_v11  ;;  %v3312_v17 = vunpack.c.h.bf16 %v3558_v11  ;;  %v3315_v23 = vunpack.c.l.bf16 %v3559_v18  ;;  %v3316_v24 = vunpack.c.h.bf16 %v3559_v18  ;;  %v3560_v25 = vld [vmem:[%s4071_s28 + $0x20] sm:$0xff]  }
  0x8d   : > { %v659_v12 = vld [vmem:[#allocation2 + $0x20] sm:$0xff]  ;;  %v660_v13 = vld [vmem:[#allocation2 + $0x28] sm:$0xff]  ;;  %v783_v14 = vadd.f32 %v3303_v4, %v655_v2  ;;  %v784_v15 = vadd.f32 %v3304_v5, %v656_v3  ;;  %v785_v21 = vadd.f32 %v3307_v9, %v657_v7  ;;  %v786_v22 = vadd.f32 %v3308_v10, %v658_v8  ;;  %v3562_v39 = vld [vmem:[%s4071_s28 + $0x30] sm:$0xff]  }
  0x8e   : > { %v661_v19 = vld [vmem:[#allocation2 + $0x30] sm:$0xff]  ;;  %v662_v20 = vld [vmem:[#allocation2 + $0x38] sm:$0xff]  ;;  %v787_v28 = vadd.f32 %v3311_v16, %v659_v12  ;;  %v788_v29 = vadd.f32 %v3312_v17, %v660_v13  ;;  %v3319_v30 = vunpack.c.l.bf16 %v3560_v25  ;;  %v3320_v31 = vunpack.c.h.bf16 %v3560_v25  ;;  %v3561_v32 = vld [vmem:[%s4071_s28 + $0x28] sm:$0xff]  }
  0x8f   : > { %v663_v26 = vld [vmem:[#allocation2 + $0x40] sm:$0xff]  ;;  %v664_v27 = vld [vmem:[#allocation2 + $0x48] sm:$0xff]  ;;  %911 = vst [vmem:[#allocation2] sm:$0xff] %v783_v14  ;;  %912 = vst [vmem:[#allocation2 + $0x8] sm:$0xff] %v784_v15  ;;  %v789_v35 = vadd.f32 %v3315_v23, %v661_v19  ;;  %v790_v36 = vadd.f32 %v3316_v24, %v662_v20  ;;  %v3323_v37 = vunpack.c.l.bf16 %v3561_v32  ;;  %v3324_v38 = vunpack.c.h.bf16 %v3561_v32 }
  0x90   : > { %v665_v33 = vld [vmem:[#allocation2 + $0x50] sm:$0xff]  ;;  %v666_v34 = vld [vmem:[#allocation2 + $0x58] sm:$0xff]  ;;  %913 = vst [vmem:[#allocation2 + $0x10] sm:$0xff] %v785_v21  ;;  %914 = vst [vmem:[#allocation2 + $0x18] sm:$0xff] %v786_v22  ;;  %v791_v42 = vadd.f32 %v3319_v30, %v663_v26  ;;  %v792_v43 = vadd.f32 %v3320_v31, %v664_v27  ;;  %v3327_v44 = vunpack.c.l.bf16 %v3562_v39  ;;  %v3328_v45 = vunpack.c.h.bf16 %v3562_v39 }
  0x91   : > { %v667_v40 = vld [vmem:[#allocation2 + $0x60] sm:$0xff]  ;;  %v668_v41 = vld [vmem:[#allocation2 + $0x68] sm:$0xff]  ;;  %915 = vst [vmem:[#allocation2 + $0x20] sm:$0xff] %v787_v28  ;;  %916 = vst [vmem:[#allocation2 + $0x28] sm:$0xff] %v788_v29  ;;  %v793_v49 = vadd.f32 %v3323_v37, %v665_v33  ;;  %v794_v50 = vadd.f32 %v3324_v38, %v666_v34 }
  0x92   : > { %v3563_v46 = vld [vmem:[%s4071_s28 + $0x38] sm:$0xff]   ;;  %v669_v47 = vld [vmem:[#allocation2 + $0x70] sm:$0xff]  ;;  %917 = vst [vmem:[#allocation2 + $0x30] sm:$0xff] %v789_v35  ;;  %918 = vst [vmem:[#allocation2 + $0x38] sm:$0xff] %v790_v36  ;;  %v795_v56 = vadd.f32 %v3327_v44, %v667_v40  ;;  %v796_v57 = vadd.f32 %v3328_v45, %v668_v41 }
  0x93   : > { %v670_v48 = vld [vmem:[#allocation2 + $0x78] sm:$0xff]  ;;  %v3331_v51 = vunpack.c.l.bf16 %v3563_v46  ;;  %v3332_v52 = vunpack.c.h.bf16 %v3563_v46  ;;  %v3564_v53 = vld [vmem:[%s4071_s28 + $0x40] sm:$0xff]   ;;  %v672_v55 = vld [vmem:[#allocation2 + $0x88] sm:$0xff]  ;;  %919 = vst [vmem:[#allocation2 + $0x40] sm:$0xff] %v791_v42 }
  0x94   : > { %v671_v54 = vld [vmem:[#allocation2 + $0x80] sm:$0xff]  ;;  %920 = vst [vmem:[#allocation2 + $0x48] sm:$0xff] %v792_v43  ;;  %v3335_v58 = vunpack.c.l.bf16 %v3564_v53  ;;  %v3336_v59 = vunpack.c.h.bf16 %v3564_v53  ;;  %v3565_v60 = vld [vmem:[%s4071_s28 + $0x48] sm:$0xff]   ;;  %v673_v61 = vld [vmem:[#allocation2 + $0x90] sm:$0xff] }
  0x95   : > { %v674_v62 = vld [vmem:[#allocation2 + $0x98] sm:$0xff]  ;;  %921 = vst [vmem:[#allocation2 + $0x50] sm:$0xff] %v793_v49  ;;  %922 = vst [vmem:[#allocation2 + $0x58] sm:$0xff] %v794_v50  ;;  %v797_v63 = vadd.f32 %v3331_v51, %v669_v47  ;;  %v798_v0 = vadd.f32 %v3332_v52, %v670_v48  ;;  %v3339_v1 = vunpack.c.l.bf16 %v3565_v60  ;;  %v3340_v2 = vunpack.c.h.bf16 %v3565_v60  ;;  %v3566_v3 = vld [vmem:[%s4071_s28 + $0x50] sm:$0xff]  }
  0x96   : > { %v675_v4 = vld [vmem:[#allocation2 + $0xa0] sm:$0xff]  ;;  %v676_v5 = vld [vmem:[#allocation2 + $0xa8] sm:$0xff]  ;;  %923 = vst [vmem:[#allocation2 + $0x60] sm:$0xff] %v795_v56  ;;  %924 = vst [vmem:[#allocation2 + $0x68] sm:$0xff] %v796_v57  ;;  %v799_v6 = vadd.f32 %v3335_v58, %v671_v54  ;;  %v800_v7 = vadd.f32 %v3336_v59, %v672_v55  ;;  %v3343_v8 = vunpack.c.l.bf16 %v3566_v3  ;;  %v3344_v9 = vunpack.c.h.bf16 %v3566_v3 }
  0x97   : > { %v3567_v10 = vld [vmem:[%s4071_s28 + $0x58] sm:$0xff]   ;;  %v677_v11 = vld [vmem:[#allocation2 + $0xb0] sm:$0xff]  ;;  %925 = vst [vmem:[#allocation2 + $0x70] sm:$0xff] %v797_v63  ;;  %926 = vst [vmem:[#allocation2 + $0x78] sm:$0xff] %v798_v0  ;;  %v801_v13 = vadd.f32 %v3339_v1, %v673_v61  ;;  %v802_v14 = vadd.f32 %v3340_v2, %v674_v62 }
  0x98   : > { %v678_v12 = vld [vmem:[#allocation2 + $0xb8] sm:$0xff]  ;;  %v3347_v15 = vunpack.c.l.bf16 %v3567_v10  ;;  %v3348_v16 = vunpack.c.h.bf16 %v3567_v10  ;;  %v3568_v17 = vld [vmem:[%s4071_s28 + $0x60] sm:$0xff]   ;;  %v680_v19 = vld [vmem:[#allocation2 + $0xc8] sm:$0xff]  ;;  %927 = vst [vmem:[#allocation2 + $0x80] sm:$0xff] %v799_v6  ;;  %v803_v20 = vadd.f32 %v3343_v8, %v675_v4  ;;  %v804_v21 = vadd.f32 %v3344_v9, %v676_v5 }
  0x99   : > { %v679_v18 = vld [vmem:[#allocation2 + $0xc0] sm:$0xff]  ;;  %928 = vst [vmem:[#allocation2 + $0x88] sm:$0xff] %v800_v7  ;;  %v3351_v22 = vunpack.c.l.bf16 %v3568_v17  ;;  %v3352_v23 = vunpack.c.h.bf16 %v3568_v17  ;;  %v3569_v24 = vld [vmem:[%s4071_s28 + $0x68] sm:$0xff]   ;;  %v681_v25 = vld [vmem:[#allocation2 + $0xd0] sm:$0xff] }
  0x9a   : > { %v682_v26 = vld [vmem:[#allocation2 + $0xd8] sm:$0xff]  ;;  %929 = vst [vmem:[#allocation2 + $0x90] sm:$0xff] %v801_v13  ;;  %930 = vst [vmem:[#allocation2 + $0x98] sm:$0xff] %v802_v14  ;;  %v805_v27 = vadd.f32 %v3347_v15, %v677_v11  ;;  %v806_v28 = vadd.f32 %v3348_v16, %v678_v12  ;;  %v3355_v29 = vunpack.c.l.bf16 %v3569_v24  ;;  %v3356_v30 = vunpack.c.h.bf16 %v3569_v24  ;;  %v3570_v31 = vld [vmem:[%s4071_s28 + $0x70] sm:$0xff]  }
  0x9b   : > { %v683_v32 = vld [vmem:[#allocation2 + $0xe0] sm:$0xff]  ;;  %v684_v33 = vld [vmem:[#allocation2 + $0xe8] sm:$0xff]  ;;  %931 = vst [vmem:[#allocation2 + $0xa0] sm:$0xff] %v803_v20  ;;  %932 = vst [vmem:[#allocation2 + $0xa8] sm:$0xff] %v804_v21  ;;  %v807_v34 = vadd.f32 %v3351_v22, %v679_v18  ;;  %v808_v35 = vadd.f32 %v3352_v23, %v680_v19  ;;  %v3359_v36 = vunpack.c.l.bf16 %v3570_v31  ;;  %v3360_v37 = vunpack.c.h.bf16 %v3570_v31 }
  0x9c   : > { %v3571_v38 = vld [vmem:[%s4071_s28 + $0x78] sm:$0xff]   ;;  %v685_v39 = vld [vmem:[#allocation2 + $0xf0] sm:$0xff]  ;;  %933 = vst [vmem:[#allocation2 + $0xb0] sm:$0xff] %v805_v27  ;;  %934 = vst [vmem:[#allocation2 + $0xb8] sm:$0xff] %v806_v28  ;;  %v809_v41 = vadd.f32 %v3355_v29, %v681_v25  ;;  %v810_v42 = vadd.f32 %v3356_v30, %v682_v26 }
  0x9d   : > { %v686_v40 = vld [vmem:[#allocation2 + $0xf8] sm:$0xff]  ;;  %v3363_v43 = vunpack.c.l.bf16 %v3571_v38  ;;  %v3364_v44 = vunpack.c.h.bf16 %v3571_v38  ;;  %v3572_v45 = vld [vmem:[%s4071_s28 + $0x80] sm:$0xff]   ;;  %v688_v47 = vld [vmem:[#allocation2 + $0x108] sm:$0xff]  ;;  %935 = vst [vmem:[#allocation2 + $0xc0] sm:$0xff] %v807_v34  ;;  %v811_v48 = vadd.f32 %v3359_v36, %v683_v32  ;;  %v812_v49 = vadd.f32 %v3360_v37, %v684_v33 }
  0x9e   : > { %v687_v46 = vld [vmem:[#allocation2 + $0x100] sm:$0xff]  ;;  %936 = vst [vmem:[#allocation2 + $0xc8] sm:$0xff] %v808_v35  ;;  %v3367_v50 = vunpack.c.l.bf16 %v3572_v45  ;;  %v3368_v51 = vunpack.c.h.bf16 %v3572_v45  ;;  %v3573_v52 = vld [vmem:[%s4071_s28 + $0x88] sm:$0xff]   ;;  %v689_v53 = vld [vmem:[#allocation2 + $0x110] sm:$0xff] }
  0x9f   : > { %v690_v54 = vld [vmem:[#allocation2 + $0x118] sm:$0xff]  ;;  %937 = vst [vmem:[#allocation2 + $0xd0] sm:$0xff] %v809_v41  ;;  %938 = vst [vmem:[#allocation2 + $0xd8] sm:$0xff] %v810_v42  ;;  %v813_v55 = vadd.f32 %v3363_v43, %v685_v39  ;;  %v814_v56 = vadd.f32 %v3364_v44, %v686_v40  ;;  %v3371_v57 = vunpack.c.l.bf16 %v3573_v52  ;;  %v3372_v58 = vunpack.c.h.bf16 %v3573_v52  ;;  %v3574_v59 = vld [vmem:[%s4071_s28 + $0x90] sm:$0xff]  }
  0xa0   : > { %v691_v60 = vld [vmem:[#allocation2 + $0x120] sm:$0xff]  ;;  %v692_v61 = vld [vmem:[#allocation2 + $0x128] sm:$0xff]  ;;  %939 = vst [vmem:[#allocation2 + $0xe0] sm:$0xff] %v811_v48  ;;  %940 = vst [vmem:[#allocation2 + $0xe8] sm:$0xff] %v812_v49  ;;  %v815_v62 = vadd.f32 %v3367_v50, %v687_v46  ;;  %v816_v63 = vadd.f32 %v3368_v51, %v688_v47  ;;  %v3375_v0 = vunpack.c.l.bf16 %v3574_v59  ;;  %v3376_v1 = vunpack.c.h.bf16 %v3574_v59 }
  0xa1   : > { %v3575_v2 = vld [vmem:[%s4071_s28 + $0x98] sm:$0xff]   ;;  %v693_v3 = vld [vmem:[#allocation2 + $0x130] sm:$0xff]  ;;  %941 = vst [vmem:[#allocation2 + $0xf0] sm:$0xff] %v813_v55  ;;  %942 = vst [vmem:[#allocation2 + $0xf8] sm:$0xff] %v814_v56  ;;  %v817_v5 = vadd.f32 %v3371_v57, %v689_v53  ;;  %v818_v6 = vadd.f32 %v3372_v58, %v690_v54 }
  0xa2   : > { %v694_v4 = vld [vmem:[#allocation2 + $0x138] sm:$0xff]  ;;  %v3379_v7 = vunpack.c.l.bf16 %v3575_v2  ;;  %v3380_v8 = vunpack.c.h.bf16 %v3575_v2  ;;  %v3576_v9 = vld [vmem:[%s4071_s28 + $0xa0] sm:$0xff]   ;;  %v696_v11 = vld [vmem:[#allocation2 + $0x148] sm:$0xff]  ;;  %943 = vst [vmem:[#allocation2 + $0x100] sm:$0xff] %v815_v62  ;;  %v819_v12 = vadd.f32 %v3375_v0, %v691_v60  ;;  %v820_v13 = vadd.f32 %v3376_v1, %v692_v61 }
  0xa3   : > { %v695_v10 = vld [vmem:[#allocation2 + $0x140] sm:$0xff]  ;;  %944 = vst [vmem:[#allocation2 + $0x108] sm:$0xff] %v816_v63  ;;  %v3383_v14 = vunpack.c.l.bf16 %v3576_v9  ;;  %v3384_v15 = vunpack.c.h.bf16 %v3576_v9  ;;  %v3577_v16 = vld [vmem:[%s4071_s28 + $0xa8] sm:$0xff]   ;;  %v697_v17 = vld [vmem:[#allocation2 + $0x150] sm:$0xff] }
  0xa4   : > { %v698_v18 = vld [vmem:[#allocation2 + $0x158] sm:$0xff]  ;;  %945 = vst [vmem:[#allocation2 + $0x110] sm:$0xff] %v817_v5  ;;  %946 = vst [vmem:[#allocation2 + $0x118] sm:$0xff] %v818_v6  ;;  %v821_v19 = vadd.f32 %v3379_v7, %v693_v3  ;;  %v822_v20 = vadd.f32 %v3380_v8, %v694_v4  ;;  %v3387_v21 = vunpack.c.l.bf16 %v3577_v16  ;;  %v3388_v22 = vunpack.c.h.bf16 %v3577_v16  ;;  %v3578_v23 = vld [vmem:[%s4071_s28 + $0xb0] sm:$0xff]  }
  0xa5   : > { %v699_v24 = vld [vmem:[#allocation2 + $0x160] sm:$0xff]  ;;  %v700_v25 = vld [vmem:[#allocation2 + $0x168] sm:$0xff]  ;;  %947 = vst [vmem:[#allocation2 + $0x120] sm:$0xff] %v819_v12  ;;  %948 = vst [vmem:[#allocation2 + $0x128] sm:$0xff] %v820_v13  ;;  %v823_v26 = vadd.f32 %v3383_v14, %v695_v10  ;;  %v824_v27 = vadd.f32 %v3384_v15, %v696_v11  ;;  %v3391_v28 = vunpack.c.l.bf16 %v3578_v23  ;;  %v3392_v29 = vunpack.c.h.bf16 %v3578_v23 }
  0xa6   : > { %v3579_v30 = vld [vmem:[%s4071_s28 + $0xb8] sm:$0xff]   ;;  %v701_v31 = vld [vmem:[#allocation2 + $0x170] sm:$0xff]  ;;  %949 = vst [vmem:[#allocation2 + $0x130] sm:$0xff] %v821_v19  ;;  %950 = vst [vmem:[#allocation2 + $0x138] sm:$0xff] %v822_v20  ;;  %v825_v33 = vadd.f32 %v3387_v21, %v697_v17  ;;  %v826_v34 = vadd.f32 %v3388_v22, %v698_v18 }
  0xa7   : > { %v702_v32 = vld [vmem:[#allocation2 + $0x178] sm:$0xff]  ;;  %v3395_v35 = vunpack.c.l.bf16 %v3579_v30  ;;  %v3396_v36 = vunpack.c.h.bf16 %v3579_v30  ;;  %v3580_v37 = vld [vmem:[%s4071_s28 + $0xc0] sm:$0xff]   ;;  %v704_v39 = vld [vmem:[#allocation2 + $0x188] sm:$0xff]  ;;  %951 = vst [vmem:[#allocation2 + $0x140] sm:$0xff] %v823_v26  ;;  %v827_v40 = vadd.f32 %v3391_v28, %v699_v24  ;;  %v828_v41 = vadd.f32 %v3392_v29, %v700_v25 }
  0xa8   : > { %v703_v38 = vld [vmem:[#allocation2 + $0x180] sm:$0xff]  ;;  %952 = vst [vmem:[#allocation2 + $0x148] sm:$0xff] %v824_v27  ;;  %v3399_v42 = vunpack.c.l.bf16 %v3580_v37  ;;  %v3400_v43 = vunpack.c.h.bf16 %v3580_v37  ;;  %v3581_v44 = vld [vmem:[%s4071_s28 + $0xc8] sm:$0xff]   ;;  %v705_v45 = vld [vmem:[#allocation2 + $0x190] sm:$0xff] }
  0xa9   : > { %v706_v46 = vld [vmem:[#allocation2 + $0x198] sm:$0xff]  ;;  %953 = vst [vmem:[#allocation2 + $0x150] sm:$0xff] %v825_v33  ;;  %954 = vst [vmem:[#allocation2 + $0x158] sm:$0xff] %v826_v34  ;;  %v829_v47 = vadd.f32 %v3395_v35, %v701_v31  ;;  %v830_v48 = vadd.f32 %v3396_v36, %v702_v32  ;;  %v3403_v49 = vunpack.c.l.bf16 %v3581_v44  ;;  %v3404_v50 = vunpack.c.h.bf16 %v3581_v44  ;;  %v3582_v51 = vld [vmem:[%s4071_s28 + $0xd0] sm:$0xff]  }
  0xaa   : > { %v707_v52 = vld [vmem:[#allocation2 + $0x1a0] sm:$0xff]  ;;  %v708_v53 = vld [vmem:[#allocation2 + $0x1a8] sm:$0xff]  ;;  %955 = vst [vmem:[#allocation2 + $0x160] sm:$0xff] %v827_v40  ;;  %956 = vst [vmem:[#allocation2 + $0x168] sm:$0xff] %v828_v41  ;;  %v831_v54 = vadd.f32 %v3399_v42, %v703_v38  ;;  %v832_v55 = vadd.f32 %v3400_v43, %v704_v39  ;;  %v3407_v56 = vunpack.c.l.bf16 %v3582_v51  ;;  %v3408_v57 = vunpack.c.h.bf16 %v3582_v51 }
  0xab   : > { %v3583_v58 = vld [vmem:[%s4071_s28 + $0xd8] sm:$0xff]   ;;  %v709_v59 = vld [vmem:[#allocation2 + $0x1b0] sm:$0xff]  ;;  %957 = vst [vmem:[#allocation2 + $0x170] sm:$0xff] %v829_v47  ;;  %958 = vst [vmem:[#allocation2 + $0x178] sm:$0xff] %v830_v48  ;;  %v833_v61 = vadd.f32 %v3403_v49, %v705_v45  ;;  %v834_v62 = vadd.f32 %v3404_v50, %v706_v46 }
  0xac   : > { %v710_v60 = vld [vmem:[#allocation2 + $0x1b8] sm:$0xff]  ;;  %v3411_v63 = vunpack.c.l.bf16 %v3583_v58  ;;  %v3412_v0 = vunpack.c.h.bf16 %v3583_v58  ;;  %v3584_v1 = vld [vmem:[%s4071_s28 + $0xe0] sm:$0xff]   ;;  %v712_v3 = vld [vmem:[#allocation2 + $0x1c8] sm:$0xff]  ;;  %959 = vst [vmem:[#allocation2 + $0x180] sm:$0xff] %v831_v54  ;;  %v835_v4 = vadd.f32 %v3407_v56, %v707_v52  ;;  %v836_v5 = vadd.f32 %v3408_v57, %v708_v53 }
  0xad   : > { %v711_v2 = vld [vmem:[#allocation2 + $0x1c0] sm:$0xff]  ;;  %960 = vst [vmem:[#allocation2 + $0x188] sm:$0xff] %v832_v55  ;;  %v3415_v6 = vunpack.c.l.bf16 %v3584_v1  ;;  %v3416_v7 = vunpack.c.h.bf16 %v3584_v1  ;;  %v3585_v8 = vld [vmem:[%s4071_s28 + $0xe8] sm:$0xff]   ;;  %v713_v9 = vld [vmem:[#allocation2 + $0x1d0] sm:$0xff] }
  0xae   : > { %v714_v10 = vld [vmem:[#allocation2 + $0x1d8] sm:$0xff]  ;;  %961 = vst [vmem:[#allocation2 + $0x190] sm:$0xff] %v833_v61  ;;  %962 = vst [vmem:[#allocation2 + $0x198] sm:$0xff] %v834_v62  ;;  %v837_v11 = vadd.f32 %v3411_v63, %v709_v59  ;;  %v838_v12 = vadd.f32 %v3412_v0, %v710_v60  ;;  %v3419_v13 = vunpack.c.l.bf16 %v3585_v8  ;;  %v3420_v14 = vunpack.c.h.bf16 %v3585_v8  ;;  %v3586_v15 = vld [vmem:[%s4071_s28 + $0xf0] sm:$0xff]  }
  0xaf   : > { %v715_v16 = vld [vmem:[#allocation2 + $0x1e0] sm:$0xff]  ;;  %v716_v17 = vld [vmem:[#allocation2 + $0x1e8] sm:$0xff]  ;;  %963 = vst [vmem:[#allocation2 + $0x1a0] sm:$0xff] %v835_v4  ;;  %964 = vst [vmem:[#allocation2 + $0x1a8] sm:$0xff] %v836_v5  ;;  %v839_v18 = vadd.f32 %v3415_v6, %v711_v2  ;;  %v840_v19 = vadd.f32 %v3416_v7, %v712_v3  ;;  %v3423_v20 = vunpack.c.l.bf16 %v3586_v15  ;;  %v3424_v21 = vunpack.c.h.bf16 %v3586_v15 }
  0xb0   : > { %v3587_v22 = vld [vmem:[%s4071_s28 + $0xf8] sm:$0xff]   ;;  %v717_v23 = vld [vmem:[#allocation2 + $0x1f0] sm:$0xff]  ;;  %965 = vst [vmem:[#allocation2 + $0x1b0] sm:$0xff] %v837_v11  ;;  %966 = vst [vmem:[#allocation2 + $0x1b8] sm:$0xff] %v838_v12  ;;  %v841_v25 = vadd.f32 %v3419_v13, %v713_v9  ;;  %v842_v26 = vadd.f32 %v3420_v14, %v714_v10 }
  0xb1   : > { %v718_v24 = vld [vmem:[#allocation2 + $0x1f8] sm:$0xff]  ;;  %v3427_v27 = vunpack.c.l.bf16 %v3587_v22  ;;  %v3428_v28 = vunpack.c.h.bf16 %v3587_v22  ;;  %v3588_v29 = vld [vmem:[%s4071_s28 + $0x100] sm:$0xff]   ;;  %v720_v31 = vld [vmem:[#allocation2 + $0x208] sm:$0xff]  ;;  %967 = vst [vmem:[#allocation2 + $0x1c0] sm:$0xff] %v839_v18  ;;  %v843_v32 = vadd.f32 %v3423_v20, %v715_v16  ;;  %v844_v33 = vadd.f32 %v3424_v21, %v716_v17 }
  0xb2   : > { %v719_v30 = vld [vmem:[#allocation2 + $0x200] sm:$0xff]  ;;  %968 = vst [vmem:[#allocation2 + $0x1c8] sm:$0xff] %v840_v19  ;;  %v3431_v34 = vunpack.c.l.bf16 %v3588_v29  ;;  %v3432_v35 = vunpack.c.h.bf16 %v3588_v29  ;;  %v3589_v36 = vld [vmem:[%s4071_s28 + $0x108] sm:$0xff]   ;;  %v721_v37 = vld [vmem:[#allocation2 + $0x210] sm:$0xff] }
  0xb3   : > { %v722_v38 = vld [vmem:[#allocation2 + $0x218] sm:$0xff]  ;;  %969 = vst [vmem:[#allocation2 + $0x1d0] sm:$0xff] %v841_v25  ;;  %970 = vst [vmem:[#allocation2 + $0x1d8] sm:$0xff] %v842_v26  ;;  %v845_v39 = vadd.f32 %v3427_v27, %v717_v23  ;;  %v846_v40 = vadd.f32 %v3428_v28, %v718_v24  ;;  %v3435_v41 = vunpack.c.l.bf16 %v3589_v36  ;;  %v3436_v42 = vunpack.c.h.bf16 %v3589_v36  ;;  %v3590_v43 = vld [vmem:[%s4071_s28 + $0x110] sm:$0xff]  }
  0xb4   : > { %v723_v44 = vld [vmem:[#allocation2 + $0x220] sm:$0xff]  ;;  %v724_v45 = vld [vmem:[#allocation2 + $0x228] sm:$0xff]  ;;  %971 = vst [vmem:[#allocation2 + $0x1e0] sm:$0xff] %v843_v32  ;;  %972 = vst [vmem:[#allocation2 + $0x1e8] sm:$0xff] %v844_v33  ;;  %v847_v46 = vadd.f32 %v3431_v34, %v719_v30  ;;  %v848_v47 = vadd.f32 %v3432_v35, %v720_v31  ;;  %v3439_v48 = vunpack.c.l.bf16 %v3590_v43  ;;  %v3440_v49 = vunpack.c.h.bf16 %v3590_v43 }
  0xb5   : > { %v3591_v50 = vld [vmem:[%s4071_s28 + $0x118] sm:$0xff]   ;;  %v725_v51 = vld [vmem:[#allocation2 + $0x230] sm:$0xff]  ;;  %973 = vst [vmem:[#allocation2 + $0x1f0] sm:$0xff] %v845_v39  ;;  %974 = vst [vmem:[#allocation2 + $0x1f8] sm:$0xff] %v846_v40  ;;  %v849_v53 = vadd.f32 %v3435_v41, %v721_v37  ;;  %v850_v54 = vadd.f32 %v3436_v42, %v722_v38 }
  0xb6   : > { %v726_v52 = vld [vmem:[#allocation2 + $0x238] sm:$0xff]  ;;  %v3443_v55 = vunpack.c.l.bf16 %v3591_v50  ;;  %v3444_v56 = vunpack.c.h.bf16 %v3591_v50  ;;  %v3592_v57 = vld [vmem:[%s4071_s28 + $0x120] sm:$0xff]   ;;  %v728_v59 = vld [vmem:[#allocation2 + $0x248] sm:$0xff]  ;;  %975 = vst [vmem:[#allocation2 + $0x200] sm:$0xff] %v847_v46  ;;  %v851_v60 = vadd.f32 %v3439_v48, %v723_v44  ;;  %v852_v61 = vadd.f32 %v3440_v49, %v724_v45 }
  0xb7   : > { %v727_v58 = vld [vmem:[#allocation2 + $0x240] sm:$0xff]  ;;  %976 = vst [vmem:[#allocation2 + $0x208] sm:$0xff] %v848_v47  ;;  %v3447_v62 = vunpack.c.l.bf16 %v3592_v57  ;;  %v3448_v63 = vunpack.c.h.bf16 %v3592_v57  ;;  %v3593_v0 = vld [vmem:[%s4071_s28 + $0x128] sm:$0xff]   ;;  %v729_v1 = vld [vmem:[#allocation2 + $0x250] sm:$0xff] }
  0xb8   : > { %v730_v2 = vld [vmem:[#allocation2 + $0x258] sm:$0xff]  ;;  %977 = vst [vmem:[#allocation2 + $0x210] sm:$0xff] %v849_v53  ;;  %978 = vst [vmem:[#allocation2 + $0x218] sm:$0xff] %v850_v54  ;;  %v853_v3 = vadd.f32 %v3443_v55, %v725_v51  ;;  %v854_v4 = vadd.f32 %v3444_v56, %v726_v52  ;;  %v3451_v5 = vunpack.c.l.bf16 %v3593_v0  ;;  %v3452_v6 = vunpack.c.h.bf16 %v3593_v0  ;;  %v3594_v7 = vld [vmem:[%s4071_s28 + $0x130] sm:$0xff]  }
  0xb9   : > { %v731_v8 = vld [vmem:[#allocation2 + $0x260] sm:$0xff]  ;;  %v732_v9 = vld [vmem:[#allocation2 + $0x268] sm:$0xff]  ;;  %979 = vst [vmem:[#allocation2 + $0x220] sm:$0xff] %v851_v60  ;;  %980 = vst [vmem:[#allocation2 + $0x228] sm:$0xff] %v852_v61  ;;  %v855_v10 = vadd.f32 %v3447_v62, %v727_v58  ;;  %v856_v11 = vadd.f32 %v3448_v63, %v728_v59  ;;  %v3455_v12 = vunpack.c.l.bf16 %v3594_v7  ;;  %v3456_v13 = vunpack.c.h.bf16 %v3594_v7 }
  0xba   : > { %v3595_v14 = vld [vmem:[%s4071_s28 + $0x138] sm:$0xff]   ;;  %v733_v15 = vld [vmem:[#allocation2 + $0x270] sm:$0xff]  ;;  %981 = vst [vmem:[#allocation2 + $0x230] sm:$0xff] %v853_v3  ;;  %982 = vst [vmem:[#allocation2 + $0x238] sm:$0xff] %v854_v4  ;;  %v857_v17 = vadd.f32 %v3451_v5, %v729_v1  ;;  %v858_v18 = vadd.f32 %v3452_v6, %v730_v2 }
  0xbb   : > { %v734_v16 = vld [vmem:[#allocation2 + $0x278] sm:$0xff]  ;;  %v3459_v19 = vunpack.c.l.bf16 %v3595_v14  ;;  %v3460_v20 = vunpack.c.h.bf16 %v3595_v14  ;;  %v3596_v21 = vld [vmem:[%s4071_s28 + $0x140] sm:$0xff]   ;;  %v736_v23 = vld [vmem:[#allocation2 + $0x288] sm:$0xff]  ;;  %983 = vst [vmem:[#allocation2 + $0x240] sm:$0xff] %v855_v10  ;;  %v859_v24 = vadd.f32 %v3455_v12, %v731_v8  ;;  %v860_v25 = vadd.f32 %v3456_v13, %v732_v9 }
  0xbc   : > { %v735_v22 = vld [vmem:[#allocation2 + $0x280] sm:$0xff]  ;;  %984 = vst [vmem:[#allocation2 + $0x248] sm:$0xff] %v856_v11  ;;  %v3463_v26 = vunpack.c.l.bf16 %v3596_v21  ;;  %v3464_v27 = vunpack.c.h.bf16 %v3596_v21  ;;  %v3597_v28 = vld [vmem:[%s4071_s28 + $0x148] sm:$0xff]   ;;  %v737_v29 = vld [vmem:[#allocation2 + $0x290] sm:$0xff] }
  0xbd   : > { %v738_v30 = vld [vmem:[#allocation2 + $0x298] sm:$0xff]  ;;  %985 = vst [vmem:[#allocation2 + $0x250] sm:$0xff] %v857_v17  ;;  %986 = vst [vmem:[#allocation2 + $0x258] sm:$0xff] %v858_v18  ;;  %v861_v31 = vadd.f32 %v3459_v19, %v733_v15  ;;  %v862_v32 = vadd.f32 %v3460_v20, %v734_v16  ;;  %v3467_v33 = vunpack.c.l.bf16 %v3597_v28  ;;  %v3468_v34 = vunpack.c.h.bf16 %v3597_v28  ;;  %v3598_v35 = vld [vmem:[%s4071_s28 + $0x150] sm:$0xff]  }
  0xbe   : > { %v739_v36 = vld [vmem:[#allocation2 + $0x2a0] sm:$0xff]  ;;  %v740_v37 = vld [vmem:[#allocation2 + $0x2a8] sm:$0xff]  ;;  %987 = vst [vmem:[#allocation2 + $0x260] sm:$0xff] %v859_v24  ;;  %988 = vst [vmem:[#allocation2 + $0x268] sm:$0xff] %v860_v25  ;;  %v863_v38 = vadd.f32 %v3463_v26, %v735_v22  ;;  %v864_v39 = vadd.f32 %v3464_v27, %v736_v23  ;;  %v3471_v40 = vunpack.c.l.bf16 %v3598_v35  ;;  %v3472_v41 = vunpack.c.h.bf16 %v3598_v35 }
  0xbf   : > { %v3599_v42 = vld [vmem:[%s4071_s28 + $0x158] sm:$0xff]   ;;  %v741_v43 = vld [vmem:[#allocation2 + $0x2b0] sm:$0xff]  ;;  %989 = vst [vmem:[#allocation2 + $0x270] sm:$0xff] %v861_v31  ;;  %990 = vst [vmem:[#allocation2 + $0x278] sm:$0xff] %v862_v32  ;;  %v865_v45 = vadd.f32 %v3467_v33, %v737_v29  ;;  %v866_v46 = vadd.f32 %v3468_v34, %v738_v30 }
  0xc0   : > { %v742_v44 = vld [vmem:[#allocation2 + $0x2b8] sm:$0xff]  ;;  %v3475_v47 = vunpack.c.l.bf16 %v3599_v42  ;;  %v3476_v48 = vunpack.c.h.bf16 %v3599_v42  ;;  %v3600_v49 = vld [vmem:[%s4071_s28 + $0x160] sm:$0xff]   ;;  %v744_v51 = vld [vmem:[#allocation2 + $0x2c8] sm:$0xff]  ;;  %991 = vst [vmem:[#allocation2 + $0x280] sm:$0xff] %v863_v38  ;;  %v867_v52 = vadd.f32 %v3471_v40, %v739_v36  ;;  %v868_v53 = vadd.f32 %v3472_v41, %v740_v37 }
  0xc1   : > { %v743_v50 = vld [vmem:[#allocation2 + $0x2c0] sm:$0xff]  ;;  %992 = vst [vmem:[#allocation2 + $0x288] sm:$0xff] %v864_v39  ;;  %v3479_v54 = vunpack.c.l.bf16 %v3600_v49  ;;  %v3480_v55 = vunpack.c.h.bf16 %v3600_v49  ;;  %v3601_v56 = vld [vmem:[%s4071_s28 + $0x168] sm:$0xff]   ;;  %v745_v57 = vld [vmem:[#allocation2 + $0x2d0] sm:$0xff] }
  0xc2   : > { %v746_v58 = vld [vmem:[#allocation2 + $0x2d8] sm:$0xff]  ;;  %993 = vst [vmem:[#allocation2 + $0x290] sm:$0xff] %v865_v45  ;;  %994 = vst [vmem:[#allocation2 + $0x298] sm:$0xff] %v866_v46  ;;  %v869_v59 = vadd.f32 %v3475_v47, %v741_v43  ;;  %v870_v60 = vadd.f32 %v3476_v48, %v742_v44  ;;  %v3483_v61 = vunpack.c.l.bf16 %v3601_v56  ;;  %v3484_v62 = vunpack.c.h.bf16 %v3601_v56  ;;  %v3602_v63 = vld [vmem:[%s4071_s28 + $0x170] sm:$0xff]  }
  0xc3   : > { %v747_v0 = vld [vmem:[#allocation2 + $0x2e0] sm:$0xff]  ;;  %v748_v1 = vld [vmem:[#allocation2 + $0x2e8] sm:$0xff]  ;;  %995 = vst [vmem:[#allocation2 + $0x2a0] sm:$0xff] %v867_v52  ;;  %996 = vst [vmem:[#allocation2 + $0x2a8] sm:$0xff] %v868_v53  ;;  %v871_v2 = vadd.f32 %v3479_v54, %v743_v50  ;;  %v872_v3 = vadd.f32 %v3480_v55, %v744_v51  ;;  %v3487_v4 = vunpack.c.l.bf16 %v3602_v63  ;;  %v3488_v5 = vunpack.c.h.bf16 %v3602_v63 }
  0xc4   : > { %v3603_v6 = vld [vmem:[%s4071_s28 + $0x178] sm:$0xff]   ;;  %v749_v7 = vld [vmem:[#allocation2 + $0x2f0] sm:$0xff]  ;;  %997 = vst [vmem:[#allocation2 + $0x2b0] sm:$0xff] %v869_v59  ;;  %998 = vst [vmem:[#allocation2 + $0x2b8] sm:$0xff] %v870_v60  ;;  %v873_v9 = vadd.f32 %v3483_v61, %v745_v57  ;;  %v874_v10 = vadd.f32 %v3484_v62, %v746_v58 }
  0xc5   : > { %v750_v8 = vld [vmem:[#allocation2 + $0x2f8] sm:$0xff]  ;;  %v3491_v11 = vunpack.c.l.bf16 %v3603_v6  ;;  %v3492_v12 = vunpack.c.h.bf16 %v3603_v6  ;;  %v3604_v13 = vld [vmem:[%s4071_s28 + $0x180] sm:$0xff]   ;;  %v752_v15 = vld [vmem:[#allocation2 + $0x308] sm:$0xff]  ;;  %999 = vst [vmem:[#allocation2 + $0x2c0] sm:$0xff] %v871_v2  ;;  %v875_v16 = vadd.f32 %v3487_v4, %v747_v0  ;;  %v876_v17 = vadd.f32 %v3488_v5, %v748_v1 }
  0xc6   : > { %v751_v14 = vld [vmem:[#allocation2 + $0x300] sm:$0xff]  ;;  %1000 = vst [vmem:[#allocation2 + $0x2c8] sm:$0xff] %v872_v3  ;;  %v3495_v18 = vunpack.c.l.bf16 %v3604_v13  ;;  %v3496_v19 = vunpack.c.h.bf16 %v3604_v13  ;;  %v3605_v20 = vld [vmem:[%s4071_s28 + $0x188] sm:$0xff]   ;;  %v753_v21 = vld [vmem:[#allocation2 + $0x310] sm:$0xff] }
  0xc7   : > { %v754_v22 = vld [vmem:[#allocation2 + $0x318] sm:$0xff]  ;;  %1001 = vst [vmem:[#allocation2 + $0x2d0] sm:$0xff] %v873_v9  ;;  %1002 = vst [vmem:[#allocation2 + $0x2d8] sm:$0xff] %v874_v10  ;;  %v877_v23 = vadd.f32 %v3491_v11, %v749_v7  ;;  %v878_v24 = vadd.f32 %v3492_v12, %v750_v8  ;;  %v3499_v25 = vunpack.c.l.bf16 %v3605_v20  ;;  %v3500_v26 = vunpack.c.h.bf16 %v3605_v20  ;;  %v3606_v27 = vld [vmem:[%s4071_s28 + $0x190] sm:$0xff]  }
  0xc8   : > { %v755_v28 = vld [vmem:[#allocation2 + $0x320] sm:$0xff]  ;;  %v756_v29 = vld [vmem:[#allocation2 + $0x328] sm:$0xff]  ;;  %1003 = vst [vmem:[#allocation2 + $0x2e0] sm:$0xff] %v875_v16  ;;  %1004 = vst [vmem:[#allocation2 + $0x2e8] sm:$0xff] %v876_v17  ;;  %v879_v30 = vadd.f32 %v3495_v18, %v751_v14  ;;  %v880_v31 = vadd.f32 %v3496_v19, %v752_v15  ;;  %v3503_v32 = vunpack.c.l.bf16 %v3606_v27  ;;  %v3504_v33 = vunpack.c.h.bf16 %v3606_v27 }
  0xc9   : > { %v3607_v34 = vld [vmem:[%s4071_s28 + $0x198] sm:$0xff]   ;;  %v757_v35 = vld [vmem:[#allocation2 + $0x330] sm:$0xff]  ;;  %1005 = vst [vmem:[#allocation2 + $0x2f0] sm:$0xff] %v877_v23  ;;  %1006 = vst [vmem:[#allocation2 + $0x2f8] sm:$0xff] %v878_v24  ;;  %v881_v37 = vadd.f32 %v3499_v25, %v753_v21  ;;  %v882_v38 = vadd.f32 %v3500_v26, %v754_v22 }
  0xca   : > { %v758_v36 = vld [vmem:[#allocation2 + $0x338] sm:$0xff]  ;;  %v3507_v39 = vunpack.c.l.bf16 %v3607_v34  ;;  %v3508_v40 = vunpack.c.h.bf16 %v3607_v34  ;;  %v3608_v41 = vld [vmem:[%s4071_s28 + $0x1a0] sm:$0xff]   ;;  %v760_v43 = vld [vmem:[#allocation2 + $0x348] sm:$0xff]  ;;  %1007 = vst [vmem:[#allocation2 + $0x300] sm:$0xff] %v879_v30  ;;  %v883_v44 = vadd.f32 %v3503_v32, %v755_v28  ;;  %v884_v45 = vadd.f32 %v3504_v33, %v756_v29 }
  0xcb   : > { %v759_v42 = vld [vmem:[#allocation2 + $0x340] sm:$0xff]  ;;  %1008 = vst [vmem:[#allocation2 + $0x308] sm:$0xff] %v880_v31  ;;  %v3511_v46 = vunpack.c.l.bf16 %v3608_v41  ;;  %v3512_v47 = vunpack.c.h.bf16 %v3608_v41  ;;  %v3609_v48 = vld [vmem:[%s4071_s28 + $0x1a8] sm:$0xff]   ;;  %v761_v49 = vld [vmem:[#allocation2 + $0x350] sm:$0xff] }
  0xcc   : > { %v762_v50 = vld [vmem:[#allocation2 + $0x358] sm:$0xff]  ;;  %1009 = vst [vmem:[#allocation2 + $0x310] sm:$0xff] %v881_v37  ;;  %1010 = vst [vmem:[#allocation2 + $0x318] sm:$0xff] %v882_v38  ;;  %v885_v51 = vadd.f32 %v3507_v39, %v757_v35  ;;  %v886_v52 = vadd.f32 %v3508_v40, %v758_v36  ;;  %v3515_v53 = vunpack.c.l.bf16 %v3609_v48  ;;  %v3516_v54 = vunpack.c.h.bf16 %v3609_v48  ;;  %v3610_v55 = vld [vmem:[%s4071_s28 + $0x1b0] sm:$0xff]  }
  0xcd   : > { %v763_v56 = vld [vmem:[#allocation2 + $0x360] sm:$0xff]  ;;  %v764_v57 = vld [vmem:[#allocation2 + $0x368] sm:$0xff]  ;;  %1011 = vst [vmem:[#allocation2 + $0x320] sm:$0xff] %v883_v44  ;;  %1012 = vst [vmem:[#allocation2 + $0x328] sm:$0xff] %v884_v45  ;;  %v887_v58 = vadd.f32 %v3511_v46, %v759_v42  ;;  %v888_v59 = vadd.f32 %v3512_v47, %v760_v43  ;;  %v3519_v60 = vunpack.c.l.bf16 %v3610_v55  ;;  %v3520_v61 = vunpack.c.h.bf16 %v3610_v55 }
  0xce   : > { %v3611_v62 = vld [vmem:[%s4071_s28 + $0x1b8] sm:$0xff]   ;;  %v765_v63 = vld [vmem:[#allocation2 + $0x370] sm:$0xff]  ;;  %1013 = vst [vmem:[#allocation2 + $0x330] sm:$0xff] %v885_v51  ;;  %1014 = vst [vmem:[#allocation2 + $0x338] sm:$0xff] %v886_v52  ;;  %v889_v1 = vadd.f32 %v3515_v53, %v761_v49  ;;  %v890_v2 = vadd.f32 %v3516_v54, %v762_v50 }
  0xcf   : > { %v766_v0 = vld [vmem:[#allocation2 + $0x378] sm:$0xff]  ;;  %v3523_v3 = vunpack.c.l.bf16 %v3611_v62  ;;  %v3524_v4 = vunpack.c.h.bf16 %v3611_v62  ;;  %v3612_v5 = vld [vmem:[%s4071_s28 + $0x1c0] sm:$0xff]   ;;  %v768_v7 = vld [vmem:[#allocation2 + $0x388] sm:$0xff]  ;;  %1015 = vst [vmem:[#allocation2 + $0x340] sm:$0xff] %v887_v58  ;;  %v891_v8 = vadd.f32 %v3519_v60, %v763_v56  ;;  %v892_v9 = vadd.f32 %v3520_v61, %v764_v57 }
  0xd0   : > { %v767_v6 = vld [vmem:[#allocation2 + $0x380] sm:$0xff]  ;;  %1016 = vst [vmem:[#allocation2 + $0x348] sm:$0xff] %v888_v59  ;;  %v3527_v10 = vunpack.c.l.bf16 %v3612_v5  ;;  %v3528_v11 = vunpack.c.h.bf16 %v3612_v5  ;;  %v3613_v12 = vld [vmem:[%s4071_s28 + $0x1c8] sm:$0xff]   ;;  %v769_v13 = vld [vmem:[#allocation2 + $0x390] sm:$0xff] }
  0xd1   : > { %v770_v14 = vld [vmem:[#allocation2 + $0x398] sm:$0xff]  ;;  %1017 = vst [vmem:[#allocation2 + $0x350] sm:$0xff] %v889_v1  ;;  %1018 = vst [vmem:[#allocation2 + $0x358] sm:$0xff] %v890_v2  ;;  %v893_v15 = vadd.f32 %v3523_v3, %v765_v63  ;;  %v894_v16 = vadd.f32 %v3524_v4, %v766_v0  ;;  %v3531_v17 = vunpack.c.l.bf16 %v3613_v12  ;;  %v3532_v18 = vunpack.c.h.bf16 %v3613_v12  ;;  %v3614_v19 = vld [vmem:[%s4071_s28 + $0x1d0] sm:$0xff]  }
  0xd2   : > { %v771_v20 = vld [vmem:[#allocation2 + $0x3a0] sm:$0xff]  ;;  %v772_v21 = vld [vmem:[#allocation2 + $0x3a8] sm:$0xff]  ;;  %1019 = vst [vmem:[#allocation2 + $0x360] sm:$0xff] %v891_v8  ;;  %1020 = vst [vmem:[#allocation2 + $0x368] sm:$0xff] %v892_v9  ;;  %v895_v22 = vadd.f32 %v3527_v10, %v767_v6  ;;  %v896_v23 = vadd.f32 %v3528_v11, %v768_v7  ;;  %v3535_v24 = vunpack.c.l.bf16 %v3614_v19  ;;  %v3536_v25 = vunpack.c.h.bf16 %v3614_v19 }
  0xd3   : > { %v3615_v26 = vld [vmem:[%s4071_s28 + $0x1d8] sm:$0xff]   ;;  %v773_v27 = vld [vmem:[#allocation2 + $0x3b0] sm:$0xff]  ;;  %1021 = vst [vmem:[#allocation2 + $0x370] sm:$0xff] %v893_v15  ;;  %1022 = vst [vmem:[#allocation2 + $0x378] sm:$0xff] %v894_v16  ;;  %v897_v29 = vadd.f32 %v3531_v17, %v769_v13  ;;  %v898_v30 = vadd.f32 %v3532_v18, %v770_v14 }
  0xd4   : > { %v774_v28 = vld [vmem:[#allocation2 + $0x3b8] sm:$0xff]  ;;  %v3539_v31 = vunpack.c.l.bf16 %v3615_v26  ;;  %v3540_v32 = vunpack.c.h.bf16 %v3615_v26  ;;  %v3616_v33 = vld [vmem:[%s4071_s28 + $0x1e0] sm:$0xff]   ;;  %v776_v35 = vld [vmem:[#allocation2 + $0x3c8] sm:$0xff]  ;;  %1023 = vst [vmem:[#allocation2 + $0x380] sm:$0xff] %v895_v22  ;;  %v899_v36 = vadd.f32 %v3535_v24, %v771_v20  ;;  %v900_v37 = vadd.f32 %v3536_v25, %v772_v21 }
  0xd5   : > { %v775_v34 = vld [vmem:[#allocation2 + $0x3c0] sm:$0xff]  ;;  %1024 = vst [vmem:[#allocation2 + $0x388] sm:$0xff] %v896_v23  ;;  %v3543_v38 = vunpack.c.l.bf16 %v3616_v33  ;;  %v3544_v39 = vunpack.c.h.bf16 %v3616_v33  ;;  %v3617_v40 = vld [vmem:[%s4071_s28 + $0x1e8] sm:$0xff]   ;;  %v777_v41 = vld [vmem:[#allocation2 + $0x3d0] sm:$0xff] }
  0xd6   : > { %v778_v42 = vld [vmem:[#allocation2 + $0x3d8] sm:$0xff]  ;;  %1025 = vst [vmem:[#allocation2 + $0x390] sm:$0xff] %v897_v29  ;;  %1026 = vst [vmem:[#allocation2 + $0x398] sm:$0xff] %v898_v30  ;;  %v901_v43 = vadd.f32 %v3539_v31, %v773_v27  ;;  %v902_v44 = vadd.f32 %v3540_v32, %v774_v28  ;;  %v3547_v45 = vunpack.c.l.bf16 %v3617_v40  ;;  %v3548_v46 = vunpack.c.h.bf16 %v3617_v40  ;;  %v3618_v47 = vld [vmem:[%s4071_s28 + $0x1f0] sm:$0xff]  }
  0xd7   : > { %v779_v48 = vld [vmem:[#allocation2 + $0x3e0] sm:$0xff]  ;;  %v780_v49 = vld [vmem:[#allocation2 + $0x3e8] sm:$0xff]  ;;  %1027 = vst [vmem:[#allocation2 + $0x3a0] sm:$0xff] %v899_v36  ;;  %1028 = vst [vmem:[#allocation2 + $0x3a8] sm:$0xff] %v900_v37  ;;  %v903_v50 = vadd.f32 %v3543_v38, %v775_v34  ;;  %v904_v51 = vadd.f32 %v3544_v39, %v776_v35  ;;  %v3551_v52 = vunpack.c.l.bf16 %v3618_v47  ;;  %v3552_v53 = vunpack.c.h.bf16 %v3618_v47  ;;  %1042 = sbr.rel (%p3293_p2) target bundleno = 1396 (0x574), region = 48 }
  0xd8   : > { %v3619_v54 = vld [vmem:[%s4071_s28 + $0x1f8] sm:$0xff]   ;;  %v781_v55 = vld [vmem:[#allocation2 + $0x3f0] sm:$0xff]  ;;  %1029 = vst [vmem:[#allocation2 + $0x3b0] sm:$0xff] %v901_v43  ;;  %1030 = vst [vmem:[#allocation2 + $0x3b8] sm:$0xff] %v902_v44  ;;  %v905_v57 = vadd.f32 %v3547_v45, %v777_v41  ;;  %v906_v58 = vadd.f32 %v3548_v46, %v778_v42 }
  0xd9   : > { %v782_v56 = vld [vmem:[#allocation2 + $0x3f8] sm:$0xff]  ;;  %v3555_v59 = vunpack.c.l.bf16 %v3619_v54  ;;  %v3556_v60 = vunpack.c.h.bf16 %v3619_v54  ;;  %1031 = vst [vmem:[#allocation2 + $0x3c0] sm:$0xff] %v903_v50  ;;  %1032 = vst [vmem:[#allocation2 + $0x3c8] sm:$0xff] %v904_v51  ;;  %v907_v61 = vadd.f32 %v3551_v52, %v779_v48  ;;  %v908_v62 = vadd.f32 %v3552_v53, %v780_v49 }
  0xda   : > { %1033 = vst [vmem:[#allocation2 + $0x3d0] sm:$0xff] %v905_v57  ;;  %1034 = vst [vmem:[#allocation2 + $0x3d8] sm:$0xff] %v906_v58 }
  0xdb   : > { %v909_v63 = vadd.f32 %v3555_v59, %v781_v55  ;;  %v910_v0 = vadd.f32 %v3556_v60, %v782_v56  ;;  %1035 = vst [vmem:[#allocation2 + $0x3e0] sm:$0xff] %v907_v61  ;;  %1036 = vst [vmem:[#allocation2 + $0x3e8] sm:$0xff] %v908_v62 }
  0xdd   : > { %1037 = vst [vmem:[#allocation2 + $0x3f0] sm:$0xff] %v909_v63  ;;  %1038 = vst [vmem:[#allocation2 + $0x3f8] sm:$0xff] %v910_v0 }
  0xde   : > { %v1045_v1 = vld [vmem:[#allocation2 + $0x10] sm:$0xff]  ;;  %v1043_v2 = vld [vmem:[#allocation2] sm:$0xff]  ;;  %v1046_v3 = vld [vmem:[#allocation2 + $0x18] sm:$0xff]  ;;  %vm2419_vm0 = vcmask 130112   ;;  %vm2426_vm1 = vcmask 195712   ;;  %vm2433_vm2 = vcmask 261312  }
  0xdf   : > { %1175 = vadd.xlane.f32.xlu1 %v1045_v1  ;;  %1171 = vadd.xlane.f32.xlu0 %v1043_v2  ;;  %v1044_v4 = vld [vmem:[#allocation2 + $0x8] sm:$0xff]  ;;  %v1047_v6 = vld [vmem:[#allocation2 + $0x20] sm:$0xff]  ;;  %v1050_v7 = vld [vmem:[#allocation2 + $0x38] sm:$0xff]  ;;  %vm2440_vm3 = vcmask 326912   ;;  %vm2447_vm4 = vcmask 392512   ;;  %vm2454_vm5 = vcmask 458112  }
  0xe0   : > { %v1048_v5 = vld [vmem:[#allocation2 + $0x28] sm:$0xff]  ;;  %v1049_v8 = vld [vmem:[#allocation2 + $0x30] sm:$0xff]  ;;  %v1051_v10 = vld [vmem:[#allocation2 + $0x40] sm:$0xff]  ;;  %vm2461_vm6 = vcmask 523712   ;;  %vm2468_vm7 = vcmask 589312   ;;  %vm2475_vm8 = vcmask 654912  }
  0xe1   : > { %v1052_v9 = vld [vmem:[#allocation2 + $0x48] sm:$0xff]  ;;  %v1054_v11 = vld [vmem:[#allocation2 + $0x58] sm:$0xff]  ;;  %v1053_v12 = vld [vmem:[#allocation2 + $0x50] sm:$0xff]  ;;  %vm2482_vm9 = vcmask 720512   ;;  %vm2489_vm10 = vcmask 786112   ;;  %vm2496_vm11 = vcmask 851712  }
  0xe2   : > { %v1056_v13 = vld [vmem:[#allocation2 + $0x68] sm:$0xff]  ;;  %v1055_v14 = vld [vmem:[#allocation2 + $0x60] sm:$0xff]  ;;  %v1058_v15 = vld [vmem:[#allocation2 + $0x78] sm:$0xff]  ;;  %vm2503_vm12 = vcmask 917312   ;;  %vm2510_vm13 = vcmask 982912   ;;  %vm2517_vm14 = vcmask 1048512  }
  0xe3   : > { %1177 = vadd.xlane.f32.xlu1 %v1046_v3  ;;  %1173 = vadd.xlane.f32.xlu0 %v1044_v4  ;;  %v1057_v16 = vld [vmem:[#allocation2 + $0x70] sm:$0xff]  ;;  %v1060_v17 = vld [vmem:[#allocation2 + $0x88] sm:$0xff]  ;;  %v1059_v18 = vld [vmem:[#allocation2 + $0x80] sm:$0xff]  ;;  %vm3072_vm15 = vcmask 1041409  }
  0xe4   : > { %v1062_v19 = vld [vmem:[#allocation2 + $0x98] sm:$0xff]  ;;  %v1061_v20 = vld [vmem:[#allocation2 + $0x90] sm:$0xff]  ;;  %v1064_v21 = vld [vmem:[#allocation2 + $0xa8] sm:$0xff] }
  0xe5   : > { %v1063_v22 = vld [vmem:[#allocation2 + $0xa0] sm:$0xff]  ;;  %v1066_v23 = vld [vmem:[#allocation2 + $0xb8] sm:$0xff]  ;;  %v1065_v24 = vld [vmem:[#allocation2 + $0xb0] sm:$0xff] }
  0xe6   : > { %v1068_v25 = vld [vmem:[#allocation2 + $0xc8] sm:$0xff]  ;;  %v1067_v26 = vld [vmem:[#allocation2 + $0xc0] sm:$0xff]  ;;  %v1070_v27 = vld [vmem:[#allocation2 + $0xd8] sm:$0xff] }
  0xe7   : > { %1181 = vadd.xlane.f32.xlu1 %v1048_v5  ;;  %1179 = vadd.xlane.f32.xlu0 %v1047_v6  ;;  %v1069_v28 = vld [vmem:[#allocation2 + $0xd0] sm:$0xff]  ;;  %v1072_v29 = vld [vmem:[#allocation2 + $0xe8] sm:$0xff]  ;;  %v1071_v30 = vld [vmem:[#allocation2 + $0xe0] sm:$0xff] }
  0xe8   : > { %v1074_v31 = vld [vmem:[#allocation2 + $0xf8] sm:$0xff]  ;;  %v1073_v32 = vld [vmem:[#allocation2 + $0xf0] sm:$0xff]  ;;  %v1076_v33 = vld [vmem:[#allocation2 + $0x108] sm:$0xff] }
  0xe9   : > { %v1075_v34 = vld [vmem:[#allocation2 + $0x100] sm:$0xff]  ;;  %v1078_v35 = vld [vmem:[#allocation2 + $0x118] sm:$0xff]  ;;  %v1077_v36 = vld [vmem:[#allocation2 + $0x110] sm:$0xff] }
  0xea   : > { %v1080_v37 = vld [vmem:[#allocation2 + $0x128] sm:$0xff]  ;;  %v1079_v38 = vld [vmem:[#allocation2 + $0x120] sm:$0xff]  ;;  %v1082_v39 = vld [vmem:[#allocation2 + $0x138] sm:$0xff] }
  0xeb   : > { %1185 = vadd.xlane.f32.xlu1 %v1050_v7  ;;  %1183 = vadd.xlane.f32.xlu0 %v1049_v8  ;;  %v1081_v40 = vld [vmem:[#allocation2 + $0x130] sm:$0xff]  ;;  %v1084_v41 = vld [vmem:[#allocation2 + $0x148] sm:$0xff]  ;;  %v1083_v42 = vld [vmem:[#allocation2 + $0x140] sm:$0xff] }
  0xec   : > { %v1086_v43 = vld [vmem:[#allocation2 + $0x158] sm:$0xff]  ;;  %v1085_v44 = vld [vmem:[#allocation2 + $0x150] sm:$0xff]  ;;  %v1088_v45 = vld [vmem:[#allocation2 + $0x168] sm:$0xff] }
  0xed   : > { %v1087_v46 = vld [vmem:[#allocation2 + $0x160] sm:$0xff]  ;;  %v1090_v47 = vld [vmem:[#allocation2 + $0x178] sm:$0xff]  ;;  %v1089_v48 = vld [vmem:[#allocation2 + $0x170] sm:$0xff] }
  0xee   : > { %v1092_v49 = vld [vmem:[#allocation2 + $0x188] sm:$0xff]  ;;  %v1091_v50 = vld [vmem:[#allocation2 + $0x180] sm:$0xff]  ;;  %v1094_v51 = vld [vmem:[#allocation2 + $0x198] sm:$0xff] }
  0xef   : > { %1189 = vadd.xlane.f32.xlu1 %v1052_v9  ;;  %1187 = vadd.xlane.f32.xlu0 %v1051_v10  ;;  %v1093_v52 = vld [vmem:[#allocation2 + $0x190] sm:$0xff]  ;;  %v1096_v53 = vld [vmem:[#allocation2 + $0x1a8] sm:$0xff]  ;;  %v1095_v54 = vld [vmem:[#allocation2 + $0x1a0] sm:$0xff] }
  0xf0   : > { %v1098_v55 = vld [vmem:[#allocation2 + $0x1b8] sm:$0xff]  ;;  %v1097_v56 = vld [vmem:[#allocation2 + $0x1b0] sm:$0xff]  ;;  %v1100_v57 = vld [vmem:[#allocation2 + $0x1c8] sm:$0xff] }
  0xf1   : > { %v1099_v58 = vld [vmem:[#allocation2 + $0x1c0] sm:$0xff]  ;;  %v1102_v59 = vld [vmem:[#allocation2 + $0x1d8] sm:$0xff]  ;;  %v1101_v60 = vld [vmem:[#allocation2 + $0x1d0] sm:$0xff] }
  0xf2   : > { %v1104_v61 = vld [vmem:[#allocation2 + $0x1e8] sm:$0xff]  ;;  %v1103_v62 = vld [vmem:[#allocation2 + $0x1e0] sm:$0xff]  ;;  %v1106_v63 = vld [vmem:[#allocation2 + $0x1f8] sm:$0xff] }
  0xf3   : > { %1193 = vadd.xlane.f32.xlu1 %v1054_v11  ;;  %1191 = vadd.xlane.f32.xlu0 %v1053_v12  ;;  %v1105_v0 = vld [vmem:[#allocation2 + $0x1f0] sm:$0xff]  ;;  %v1108_v1 = vld [vmem:[#allocation2 + $0x208] sm:$0xff]  ;;  %v1107_v2 = vld [vmem:[#allocation2 + $0x200] sm:$0xff] }
  0xf4   : > { %v1110_v3 = vld [vmem:[#allocation2 + $0x218] sm:$0xff]  ;;  %v1109_v4 = vld [vmem:[#allocation2 + $0x210] sm:$0xff]  ;;  %v1112_v5 = vld [vmem:[#allocation2 + $0x228] sm:$0xff] }
  0xf5   : > { %v1111_v6 = vld [vmem:[#allocation2 + $0x220] sm:$0xff]  ;;  %v1114_v7 = vld [vmem:[#allocation2 + $0x238] sm:$0xff]  ;;  %v1113_v8 = vld [vmem:[#allocation2 + $0x230] sm:$0xff] }
  0xf6   : > { %v1116_v11 = vld [vmem:[#allocation2 + $0x248] sm:$0xff]  ;;  %v1115_v12 = vld [vmem:[#allocation2 + $0x240] sm:$0xff] }
  0xf7   : > { %1197 = vadd.xlane.f32.xlu1 %v1056_v13  ;;  %1195 = vadd.xlane.f32.xlu0 %v1055_v14 }
  0xfb   : > { %1201 = vadd.xlane.f32.xlu1 %v1058_v15  ;;  %1199 = vadd.xlane.f32.xlu0 %v1057_v16  ;;  %v1118_v15 = vld [vmem:[#allocation2 + $0x258] sm:$0xff]  ;;  %v1117_v16 = vld [vmem:[#allocation2 + $0x250] sm:$0xff] }
  0xff   : > { %1205 = vadd.xlane.f32.xlu1 %v1060_v17  ;;  %1203 = vadd.xlane.f32.xlu0 %v1059_v18 }
 0x103   : > { %1209 = vadd.xlane.f32.xlu1 %v1062_v19  ;;  %1207 = vadd.xlane.f32.xlu0 %v1061_v20  ;;  %v1120_v19 = vld [vmem:[#allocation2 + $0x268] sm:$0xff]  ;;  %v1119_v20 = vld [vmem:[#allocation2 + $0x260] sm:$0xff] }
 0x107   : > { %1213 = vadd.xlane.f32.xlu1 %v1064_v21  ;;  %1211 = vadd.xlane.f32.xlu0 %v1063_v22 }
 0x10b   : > { %1217 = vadd.xlane.f32.xlu1 %v1066_v23  ;;  %1215 = vadd.xlane.f32.xlu0 %v1065_v24  ;;  %v1122_v23 = vld [vmem:[#allocation2 + $0x278] sm:$0xff]  ;;  %v1121_v24 = vld [vmem:[#allocation2 + $0x270] sm:$0xff] }
 0x10f   : > { %1221 = vadd.xlane.f32.xlu1 %v1068_v25  ;;  %1219 = vadd.xlane.f32.xlu0 %v1067_v26 }
 0x113   : > { %1225 = vadd.xlane.f32.xlu1 %v1070_v27  ;;  %1223 = vadd.xlane.f32.xlu0 %v1069_v28  ;;  %v1124_v27 = vld [vmem:[#allocation2 + $0x288] sm:$0xff]  ;;  %v1123_v28 = vld [vmem:[#allocation2 + $0x280] sm:$0xff] }
 0x117   : > { %1229 = vadd.xlane.f32.xlu1 %v1072_v29  ;;  %1227 = vadd.xlane.f32.xlu0 %v1071_v30 }
 0x11b   : > { %1233 = vadd.xlane.f32.xlu1 %v1074_v31  ;;  %1231 = vadd.xlane.f32.xlu0 %v1073_v32  ;;  %v1126_v31 = vld [vmem:[#allocation2 + $0x298] sm:$0xff]  ;;  %v1125_v32 = vld [vmem:[#allocation2 + $0x290] sm:$0xff] }
 0x11f   : > { %1237 = vadd.xlane.f32.xlu1 %v1076_v33  ;;  %1235 = vadd.xlane.f32.xlu0 %v1075_v34 }
 0x123   : > { %1241 = vadd.xlane.f32.xlu1 %v1078_v35  ;;  %1239 = vadd.xlane.f32.xlu0 %v1077_v36  ;;  %v1128_v35 = vld [vmem:[#allocation2 + $0x2a8] sm:$0xff]  ;;  %v1127_v36 = vld [vmem:[#allocation2 + $0x2a0] sm:$0xff] }
 0x127   : > { %1245 = vadd.xlane.f32.xlu1 %v1080_v37  ;;  %1243 = vadd.xlane.f32.xlu0 %v1079_v38 }
 0x12b   : > { %1249 = vadd.xlane.f32.xlu1 %v1082_v39  ;;  %1247 = vadd.xlane.f32.xlu0 %v1081_v40  ;;  %v1130_v39 = vld [vmem:[#allocation2 + $0x2b8] sm:$0xff]  ;;  %v1129_v40 = vld [vmem:[#allocation2 + $0x2b0] sm:$0xff] }
 0x12f   : > { %1253 = vadd.xlane.f32.xlu1 %v1084_v41  ;;  %1251 = vadd.xlane.f32.xlu0 %v1083_v42 }
 0x133   : > { %1257 = vadd.xlane.f32.xlu1 %v1086_v43  ;;  %1255 = vadd.xlane.f32.xlu0 %v1085_v44  ;;  %v1132_v43 = vld [vmem:[#allocation2 + $0x2c8] sm:$0xff]  ;;  %v1131_v44 = vld [vmem:[#allocation2 + $0x2c0] sm:$0xff] }
 0x137   : > { %1261 = vadd.xlane.f32.xlu1 %v1088_v45  ;;  %1259 = vadd.xlane.f32.xlu0 %v1087_v46 }
 0x13b   : > { %1265 = vadd.xlane.f32.xlu1 %v1090_v47  ;;  %1263 = vadd.xlane.f32.xlu0 %v1089_v48  ;;  %v1134_v47 = vld [vmem:[#allocation2 + $0x2d8] sm:$0xff]  ;;  %v1133_v48 = vld [vmem:[#allocation2 + $0x2d0] sm:$0xff] }
 0x13f   : > { %1269 = vadd.xlane.f32.xlu1 %v1092_v49  ;;  %1267 = vadd.xlane.f32.xlu0 %v1091_v50 }
 0x143   : > { %1273 = vadd.xlane.f32.xlu1 %v1094_v51  ;;  %1271 = vadd.xlane.f32.xlu0 %v1093_v52  ;;  %v1136_v51 = vld [vmem:[#allocation2 + $0x2e8] sm:$0xff]  ;;  %v1135_v52 = vld [vmem:[#allocation2 + $0x2e0] sm:$0xff] }
 0x147   : > { %1277 = vadd.xlane.f32.xlu1 %v1096_v53  ;;  %1275 = vadd.xlane.f32.xlu0 %v1095_v54 }
 0x14b   : > { %1281 = vadd.xlane.f32.xlu1 %v1098_v55  ;;  %1279 = vadd.xlane.f32.xlu0 %v1097_v56  ;;  %v1138_v55 = vld [vmem:[#allocation2 + $0x2f8] sm:$0xff]  ;;  %v1137_v56 = vld [vmem:[#allocation2 + $0x2f0] sm:$0xff] }
 0x14f   : > { %1285 = vadd.xlane.f32.xlu1 %v1100_v57  ;;  %1283 = vadd.xlane.f32.xlu0 %v1099_v58 }
 0x153   : > { %1289 = vadd.xlane.f32.xlu1 %v1102_v59  ;;  %1287 = vadd.xlane.f32.xlu0 %v1101_v60  ;;  %v1140_v59 = vld [vmem:[#allocation2 + $0x308] sm:$0xff]  ;;  %v1139_v60 = vld [vmem:[#allocation2 + $0x300] sm:$0xff] }
 0x157   : > { %1293 = vadd.xlane.f32.xlu1 %v1104_v61  ;;  %1291 = vadd.xlane.f32.xlu0 %v1103_v62 }
 0x15b   : > { %1297 = vadd.xlane.f32.xlu1 %v1106_v63  ;;  %1295 = vadd.xlane.f32.xlu0 %v1105_v0  ;;  %v1142_v63 = vld [vmem:[#allocation2 + $0x318] sm:$0xff]  ;;  %v1141_v0 = vld [vmem:[#allocation2 + $0x310] sm:$0xff] }
 0x15f   : > { %1301 = vadd.xlane.f32.xlu1 %v1108_v1  ;;  %1299 = vadd.xlane.f32.xlu0 %v1107_v2 }
 0x163   : > { %1305 = vadd.xlane.f32.xlu1 %v1110_v3  ;;  %1303 = vadd.xlane.f32.xlu0 %v1109_v4  ;;  %v1144_v3 = vld [vmem:[#allocation2 + $0x328] sm:$0xff]  ;;  %v1143_v4 = vld [vmem:[#allocation2 + $0x320] sm:$0xff] }
 0x167   : > { %1309 = vadd.xlane.f32.xlu1 %v1112_v5  ;;  %1307 = vadd.xlane.f32.xlu0 %v1111_v6 }
 0x16b   : > { %1313 = vadd.xlane.f32.xlu1 %v1114_v7  ;;  %1311 = vadd.xlane.f32.xlu0 %v1113_v8  ;;  %v1146_v7 = vld [vmem:[#allocation2 + $0x338] sm:$0xff]  ;;  %v1145_v8 = vld [vmem:[#allocation2 + $0x330] sm:$0xff] }
 0x16c   : > { %v4289_v9 = vpop.xlane.xlu1 %1175  ;;  %v4291_v10 = vpop.xlane.xlu0 %1171 }
 0x16f   : > { %1317 = vadd.xlane.f32.xlu1 %v1116_v11  ;;  %1315 = vadd.xlane.f32.xlu0 %v1115_v12 }
 0x170   : > { %v4293_v13 = vpop.xlane.xlu1 %1177  ;;  %v4295_v14 = vpop.xlane.xlu0 %1173 }
 0x173   : > { %1321 = vadd.xlane.f32.xlu1 %v1118_v15  ;;  %1319 = vadd.xlane.f32.xlu0 %v1117_v16  ;;  %v1148_v15 = vld [vmem:[#allocation2 + $0x348] sm:$0xff]  ;;  %v1147_v16 = vld [vmem:[#allocation2 + $0x340] sm:$0xff] }
 0x174   : > { %v4297_v17 = vpop.xlane.xlu1 %1181  ;;  %v4299_v18 = vpop.xlane.xlu0 %1179 }
 0x177   : > { %1325 = vadd.xlane.f32.xlu1 %v1120_v19  ;;  %1323 = vadd.xlane.f32.xlu0 %v1119_v20 }
 0x178   : > { %v4301_v21 = vpop.xlane.xlu1 %1185  ;;  %v4303_v22 = vpop.xlane.xlu0 %1183 }
 0x17b   : > { %1329 = vadd.xlane.f32.xlu1 %v1122_v23  ;;  %1327 = vadd.xlane.f32.xlu0 %v1121_v24  ;;  %v1150_v23 = vld [vmem:[#allocation2 + $0x358] sm:$0xff]  ;;  %v1149_v24 = vld [vmem:[#allocation2 + $0x350] sm:$0xff] }
 0x17c   : > { %v4305_v25 = vpop.xlane.xlu1 %1189  ;;  %v4307_v26 = vpop.xlane.xlu0 %1187 }
 0x17f   : > { %1333 = vadd.xlane.f32.xlu1 %v1124_v27  ;;  %1331 = vadd.xlane.f32.xlu0 %v1123_v28 }
 0x180   : > { %v4309_v29 = vpop.xlane.xlu1 %1193  ;;  %v4311_v30 = vpop.xlane.xlu0 %1191 }
 0x183   : > { %1337 = vadd.xlane.f32.xlu1 %v1126_v31  ;;  %1335 = vadd.xlane.f32.xlu0 %v1125_v32  ;;  %v1152_v31 = vld [vmem:[#allocation2 + $0x368] sm:$0xff]  ;;  %v1151_v32 = vld [vmem:[#allocation2 + $0x360] sm:$0xff] }
 0x184   : > { %v4313_v33 = vpop.xlane.xlu1 %1197  ;;  %v4315_v34 = vpop.xlane.xlu0 %1195 }
 0x187   : > { %1341 = vadd.xlane.f32.xlu1 %v1128_v35  ;;  %1339 = vadd.xlane.f32.xlu0 %v1127_v36 }
 0x188   : > { %v4317_v37 = vpop.xlane.xlu1 %1201  ;;  %v4319_v38 = vpop.xlane.xlu0 %1199 }
 0x18b   : > { %1345 = vadd.xlane.f32.xlu1 %v1130_v39  ;;  %1343 = vadd.xlane.f32.xlu0 %v1129_v40  ;;  %v1154_v39 = vld [vmem:[#allocation2 + $0x378] sm:$0xff]  ;;  %v1153_v40 = vld [vmem:[#allocation2 + $0x370] sm:$0xff] }
 0x18c   : > { %v4321_v41 = vpop.xlane.xlu1 %1205  ;;  %v4323_v42 = vpop.xlane.xlu0 %1203 }
 0x18f   : > { %1349 = vadd.xlane.f32.xlu1 %v1132_v43  ;;  %1347 = vadd.xlane.f32.xlu0 %v1131_v44 }
 0x190   : > { %v4325_v45 = vpop.xlane.xlu1 %1209  ;;  %v4327_v46 = vpop.xlane.xlu0 %1207 }
 0x193   : > { %1353 = vadd.xlane.f32.xlu1 %v1134_v47  ;;  %1351 = vadd.xlane.f32.xlu0 %v1133_v48  ;;  %v1156_v47 = vld [vmem:[#allocation2 + $0x388] sm:$0xff]  ;;  %v1155_v48 = vld [vmem:[#allocation2 + $0x380] sm:$0xff] }
 0x194   : > { %v4329_v49 = vpop.xlane.xlu1 %1213  ;;  %v4331_v50 = vpop.xlane.xlu0 %1211 }
 0x197   : > { %1357 = vadd.xlane.f32.xlu1 %v1136_v51  ;;  %1355 = vadd.xlane.f32.xlu0 %v1135_v52 }
 0x198   : > { %v4333_v53 = vpop.xlane.xlu1 %1217  ;;  %v4335_v54 = vpop.xlane.xlu0 %1215 }
 0x19b   : > { %1361 = vadd.xlane.f32.xlu1 %v1138_v55  ;;  %1359 = vadd.xlane.f32.xlu0 %v1137_v56  ;;  %v1158_v55 = vld [vmem:[#allocation2 + $0x398] sm:$0xff]  ;;  %v1157_v56 = vld [vmem:[#allocation2 + $0x390] sm:$0xff] }
 0x19c   : > { %v4337_v57 = vpop.xlane.xlu1 %1221  ;;  %v4339_v58 = vpop.xlane.xlu0 %1219 }
 0x19f   : > { %1365 = vadd.xlane.f32.xlu1 %v1140_v59  ;;  %1363 = vadd.xlane.f32.xlu0 %v1139_v60 }
 0x1a0   : > { %v4341_v61 = vpop.xlane.xlu1 %1225  ;;  %v4343_v62 = vpop.xlane.xlu0 %1223 }
 0x1a3   : > { %1369 = vadd.xlane.f32.xlu1 %v1142_v63  ;;  %1367 = vadd.xlane.f32.xlu0 %v1141_v0  ;;  %v1160_v63 = vld [vmem:[#allocation2 + $0x3a8] sm:$0xff]  ;;  %v1159_v0 = vld [vmem:[#allocation2 + $0x3a0] sm:$0xff] }
 0x1a4   : > { %v4345_v1 = vpop.xlane.xlu1 %1229  ;;  %v4347_v2 = vpop.xlane.xlu0 %1227 }
 0x1a7   : > { %1373 = vadd.xlane.f32.xlu1 %v1144_v3  ;;  %1371 = vadd.xlane.f32.xlu0 %v1143_v4 }
 0x1a8   : > { %v4349_v5 = vpop.xlane.xlu1 %1233  ;;  %v4351_v6 = vpop.xlane.xlu0 %1231 }
 0x1ab   : > { %1377 = vadd.xlane.f32.xlu1 %v1146_v7  ;;  %1375 = vadd.xlane.f32.xlu0 %v1145_v8  ;;  %v1162_v7 = vld [vmem:[#allocation2 + $0x3b8] sm:$0xff]  ;;  %v1161_v8 = vld [vmem:[#allocation2 + $0x3b0] sm:$0xff] }
 0x1ac   : > { %v4353_v11 = vpop.xlane.xlu1 %1237  ;;  %v4355_v12 = vpop.xlane.xlu0 %1235 }
 0x1af   : > { %1381 = vadd.xlane.f32.xlu1 %v1148_v15  ;;  %1379 = vadd.xlane.f32.xlu0 %v1147_v16 }
 0x1b0   : > { %v4357_v19 = vpop.xlane.xlu1 %1241  ;;  %v4359_v20 = vpop.xlane.xlu0 %1239 }
 0x1b3   : > { %1385 = vadd.xlane.f32.xlu1 %v1150_v23  ;;  %1383 = vadd.xlane.f32.xlu0 %v1149_v24  ;;  %v1164_v23 = vld [vmem:[#allocation2 + $0x3c8] sm:$0xff]  ;;  %v1163_v24 = vld [vmem:[#allocation2 + $0x3c0] sm:$0xff] }
 0x1b4   : > { %v4361_v27 = vpop.xlane.xlu1 %1245  ;;  %v4363_v28 = vpop.xlane.xlu0 %1243 }
 0x1b7   : > { %1389 = vadd.xlane.f32.xlu1 %v1152_v31  ;;  %1387 = vadd.xlane.f32.xlu0 %v1151_v32 }
 0x1b8   : > { %v4365_v35 = vpop.xlane.xlu1 %1249  ;;  %v4367_v36 = vpop.xlane.xlu0 %1247 }
 0x1bb   : > { %1393 = vadd.xlane.f32.xlu1 %v1154_v39  ;;  %1391 = vadd.xlane.f32.xlu0 %v1153_v40  ;;  %v1166_v39 = vld [vmem:[#allocation2 + $0x3d8] sm:$0xff]  ;;  %v1165_v40 = vld [vmem:[#allocation2 + $0x3d0] sm:$0xff] }
 0x1bc   : > { %v4369_v43 = vpop.xlane.xlu1 %1253  ;;  %v4371_v44 = vpop.xlane.xlu0 %1251 }
 0x1bf   : > { %1397 = vadd.xlane.f32.xlu1 %v1156_v47  ;;  %1395 = vadd.xlane.f32.xlu0 %v1155_v48 }
 0x1c0   : > { %v4373_v51 = vpop.xlane.xlu1 %1257  ;;  %v4375_v52 = vpop.xlane.xlu0 %1255 }
 0x1c3   : > { %1401 = vadd.xlane.f32.xlu1 %v1158_v55  ;;  %1399 = vadd.xlane.f32.xlu0 %v1157_v56  ;;  %v1168_v55 = vld [vmem:[#allocation2 + $0x3e8] sm:$0xff]  ;;  %v1167_v56 = vld [vmem:[#allocation2 + $0x3e0] sm:$0xff] }
 0x1c4   : > { %v4377_v59 = vpop.xlane.xlu1 %1261  ;;  %v4379_v60 = vpop.xlane.xlu0 %1259 }
 0x1c7   : > { %1405 = vadd.xlane.f32.xlu1 %v1160_v63  ;;  %1403 = vadd.xlane.f32.xlu0 %v1159_v0 }
 0x1c8   : > { %v4381_v3 = vpop.xlane.xlu1 %1265  ;;  %v4383_v4 = vpop.xlane.xlu0 %1263 }
 0x1cb   : > { %1409 = vadd.xlane.f32.xlu1 %v1162_v7  ;;  %1407 = vadd.xlane.f32.xlu0 %v1161_v8  ;;  %v1170_v7 = vld [vmem:[#allocation2 + $0x3f8] sm:$0xff]  ;;  %v1169_v8 = vld [vmem:[#allocation2 + $0x3f0] sm:$0xff] }
 0x1cc   : > { %v4385_v15 = vpop.xlane.xlu1 %1269  ;;  %v4387_v16 = vpop.xlane.xlu0 %1267 }
 0x1cd   : > { %5425 = vst [vmem:[#allocation12_spill] sm:$0xff] %v4385_v15 }
 0x1cf   : > { %1413 = vadd.xlane.f32.xlu1 %v1164_v23  ;;  %1411 = vadd.xlane.f32.xlu0 %v1163_v24 }
 0x1d0   : > { %v4389_v31 = vpop.xlane.xlu1 %1273  ;;  %v4391_v32 = vpop.xlane.xlu0 %1271 }
 0x1d1   : > { %5426 = vst [vmem:[#allocation13_spill] sm:$0xff] %v4389_v31  ;;  %5427 = vst [vmem:[#allocation14_spill] sm:$0xff] %v4391_v32 }
 0x1d3   : > { %1417 = vadd.xlane.f32.xlu1 %v1166_v39  ;;  %1415 = vadd.xlane.f32.xlu0 %v1165_v40 }
 0x1d4   : > { %v4393_v47 = vpop.xlane.xlu1 %1277  ;;  %v4395_v48 = vpop.xlane.xlu0 %1275 }
 0x1d5   : > { %5428 = vst [vmem:[#allocation15_spill] sm:$0xff] %v4393_v47  ;;  %5429 = vst [vmem:[#allocation16_spill] sm:$0xff] %v4395_v48 }
 0x1d7   : > { %1421 = vadd.xlane.f32.xlu1 %v1168_v55  ;;  %1419 = vadd.xlane.f32.xlu0 %v1167_v56 }
 0x1d8   : > { %v4397_v63 = vpop.xlane.xlu1 %1281  ;;  %v4399_v0 = vpop.xlane.xlu0 %1279 }
 0x1d9   : > { %5430 = vst [vmem:[#allocation17_spill] sm:$0xff] %v4397_v63  ;;  %5431 = vst [vmem:[#allocation18_spill] sm:$0xff] %v4399_v0 }
 0x1db   : > { %1425 = vadd.xlane.f32.xlu1 %v1170_v7  ;;  %1423 = vadd.xlane.f32.xlu0 %v1169_v8  ;;  %v3294_v7 = vld [vmem:[%s5406_s1] ss:$0 sm:$0xff] }
 0x1dc   : > { %v4401_v23 = vpop.xlane.xlu1 %1285  ;;  %v4403_v24 = vpop.xlane.xlu0 %1283 }
 0x1dd   : > { %5432 = vst [vmem:[#allocation19_spill] sm:$0xff] %v4401_v23  ;;  %5433 = vst [vmem:[#allocation20_spill] sm:$0xff] %v4403_v24 }
 0x1e0   : > { %v4405_v39 = vpop.xlane.xlu1 %1289  ;;  %v4407_v40 = vpop.xlane.xlu0 %1287 }
 0x1e1   : > { %5434 = vst [vmem:[#allocation21_spill] sm:$0xff] %v4405_v39  ;;  %5435 = vst [vmem:[#allocation22_spill] sm:$0xff] %v4407_v40  ;;  %v3898_v39 = vmov 0  }
 0x1e2   : > { %3736 = vset.pattern.permute.xlu1 %v3898_v39  ;;  %3735 = vset.pattern.permute.xlu0 %v3898_v39 }
 0x1e4   : > { %v4409_v47 = vpop.xlane.xlu1 %1293  ;;  %v4411_v55 = vpop.xlane.xlu0 %1291 }
 0x1e5   : > { %5436 = vst [vmem:[#allocation23_spill] sm:$0xff] %v4409_v47  ;;  %5437 = vst [vmem:[#allocation24_spill] sm:$0xff] %v4411_v55 }
 0x1e8   : > { %v4413_v56 = vpop.xlane.xlu1 %1297  ;;  %v4415_v63 = vpop.xlane.xlu0 %1295 }
 0x1e9   : > { %5438 = vst [vmem:[#allocation25_spill] sm:$0xff] %v4413_v56  ;;  %5439 = vst [vmem:[#allocation26_spill] sm:$0xff] %v4415_v63 }
 0x1ec   : > { %v4420_v8 = vpop.xlane.xlu1 %1301  ;;  %v4422_v23 = vpop.xlane.xlu0 %1299  ;;  %1566 = vbcast.lane.b32.xlu1 %v3294_v7, 264 }
 0x1ed   : > { %5440 = vst [vmem:[#allocation27_spill] sm:$0xff] %v4420_v8  ;;  %5441 = vst [vmem:[#allocation28_spill] sm:$0xff] %v4422_v23 }
 0x1f0   : > { %v4424_v40 = vpop.xlane.xlu1 %1305  ;;  %v4426_v47 = vpop.xlane.xlu0 %1303  ;;  %1570 = vbcast.lane.b32.xlu1 %v3294_v7, 272 }
 0x1f1   : > { %5442 = vst [vmem:[#allocation29_spill] sm:$0xff] %v4424_v40  ;;  %5443 = vst [vmem:[#allocation30_spill] sm:$0xff] %v4426_v47  ;;  %1562 = vbcast.lane.b32.xlu0 %v3294_v7, 256 }
 0x1f4   : > { %v4428_v56 = vpop.xlane.xlu1 %1309  ;;  %v4430_v63 = vpop.xlane.xlu0 %1307  ;;  %1574 = vbcast.lane.b32.xlu1 %v3294_v7, 280 }
 0x1f5   : > { %5444 = vst [vmem:[#allocation31_spill] sm:$0xff] %v4428_v56  ;;  %5445 = vst [vmem:[#allocation32_spill] sm:$0xff] %v4430_v63  ;;  %1578 = vbcast.lane.b32.xlu0 %v3294_v7, 288 }
 0x1f8   : > { %v4432_v55 = vpop.xlane.xlu1 %1313  ;;  %v4434_v24 = vpop.xlane.xlu0 %1311  ;;  %1582 = vbcast.lane.b32.xlu1 %v3294_v7, 296 }
 0x1f9   : > { %5446 = vst [vmem:[#allocation33_spill] sm:$0xff] %v4432_v55  ;;  %5447 = vst [vmem:[#allocation34_spill] sm:$0xff] %v4434_v24  ;;  %1586 = vbcast.lane.b32.xlu0 %v3294_v7, 304 }
 0x1fc   : > { %v4436_v23 = vpop.xlane.xlu1 %1317  ;;  %v4438_v39 = vpop.xlane.xlu0 %1315  ;;  %1590 = vbcast.lane.b32.xlu1 %v3294_v7, 312 }
 0x1fd   : > { %5448 = vst [vmem:[#allocation35_spill] sm:$0xff] %v4436_v23  ;;  %5449 = vst [vmem:[#allocation36_spill] sm:$0xff] %v4438_v39  ;;  %1594 = vbcast.lane.b32.xlu0 %v3294_v7, 320 }
 0x200   : > { %v4440_v40 = vpop.xlane.xlu1 %1321  ;;  %v4442_v47 = vpop.xlane.xlu0 %1319  ;;  %1598 = vbcast.lane.b32.xlu1 %v3294_v7, 328 }
 0x201   : > { %5450 = vst [vmem:[#allocation37_spill] sm:$0xff] %v4440_v40  ;;  %5451 = vst [vmem:[#allocation38_spill] sm:$0xff] %v4442_v47  ;;  %1602 = vbcast.lane.b32.xlu0 %v3294_v7, 336 }
 0x204   : > { %v4444_v56 = vpop.xlane.xlu1 %1325  ;;  %v4446_v63 = vpop.xlane.xlu0 %1323  ;;  %1606 = vbcast.lane.b32.xlu1 %v3294_v7, 344 }
 0x205   : > { %5452 = vst [vmem:[#allocation39_spill] sm:$0xff] %v4444_v56  ;;  %5453 = vst [vmem:[#allocation40_spill] sm:$0xff] %v4446_v63  ;;  %1610 = vbcast.lane.b32.xlu0 %v3294_v7, 352 }
 0x208   : > { %v4448_v55 = vpop.xlane.xlu1 %1329  ;;  %v4450_v24 = vpop.xlane.xlu0 %1327  ;;  %1614 = vbcast.lane.b32.xlu1 %v3294_v7, 360 }
 0x209   : > { %5454 = vst [vmem:[#allocation41_spill] sm:$0xff] %v4448_v55  ;;  %5455 = vst [vmem:[#allocation42_spill] sm:$0xff] %v4450_v24  ;;  %1618 = vbcast.lane.b32.xlu0 %v3294_v7, 368 }
 0x20c   : > { %v4452_v23 = vpop.xlane.xlu1 %1333  ;;  %v4454_v39 = vpop.xlane.xlu0 %1331  ;;  %1622 = vbcast.lane.b32.xlu1 %v3294_v7, 376 }
 0x20d   : > { %5456 = vst [vmem:[#allocation43_spill] sm:$0xff] %v4452_v23  ;;  %5457 = vst [vmem:[#allocation44_spill] sm:$0xff] %v4454_v39 }
 0x210   : > { %v4456_v40 = vpop.xlane.xlu1 %1337  ;;  %v4458_v47 = vpop.xlane.xlu0 %1335 }
 0x211   : > { %5458 = vst [vmem:[#allocation45_spill] sm:$0xff] %v4456_v40  ;;  %5459 = vst [vmem:[#allocation46_spill] sm:$0xff] %v4458_v47 }
 0x214   : > { %v4460_v56 = vpop.xlane.xlu1 %1341  ;;  %v4462_v63 = vpop.xlane.xlu0 %1339 }
 0x215   : > { %5460 = vst [vmem:[#allocation47_spill] sm:$0xff] %v4460_v56  ;;  %5461 = vst [vmem:[#allocation48_spill] sm:$0xff] %v4462_v63 }
 0x218   : > { %v4464_v8 = vpop.xlane.xlu1 %1345  ;;  %v4466_v55 = vpop.xlane.xlu0 %1343 }
 0x219   : > { %5462 = vst [vmem:[#allocation49_spill] sm:$0xff] %v4464_v8  ;;  %5463 = vst [vmem:[#allocation50_spill] sm:$0xff] %v4466_v55 }
 0x21c   : > { %v4468_v24 = vpop.xlane.xlu1 %1349  ;;  %v4470_v0 = vpop.xlane.xlu0 %1347 }
 0x21d   : > { %5464 = vst [vmem:[#allocation51_spill] sm:$0xff] %v4468_v24  ;;  %5465 = vst [vmem:[#allocation52_spill] sm:$0xff] %v4470_v0 }
 0x220   : > { %v4472_v23 = vpop.xlane.xlu1 %1353  ;;  %v4474_v39 = vpop.xlane.xlu0 %1351 }
 0x221   : > { %5466 = vst [vmem:[#allocation53_spill] sm:$0xff] %v4472_v23  ;;  %5467 = vst [vmem:[#allocation54_spill] sm:$0xff] %v4474_v39 }
 0x224   : > { %v4476_v7 = vpop.xlane.xlu1 %1357  ;;  %v4478_v40 = vpop.xlane.xlu0 %1355 }
 0x225   : > { %5468 = vst [vmem:[#allocation55_spill] sm:$0xff] %v4476_v7  ;;  %5469 = vst [vmem:[#allocation56_spill] sm:$0xff] %v4478_v40 }
 0x228   : > { %v4480_v47 = vpop.xlane.xlu1 %1361  ;;  %v4482_v56 = vpop.xlane.xlu0 %1359 }
 0x229   : > { %5470 = vst [vmem:[#allocation57_spill] sm:$0xff] %v4480_v47  ;;  %5471 = vst [vmem:[#allocation58_spill] sm:$0xff] %v4482_v56 }
 0x22c   : > { %v4484_v63 = vpop.xlane.xlu1 %1365  ;;  %v4486_v8 = vpop.xlane.xlu0 %1363 }
 0x22d   : > { %5472 = vst [vmem:[#allocation59_spill] sm:$0xff] %v4484_v63  ;;  %5473 = vst [vmem:[#allocation60_spill] sm:$0xff] %v4486_v8 }
 0x230   : > { %v4488_v55 = vpop.xlane.xlu1 %1369  ;;  %v4490_v24 = vpop.xlane.xlu0 %1367 }
 0x231   : > { %5474 = vst [vmem:[#allocation61_spill] sm:$0xff] %v4488_v55  ;;  %5475 = vst [vmem:[#allocation62_spill] sm:$0xff] %v4490_v24 }
 0x234   : > { %v4492_v0 = vpop.xlane.xlu1 %1373  ;;  %v4494_v23 = vpop.xlane.xlu0 %1371 }
 0x235   : > { %5476 = vst [vmem:[#allocation63_spill] sm:$0xff] %v4492_v0  ;;  %5477 = vst [vmem:[#allocation64_spill] sm:$0xff] %v4494_v23 }
 0x238   : > { %v4496_v39 = vpop.xlane.xlu1 %1377  ;;  %v4498_v7 = vpop.xlane.xlu0 %1375 }
 0x239   : > { %5478 = vst [vmem:[#allocation65_spill] sm:$0xff] %v4496_v39  ;;  %5479 = vst [vmem:[#allocation66_spill] sm:$0xff] %v4498_v7 }
 0x23c   : > { %v4500_v40 = vpop.xlane.xlu1 %1381  ;;  %v4502_v47 = vpop.xlane.xlu0 %1379 }
 0x23d   : > { %5480 = vst [vmem:[#allocation67_spill] sm:$0xff] %v4500_v40  ;;  %5481 = vst [vmem:[#allocation68_spill] sm:$0xff] %v4502_v47 }
 0x240   : > { %v4504_v56 = vpop.xlane.xlu1 %1385  ;;  %v4506_v63 = vpop.xlane.xlu0 %1383 }
 0x241   : > { %5482 = vst [vmem:[#allocation69_spill] sm:$0xff] %v4504_v56  ;;  %5483 = vst [vmem:[#allocation70_spill] sm:$0xff] %v4506_v63 }
 0x244   : > { %v4508_v8 = vpop.xlane.xlu1 %1389  ;;  %v4510_v55 = vpop.xlane.xlu0 %1387 }
 0x245   : > { %5484 = vst [vmem:[#allocation71_spill] sm:$0xff] %v4508_v8  ;;  %5485 = vst [vmem:[#allocation72_spill] sm:$0xff] %v4510_v55 }
 0x248   : > { %v4512_v24 = vpop.xlane.xlu1 %1393  ;;  %v4514_v0 = vpop.xlane.xlu0 %1391 }
 0x249   : > { %5486 = vst [vmem:[#allocation73_spill] sm:$0xff] %v4512_v24  ;;  %5487 = vst [vmem:[#allocation74_spill] sm:$0xff] %v4514_v0 }
 0x24c   : > { %v4516_v23 = vpop.xlane.xlu1 %1397  ;;  %v4518_v39 = vpop.xlane.xlu0 %1395 }
 0x24d   : > { %5488 = vst [vmem:[#allocation75_spill] sm:$0xff] %v4516_v23  ;;  %5489 = vst [vmem:[#allocation76_spill] sm:$0xff] %v4518_v39 }
 0x250   : > { %v4520_v7 = vpop.xlane.xlu1 %1401  ;;  %v4522_v40 = vpop.xlane.xlu0 %1399 }
 0x251   : > { %5490 = vst [vmem:[#allocation77_spill] sm:$0xff] %v4520_v7  ;;  %5491 = vst [vmem:[#allocation78_spill] sm:$0xff] %v4522_v40 }
 0x254   : > { %v4524_v47 = vpop.xlane.xlu1 %1405  ;;  %v4526_v56 = vpop.xlane.xlu0 %1403 }
 0x255   : > { %5492 = vst [vmem:[#allocation79_spill] sm:$0xff] %v4524_v47  ;;  %5493 = vst [vmem:[#allocation80_spill] sm:$0xff] %v4526_v56 }
 0x258   : > { %v4528_v63 = vpop.xlane.xlu1 %1409  ;;  %v4530_v8 = vpop.xlane.xlu0 %1407 }
 0x259   : > { %5494 = vst [vmem:[#allocation81_spill] sm:$0xff] %v4528_v63  ;;  %5495 = vst [vmem:[#allocation82_spill] sm:$0xff] %v4530_v8  ;;  %v1427_v63 = vmul.f32 0.00390625, %v4291_v10  ;;  %v1428_v8 = vmul.f32 0.00390625, %v4295_v14  ;;  %v1431_v10 = vmul.f32 0.00390625, %v4299_v18  ;;  %v1432_v18 = vmul.f32 0.00390625, %v4297_v17 }
 0x25c   : > { %v4532_v55 = vpop.xlane.xlu1 %1413  ;;  %v4534_v24 = vpop.xlane.xlu0 %1411 }
 0x25d   : > { %5496 = vst [vmem:[#allocation83_spill] sm:$0xff] %v4532_v55  ;;  %5497 = vst [vmem:[#allocation84_spill] sm:$0xff] %v4534_v24 }
 0x260   : > { %v4536_v0 = vpop.xlane.xlu1 %1417  ;;  %v4538_v23 = vpop.xlane.xlu0 %1415 }
 0x261   : > { %5498 = vst [vmem:[#allocation85_spill] sm:$0xff] %v4536_v0  ;;  %5499 = vst [vmem:[#allocation86_spill] sm:$0xff] %v4538_v23 }
 0x264   : > { %v4540_v39 = vpop.xlane.xlu1 %1421  ;;  %v4542_v7 = vpop.xlane.xlu0 %1419 }
 0x265   : > { %5500 = vst [vmem:[#allocation87_spill] sm:$0xff] %v4540_v39  ;;  %5501 = vst [vmem:[#allocation88_spill] sm:$0xff] %v4542_v7  ;;  %v1429_v39 = vmul.f32 0.00390625, %v4289_v9 }
 0x268   : > { %v4544_v40 = vpop.xlane.xlu1 %1425  ;;  %v4546_v47 = vpop.xlane.xlu0 %1423 }
 0x269   : > { %5502 = vst [vmem:[#allocation89_spill] sm:$0xff] %v4544_v40  ;;  %5503 = vst [vmem:[#allocation90_spill] sm:$0xff] %v4546_v47  ;;  %v1430_v47 = vmul.f32 0.00390625, %v4293_v13 }
 0x26c   : > { %v4550_v56 = vpop.permute.xlu1 %1566  ;;  %v4552_v55 = vpop.permute.xlu0 %1562 }
 0x26d   : > { %v1641_v0 = vsub.f32 %v1428_v8, %v4550_v56  ;;  %v1640_v23 = vsub.f32 %v1427_v63, %v4552_v55 }
 0x26f   : > { %v1769_v24 = vmul.f32 %v1641_v0, %v1641_v0  ;;  %v1768_v7 = vmul.f32 %v1640_v23, %v1640_v23  ;;  %v1433_v0 = vmul.f32 0.00390625, %v4303_v22  ;;  %v1434_v22 = vmul.f32 0.00390625, %v4301_v21 }
 0x270   : > { %v4557_v48 = vpop.permute.xlu1 %1570  ;;  %v4559_v40 = vpop.permute.xlu0 %1578 }
 0x271   : > { %2028 = vperm.xlu1 %3736, %v1769_v24   ;;  %2025 = vperm.xlu0 %3735, %v1768_v7   ;;  %v1642_v14 = vsub.f32 %v1429_v39, %v4557_v48  ;;  %v1644_v8 = vsub.f32 %v1431_v10, %v4559_v40  ;;  %v1435_v10 = vmul.f32 0.00390625, %v4307_v26 }
 0x273   : > { %v1770_v31 = vmul.f32 %v1642_v14, %v1642_v14  ;;  %v1772_v7 = vmul.f32 %v1644_v8, %v1644_v8 }
 0x274   : > { %v4565_v63 = vpop.permute.xlu1 %1574  ;;  %v4567_v9 = vpop.permute.xlu0 %1586 }
 0x275   : > { %2031 = vperm.xlu1 %3736, %v1770_v31   ;;  %v1643_v23 = vsub.f32 %v1430_v47, %v4565_v63  ;;  %v1646_v39 = vsub.f32 %v1433_v0, %v4567_v9  ;;  %v1437_v0 = vmul.f32 0.00390625, %v4311_v30 }
 0x277   : > { %v1771_v24 = vmul.f32 %v1643_v23, %v1643_v23  ;;  %v1774_v47 = vmul.f32 %v1646_v39, %v1646_v39 }
 0x278   : > { %v4573_v32 = vpop.permute.xlu1 %1582  ;;  %v4575_v13 = vpop.permute.xlu0 %1594 }
 0x279   : > { %2034 = vperm.xlu0 %3735, %v1771_v24   ;;  %2037 = vperm.xlu1 %3736, %v1772_v7   ;;  %v1645_v14 = vsub.f32 %v1432_v18, %v4573_v32  ;;  %v1648_v17 = vsub.f32 %v1435_v10, %v4575_v13  ;;  %v1436_v24 = vmul.f32 0.00390625, %v4305_v25  ;;  %v1439_v10 = vmul.f32 0.00390625, %v4315_v34 }
 0x27b   : > { %v1773_v31 = vmul.f32 %v1645_v14, %v1645_v14  ;;  %v1776_v18 = vmul.f32 %v1648_v17, %v1648_v17 }
 0x27c   : > { %v4581_v23 = vpop.permute.xlu1 %1590  ;;  %v4583_v8 = vpop.permute.xlu0 %1602 }
 0x27d   : > { %2040 = vperm.xlu0 %3735, %v1773_v31   ;;  %2043 = vperm.xlu1 %3736, %v1774_v47   ;;  %v1647_v26 = vsub.f32 %v1434_v22, %v4581_v23  ;;  %v1650_v21 = vsub.f32 %v1437_v0, %v4583_v8  ;;  %v1438_v31 = vmul.f32 0.00390625, %v4309_v29  ;;  %v1441_v0 = vmul.f32 0.00390625, %v4319_v38 }
 0x27e   : > { %v1442_v38 = vmul.f32 0.00390625, %v4317_v37 }
 0x27f   : > { %v1775_v7 = vmul.f32 %v1647_v26, %v1647_v26  ;;  %v1778_v22 = vmul.f32 %v1650_v21, %v1650_v21  ;;  %v1443_v21 = vmul.f32 0.00390625, %v4323_v42 }
 0x280   : > { %v4589_v14 = vpop.permute.xlu1 %1598  ;;  %v4591_v39 = vpop.permute.xlu0 %1610 }
 0x281   : > { %2046 = vperm.xlu0 %3735, %v1775_v7   ;;  %2049 = vperm.xlu1 %3736, %v1776_v18   ;;  %v1649_v30 = vsub.f32 %v1436_v24, %v4589_v14  ;;  %v1652_v25 = vsub.f32 %v1439_v10, %v4591_v39  ;;  %v1440_v7 = vmul.f32 0.00390625, %v4313_v33  ;;  %v1444_v33 = vmul.f32 0.00390625, %v4321_v41 }
 0x283   : > { %v1777_v47 = vmul.f32 %v1649_v30, %v1649_v30  ;;  %v1780_v24 = vmul.f32 %v1652_v25, %v1652_v25  ;;  %v1445_v25 = vmul.f32 0.00390625, %v4327_v46 }
 0x284   : > { %v4597_v26 = vpop.permute.xlu1 %1606  ;;  %v4599_v17 = vpop.permute.xlu0 %1618 }
 0x285   : > { %2052 = vperm.xlu0 %3735, %v1777_v47   ;;  %2055 = vperm.xlu1 %3736, %v1778_v22   ;;  %v1651_v34 = vsub.f32 %v1438_v31, %v4597_v26  ;;  %v1654_v29 = vsub.f32 %v1441_v0, %v4599_v17  ;;  %v1656_v31 = vsub.f32 %v1443_v21, %v4552_v55 }
 0x286   : > { %v1658_v37 = vsub.f32 %v1445_v25, %v4557_v48 }
 0x287   : > { %v1779_v18 = vmul.f32 %v1651_v34, %v1651_v34  ;;  %v1782_v22 = vmul.f32 %v1654_v29, %v1654_v29  ;;  %v1784_v34 = vmul.f32 %v1656_v31, %v1656_v31  ;;  %v1450_v31 = vmul.f32 0.00390625, %v4333_v53 }
 0x288   : > { %v4605_v30 = vpop.permute.xlu1 %1614  ;;  %v1786_v41 = vmul.f32 %v1658_v37, %v1658_v37 }
 0x289   : > { %2058 = vperm.xlu0 %3735, %v1779_v18   ;;  %2061 = vperm.xlu1 %3736, %v1780_v24   ;;  %v1653_v10 = vsub.f32 %v1440_v7, %v4605_v30  ;;  %v1657_v7 = vsub.f32 %v1444_v33, %v4550_v56  ;;  %v1446_v18 = vmul.f32 0.00390625, %v4325_v45  ;;  %v1447_v24 = vmul.f32 0.00390625, %v4331_v50 }
 0x28a   : > { %v1451_v33 = vmul.f32 0.00390625, %v4339_v58 }
 0x28b   : > { %v1781_v47 = vmul.f32 %v1653_v10, %v1653_v10  ;;  %v1785_v29 = vmul.f32 %v1657_v7, %v1657_v7  ;;  %v1659_v46 = vsub.f32 %v1446_v18, %v4565_v63  ;;  %v1660_v21 = vsub.f32 %v1447_v24, %v4559_v40 }
 0x28c   : > { %v4611_v15 = vpop.permute.xlu1 %1622  ;;  %v1448_v10 = vmul.f32 0.00390625, %v4329_v49  ;;  %v1663_v49 = vsub.f32 %v1450_v31, %v4581_v23  ;;  %v1454_v18 = vmul.f32 0.00390625, %v4341_v61  ;;  %v1455_v24 = vmul.f32 0.00390625, %v4347_v2 }
 0x28d   : > { %2064 = vperm.xlu0 %3735, %v1781_v47   ;;  %2067 = vperm.xlu1 %3736, %v1782_v22   ;;  %v1655_v42 = vsub.f32 %v1442_v38, %v4611_v15  ;;  %v1449_v38 = vmul.f32 0.00390625, %v4335_v54  ;;  %v1787_v47 = vmul.f32 %v1659_v46, %v1659_v46  ;;  %v1788_v22 = vmul.f32 %v1660_v21, %v1660_v21 }
 0x28e   : > { %v1661_v45 = vsub.f32 %v1448_v10, %v4573_v32  ;;  %v1664_v54 = vsub.f32 %v1451_v33, %v4575_v13  ;;  %v1791_v7 = vmul.f32 %v1663_v49, %v1663_v49  ;;  %v1456_v46 = vmul.f32 0.00390625, %v4345_v1 }
 0x28f   : > { %v1783_v0 = vmul.f32 %v1655_v42, %v1655_v42  ;;  %v1662_v50 = vsub.f32 %v1449_v38, %v4567_v9  ;;  %v1457_v21 = vmul.f32 0.00390625, %v4351_v6  ;;  %v1460_v31 = vmul.f32 0.00390625, %v4353_v11 }
 0x290   : > { %v1789_v25 = vmul.f32 %v1661_v45, %v1661_v45  ;;  %v1792_v37 = vmul.f32 %v1664_v54, %v1664_v54  ;;  %v1669_v61 = vsub.f32 %v1456_v46, %v4605_v30  ;;  %v1461_v33 = vmul.f32 0.00390625, %v4359_v20 }
 0x291   : > { %2070 = vperm.xlu0 %3735, %v1783_v0   ;;  %2073 = vperm.xlu1 %3736, %v1784_v34   ;;  %v1790_v42 = vmul.f32 %v1662_v50, %v1662_v50  ;;  %v1452_v0 = vmul.f32 0.00390625, %v4337_v57  ;;  %v1453_v34 = vmul.f32 0.00390625, %v4343_v62  ;;  %v1667_v57 = vsub.f32 %v1454_v18, %v4597_v26 }
 0x292   : > { %v1668_v62 = vsub.f32 %v1455_v24, %v4591_v39  ;;  %v1670_v2 = vsub.f32 %v1457_v21, %v4599_v17  ;;  %v1797_v45 = vmul.f32 %v1669_v61, %v1669_v61  ;;  %v1462_v49 = vmul.f32 0.00390625, %v4357_v19 }
 0x293   : > { %v1665_v53 = vsub.f32 %v1452_v0, %v4589_v14  ;;  %v1666_v58 = vsub.f32 %v1453_v34, %v4583_v8  ;;  %v1795_v10 = vmul.f32 %v1667_v57, %v1667_v57  ;;  %v1463_v54 = vmul.f32 0.00390625, %v4363_v28 }
 0x294   : > { %v1796_v38 = vmul.f32 %v1668_v62, %v1668_v62  ;;  %v1798_v50 = vmul.f32 %v1670_v2, %v1670_v2  ;;  %v1675_v11 = vsub.f32 %v1462_v49, %v4565_v63  ;;  %v1466_v18 = vmul.f32 0.00390625, %v4365_v35 }
 0x295   : > { %2076 = vperm.xlu0 %3735, %v1785_v29   ;;  %2079 = vperm.xlu1 %3736, %v1786_v41   ;;  %v1793_v29 = vmul.f32 %v1665_v53, %v1665_v53  ;;  %v1794_v41 = vmul.f32 %v1666_v58, %v1666_v58  ;;  %v1676_v20 = vsub.f32 %v1463_v54, %v4559_v40  ;;  %v1467_v24 = vmul.f32 0.00390625, %v4371_v44 }
 0x296   : > { %v1803_v53 = vmul.f32 %v1675_v11, %v1675_v11  ;;  %v1468_v57 = vmul.f32 0.00390625, %v4369_v43  ;;  %v1469_v62 = vmul.f32 0.00390625, %v4375_v52  ;;  %v5507_v11 = vld [vmem:[#allocation16_spill] sm:$0xff] }
 0x297   : > { %v1804_v58 = vmul.f32 %v1676_v20, %v1676_v20  ;;  %v1479_v20 = vmul.f32 0.00390625, %v5507_v11  ;;  %v5519_v11 = vld [vmem:[#allocation59_spill] sm:$0xff] }
 0x298   : > { %v1681_v35 = vsub.f32 %v1468_v57, %v4589_v14  ;;  %v1682_v44 = vsub.f32 %v1469_v62, %v4583_v8  ;;  %v5510_v57 = vld [vmem:[#allocation27_spill] sm:$0xff] }
 0x299   : > { %2082 = vperm.xlu0 %3735, %v1787_v47   ;;  %2085 = vperm.xlu1 %3736, %v1788_v22   ;;  %v1458_v47 = vmul.f32 0.00390625, %v4349_v5  ;;  %v1459_v22 = vmul.f32 0.00390625, %v4355_v12  ;;  %v1673_v5 = vsub.f32 %v1460_v31, %v4550_v56  ;;  %v1674_v12 = vsub.f32 %v1461_v33, %v4557_v48 }
 0x29a   : > { %v1809_v61 = vmul.f32 %v1681_v35, %v1681_v35  ;;  %v1810_v2 = vmul.f32 %v1682_v44, %v1682_v44  ;;  %v1492_v62 = vmul.f32 0.00390625, %v5510_v57 }
 0x29b   : > { %v1671_v1 = vsub.f32 %v1458_v47, %v4611_v15  ;;  %v1672_v6 = vsub.f32 %v1459_v22, %v4552_v55  ;;  %v1801_v0 = vmul.f32 %v1673_v5, %v1673_v5  ;;  %v1802_v34 = vmul.f32 %v1674_v12, %v1674_v12  ;;  %v5505_v5 = vld [vmem:[#allocation14_spill] sm:$0xff] }
 0x29c   : > { %v1472_v47 = vmul.f32 0.00390625, %v4377_v59  ;;  %v1473_v22 = vmul.f32 0.00390625, %v4383_v4  ;;  %v1477_v12 = vmul.f32 0.00390625, %v5505_v5  ;;  %v5517_v5 = vld [vmem:[#allocation60_spill] sm:$0xff] }
 0x29d   : > { %2088 = vperm.xlu0 %3735, %v1789_v25   ;;  %2091 = vperm.xlu1 %3736, %v1790_v42   ;;  %v1799_v25 = vmul.f32 %v1671_v1, %v1671_v1  ;;  %v1800_v42 = vmul.f32 %v1672_v6, %v1672_v6  ;;  %v1474_v1 = vmul.f32 0.00390625, %v4381_v3  ;;  %v1475_v6 = vmul.f32 0.00390625, %v4387_v16 }
 0x29e   : > { %v1690_v16 = vsub.f32 %v1477_v12, %v4557_v48  ;;  %v1523_v12 = vmul.f32 0.00390625, %v5517_v5 }
 0x29f   : > { %v1687_v59 = vsub.f32 %v1474_v1, %v4611_v15  ;;  %v1688_v4 = vsub.f32 %v1475_v6, %v4552_v55  ;;  %v5515_v1 = vld [vmem:[#allocation43_spill] sm:$0xff] }
 0x2a0   : > { %v1508_v6 = vmul.f32 0.00390625, %v5515_v1 }
 0x2a1   : > { %2094 = vperm.xlu0 %3735, %v1791_v7   ;;  %2097 = vperm.xlu1 %3736, %v1792_v37   ;;  %v1464_v7 = vmul.f32 0.00390625, %v4361_v27  ;;  %v1465_v37 = vmul.f32 0.00390625, %v4367_v36  ;;  %v1679_v27 = vsub.f32 %v1466_v18, %v4581_v23  ;;  %v1680_v36 = vsub.f32 %v1467_v24, %v4575_v13  ;;  %v5509_v18 = vld [vmem:[#allocation18_spill] sm:$0xff] }
 0x2a2   : > { %v1815_v49 = vmul.f32 %v1687_v59, %v1687_v59  ;;  %v1816_v54 = vmul.f32 %v1688_v4, %v1688_v4  ;;  %v1481_v24 = vmul.f32 0.00390625, %v5509_v18  ;;  %v1721_v59 = vsub.f32 %v1508_v6, %v4550_v56  ;;  %v5521_v18 = vld [vmem:[#allocation62_spill] sm:$0xff] }
 0x2a3   : > { %v1677_v19 = vsub.f32 %v1464_v7, %v4573_v32  ;;  %v1678_v28 = vsub.f32 %v1465_v37, %v4567_v9  ;;  %v1807_v46 = vmul.f32 %v1679_v27, %v1679_v27  ;;  %v1808_v21 = vmul.f32 %v1680_v36, %v1680_v36 }
 0x2a4   : > { %v1818_v37 = vmul.f32 %v1690_v16, %v1690_v16  ;;  %v1694_v36 = vsub.f32 %v1481_v24, %v4567_v9  ;;  %v1736_v16 = vsub.f32 %v1523_v12, %v4552_v55  ;;  %v1525_v24 = vmul.f32 0.00390625, %v5521_v18 }
 0x2a5   : > { %2100 = vperm.xlu0 %3735, %v1793_v29   ;;  %2103 = vperm.xlu1 %3736, %v1794_v41   ;;  %v1805_v29 = vmul.f32 %v1677_v19, %v1677_v19  ;;  %v1806_v41 = vmul.f32 %v1678_v28, %v1678_v28  ;;  %v5508_v19 = vld [vmem:[#allocation15_spill] sm:$0xff] }
 0x2a6   : > { %v1480_v28 = vmul.f32 0.00390625, %v5508_v19  ;;  %v1822_v44 = vmul.f32 %v1694_v36, %v1694_v36  ;;  %v5520_v19 = vld [vmem:[#allocation45_spill] sm:$0xff]  ;;  %v1738_v36 = vsub.f32 %v1525_v24, %v4557_v48 }
 0x2a8   : > { %v1693_v27 = vsub.f32 %v1480_v28, %v4573_v32  ;;  %v1510_v28 = vmul.f32 0.00390625, %v5520_v19  ;;  %v5531_v19 = vld [vmem:[#allocation64_spill] sm:$0xff] }
 0x2a9   : > { %2106 = vperm.xlu0 %3735, %v1795_v10   ;;  %2109 = vperm.xlu1 %3736, %v1796_v38   ;;  %v1470_v10 = vmul.f32 0.00390625, %v4373_v51  ;;  %v1471_v38 = vmul.f32 0.00390625, %v4379_v60  ;;  %v1685_v51 = vsub.f32 %v1472_v47, %v4605_v30  ;;  %v1686_v60 = vsub.f32 %v1473_v22, %v4599_v17 }
 0x2aa   : > { %v1821_v35 = vmul.f32 %v1693_v27, %v1693_v27  ;;  %v1723_v27 = vsub.f32 %v1510_v28, %v4565_v63  ;;  %v1527_v28 = vmul.f32 0.00390625, %v5531_v19 }
 0x2ab   : > { %v1683_v43 = vsub.f32 %v1470_v10, %v4597_v26  ;;  %v1684_v52 = vsub.f32 %v1471_v38, %v4591_v39  ;;  %v1813_v31 = vmul.f32 %v1685_v51, %v1685_v51  ;;  %v1814_v33 = vmul.f32 %v1686_v60, %v1686_v60  ;;  %v5514_v51 = vld [vmem:[#allocation29_spill] sm:$0xff] }
 0x2ac   : > { %v1705_v38 = vsub.f32 %v1492_v62, %v4550_v56  ;;  %v1494_v60 = vmul.f32 0.00390625, %v5514_v51  ;;  %v5522_v62 = vld [vmem:[#allocation75_spill] sm:$0xff] }
 0x2ad   : > { %2112 = vperm.xlu0 %3735, %v1797_v45   ;;  %2115 = vperm.xlu1 %3736, %v1798_v50   ;;  %v1811_v45 = vmul.f32 %v1683_v43, %v1683_v43  ;;  %v1812_v50 = vmul.f32 %v1684_v52, %v1684_v52  ;;  %v5513_v43 = vld [vmem:[#allocation44_spill] sm:$0xff] }
 0x2ae   : > { %v1507_v52 = vmul.f32 0.00390625, %v5513_v43  ;;  %v1833_v22 = vmul.f32 %v1705_v38, %v1705_v38  ;;  %v1707_v4 = vsub.f32 %v1494_v60, %v4565_v63 }
 0x2b1   : > { %2118 = vperm.xlu0 %3735, %v1799_v25   ;;  %2121 = vperm.xlu1 %3736, %v1800_v42   ;;  %v5504_v25 = vld [vmem:[#allocation12_spill] sm:$0xff] }
 0x2b2   : > { %v1476_v42 = vmul.f32 0.00390625, %v5504_v25  ;;  %v5516_v25 = vld [vmem:[#allocation46_spill] sm:$0xff] }
 0x2b4   : > { %v1689_v3 = vsub.f32 %v1476_v42, %v4550_v56  ;;  %v1509_v42 = vmul.f32 0.00390625, %v5516_v25 }
 0x2b5   : > { %2124 = vperm.xlu0 %3735, %v1801_v0   ;;  %2127 = vperm.xlu1 %3736, %v1802_v34   ;;  %v5506_v0 = vld [vmem:[#allocation13_spill] sm:$0xff] }
 0x2b6   : > { %v1478_v34 = vmul.f32 0.00390625, %v5506_v0  ;;  %v1817_v7 = vmul.f32 %v1689_v3, %v1689_v3  ;;  %v1722_v3 = vsub.f32 %v1509_v42, %v4557_v48  ;;  %v5518_v0 = vld [vmem:[#allocation32_spill] sm:$0xff] }
 0x2b9   : > { %2130 = vperm.xlu0 %3735, %v1803_v53   ;;  %2133 = vperm.xlu1 %3736, %v1804_v58   ;;  %v1691_v53 = vsub.f32 %v1478_v34, %v4565_v63  ;;  %v1692_v58 = vsub.f32 %v1479_v20, %v4559_v40  ;;  %v1495_v34 = vmul.f32 0.00390625, %v5518_v0  ;;  %v1524_v20 = vmul.f32 0.00390625, %v5519_v11 }
 0x2bd   : > { %2136 = vperm.xlu0 %3735, %v1805_v29   ;;  %2139 = vperm.xlu1 %3736, %v1806_v41   ;;  %v1819_v29 = vmul.f32 %v1691_v53, %v1691_v53  ;;  %v1820_v41 = vmul.f32 %v1692_v58, %v1692_v58  ;;  %v1737_v53 = vsub.f32 %v1524_v20, %v4550_v56 }
 0x2be   : > { %v1708_v58 = vsub.f32 %v1495_v34, %v4559_v40 }
 0x2c1   : > { %2142 = vperm.xlu0 %3735, %v1807_v46   ;;  %2145 = vperm.xlu1 %3736, %v1808_v21   ;;  %v5511_v46 = vld [vmem:[#allocation28_spill] sm:$0xff] }
 0x2c2   : > { %v1491_v21 = vmul.f32 0.00390625, %v5511_v46  ;;  %v1540_v46 = vmul.f32 0.00390625, %v5522_v62  ;;  %v5533_v62 = vld [vmem:[#allocation20_spill] sm:$0xff] }
 0x2c4   : > { %v1704_v10 = vsub.f32 %v1491_v21, %v4552_v55  ;;  %v5523_v21 = vld [vmem:[#allocation76_spill] sm:$0xff] }
 0x2c5   : > { %2148 = vperm.xlu0 %3735, %v1809_v61   ;;  %2151 = vperm.xlu1 %3736, %v1810_v2   ;;  %v5512_v61 = vld [vmem:[#allocation30_spill] sm:$0xff] }
 0x2c6   : > { %v1493_v2 = vmul.f32 0.00390625, %v5512_v61  ;;  %v1832_v47 = vmul.f32 %v1704_v10, %v1704_v10  ;;  %v1866_v10 = vmul.f32 %v1738_v36, %v1738_v36  ;;  %v1753_v61 = vsub.f32 %v1540_v46, %v4550_v56  ;;  %v5526_v56 = vld [vmem:[#allocation61_spill] sm:$0xff] }
 0x2c7   : > { %v1483_v46 = vmul.f32 0.00390625, %v5533_v62  ;;  %v5547_v62 = vld [vmem:[#allocation66_spill] sm:$0xff] }
 0x2c8   : > { %v1881_v51 = vmul.f32 %v1753_v61, %v1753_v61 }
 0x2c9   : > { %2154 = vperm.xlu0 %3735, %v1811_v45   ;;  %2157 = vperm.xlu1 %3736, %v1812_v50   ;;  %v1706_v45 = vsub.f32 %v1493_v2, %v4557_v48  ;;  %v1720_v50 = vsub.f32 %v1507_v52, %v4552_v55  ;;  %v5524_v52 = vld [vmem:[#allocation31_spill] sm:$0xff]  ;;  %v1696_v61 = vsub.f32 %v1483_v46, %v4575_v13  ;;  %v1529_v46 = vmul.f32 0.00390625, %v5547_v62 }
 0x2cd   : > { %2160 = vperm.xlu0 %3735, %v1813_v31   ;;  %2163 = vperm.xlu1 %3736, %v1814_v33   ;;  %v1834_v31 = vmul.f32 %v1706_v45, %v1706_v45  ;;  %v1848_v33 = vmul.f32 %v1720_v50, %v1720_v50 }
 0x2d1   : > { %2166 = vperm.xlu0 %3735, %v1815_v49   ;;  %2169 = vperm.xlu1 %3736, %v1816_v54   ;;  %v1849_v49 = vmul.f32 %v1721_v59, %v1721_v59  ;;  %v1835_v54 = vmul.f32 %v1707_v4, %v1707_v4 }
 0x2d5   : > { %2172 = vperm.xlu0 %3735, %v1817_v7   ;;  %2175 = vperm.xlu1 %3736, %v1818_v37   ;;  %v1850_v7 = vmul.f32 %v1722_v3, %v1722_v3  ;;  %v1864_v37 = vmul.f32 %v1736_v16, %v1736_v16  ;;  %v5529_v16 = vld [vmem:[#allocation34_spill] sm:$0xff] }
 0x2d6   : > { %v1497_v0 = vmul.f32 0.00390625, %v5529_v16 }
 0x2d9   : > { %2178 = vperm.xlu0 %3735, %v1819_v29   ;;  %2181 = vperm.xlu1 %3736, %v1820_v41   ;;  %v1865_v29 = vmul.f32 %v1737_v53, %v1737_v53  ;;  %v1836_v41 = vmul.f32 %v1708_v58, %v1708_v58 }
 0x2dd   : > { %2184 = vperm.xlu0 %3735, %v1821_v35   ;;  %2187 = vperm.xlu1 %3736, %v1822_v44   ;;  %v1539_v35 = vmul.f32 0.00390625, %v5523_v21  ;;  %v1851_v44 = vmul.f32 %v1723_v27, %v1723_v27  ;;  %v5534_v21 = vld [vmem:[#allocation77_spill] sm:$0xff] }
 0x2df   : > { %v1752_v38 = vsub.f32 %v1539_v35, %v4552_v55  ;;  %v1542_v35 = vmul.f32 0.00390625, %v5534_v21 }
 0x2e1   : > { %2217 = vperm.xlu0 %3735, %v1832_v47   ;;  %2220 = vperm.xlu1 %3736, %v1833_v22   ;;  %v1496_v47 = vmul.f32 0.00390625, %v5524_v52  ;;  %v5525_v22 = vld [vmem:[#allocation48_spill] sm:$0xff]  ;;  %v1880_v50 = vmul.f32 %v1752_v38, %v1752_v38  ;;  %v1755_v38 = vsub.f32 %v1542_v35, %v4565_v63 }
 0x2e2   : > { %v1511_v45 = vmul.f32 0.00390625, %v5525_v22  ;;  %v5537_v22 = vld [vmem:[#allocation33_spill] sm:$0xff] }
 0x2e3   : > { %v1709_v60 = vsub.f32 %v1496_v47, %v4573_v32 }
 0x2e4   : > { %v1724_v1 = vsub.f32 %v1511_v45, %v4559_v40  ;;  %v1498_v45 = vmul.f32 0.00390625, %v5537_v22  ;;  %v5548_v22 = vld [vmem:[#allocation22_spill] sm:$0xff] }
 0x2e5   : > { %2223 = vperm.xlu0 %3735, %v1834_v31   ;;  %2265 = vperm.xlu1 %3736, %v1848_v33   ;;  %v1526_v31 = vmul.f32 0.00390625, %v5526_v56  ;;  %v5527_v33 = vld [vmem:[#allocation78_spill] sm:$0xff]  ;;  %v1837_v4 = vmul.f32 %v1709_v60, %v1709_v60  ;;  %v1883_v60 = vmul.f32 %v1755_v38, %v1755_v38 }
 0x2e6   : > { %v1541_v59 = vmul.f32 0.00390625, %v5527_v33  ;;  %v1852_v25 = vmul.f32 %v1724_v1, %v1724_v1  ;;  %v1824_v1 = vmul.f32 %v1696_v61, %v1696_v61  ;;  %v1711_v56 = vsub.f32 %v1498_v45, %v4581_v23 }
 0x2e7   : > { %v1739_v42 = vsub.f32 %v1526_v31, %v4565_v63  ;;  %v1485_v45 = vmul.f32 0.00390625, %v5548_v22 }
 0x2e8   : > { %v1754_v5 = vsub.f32 %v1541_v59, %v4557_v48  ;;  %v5530_v48 = vld [vmem:[#allocation47_spill] sm:$0xff] }
 0x2e9   : > { %2268 = vperm.xlu0 %3735, %v1849_v49   ;;  %2226 = vperm.xlu1 %3736, %v1835_v54   ;;  %v5528_v54 = vld [vmem:[#allocation17_spill] sm:$0xff]  ;;  %v1867_v34 = vmul.f32 %v1739_v42, %v1739_v42  ;;  %v1512_v58 = vmul.f32 0.00390625, %v5530_v48  ;;  %v5541_v59 = vld [vmem:[#allocation63_spill] sm:$0xff] }
 0x2ea   : > { %v1482_v3 = vmul.f32 0.00390625, %v5528_v54  ;;  %v1882_v11 = vmul.f32 %v1754_v5, %v1754_v5  ;;  %v1839_v5 = vmul.f32 %v1711_v56, %v1711_v56 }
 0x2ec   : > { %v1695_v20 = vsub.f32 %v1482_v3, %v4581_v23 }
 0x2ed   : > { %2271 = vperm.xlu0 %3735, %v1850_v7   ;;  %2313 = vperm.xlu1 %3736, %v1864_v37   ;;  %v1710_v7 = vsub.f32 %v1497_v0, %v4567_v9 }
 0x2ee   : > { %v1823_v18 = vmul.f32 %v1695_v20, %v1695_v20 }
 0x2ef   : > { %v1838_v24 = vmul.f32 %v1710_v7, %v1710_v7  ;;  %v5545_v7 = vld [vmem:[#allocation36_spill] sm:$0xff] }
 0x2f0   : > { %v4714_v57 = vpop.permute.xlu1 %2028  ;;  %v4720_v2 = vpop.permute.xlu0 %2025  ;;  %v1499_v48 = vmul.f32 0.00390625, %v5545_v7 }
 0x2f1   : > { %2316 = vperm.xlu0 %3735, %v1865_v29   ;;  %2229 = vperm.xlu1 %3736, %v1836_v41   ;;  %v1725_v29 = vsub.f32 %v1512_v58, %v4573_v32  ;;  %v1740_v41 = vsub.f32 %v1527_v28, %v4559_v40 }
 0x2f4   : > { %v4722_v43 = vpop.permute.xlu1 %2031 }
 0x2f5   : > { %2274 = vperm.xlu0 %3735, %v1851_v44   ;;  %2319 = vperm.xlu1 %3736, %v1866_v10   ;;  %v1853_v44 = vmul.f32 %v1725_v29, %v1725_v29  ;;  %v1868_v10 = vmul.f32 %v1740_v41, %v1740_v41 }
 0x2f8   : > { %v4728_v6 = vpop.permute.xlu1 %2037  ;;  %v4730_v55 = vpop.permute.xlu0 %2034 }
 0x2f9   : > { %2361 = vperm.xlu0 %3735, %v1880_v50   ;;  %2364 = vperm.xlu1 %3736, %v1881_v51   ;;  %v5538_v50 = vld [vmem:[#allocation50_spill] sm:$0xff] }
 0x2fa   : > { %v1513_v51 = vmul.f32 0.00390625, %v5538_v50  ;;  %v5549_v50 = vld [vmem:[#allocation79_spill] sm:$0xff] }
 0x2fc   : > { %v4736_v12 = vpop.permute.xlu1 %2043  ;;  %v4738_v49 = vpop.permute.xlu0 %2040  ;;  %v1726_v31 = vsub.f32 %v1513_v51, %v4567_v9  ;;  %v1544_v51 = vmul.f32 0.00390625, %v5549_v50 }
 0x2fd   : > { %2232 = vperm.xlu0 %3735, %v1837_v4   ;;  %2277 = vperm.xlu1 %3736, %v1852_v25   ;;  %v1528_v4 = vmul.f32 0.00390625, %v5541_v59  ;;  %v5542_v25 = vld [vmem:[#allocation80_spill] sm:$0xff] }
 0x2fe   : > { %v1543_v42 = vmul.f32 0.00390625, %v5542_v25  ;;  %v1854_v54 = vmul.f32 %v1726_v31, %v1726_v31  ;;  %v1757_v56 = vsub.f32 %v1544_v51, %v4573_v32  ;;  %v1698_v31 = vsub.f32 %v1485_v45, %v4583_v8  ;;  %v5550_v25 = vld [vmem:[#allocation35_spill] sm:$0xff] }
 0x2ff   : > { %v1741_v3 = vsub.f32 %v1528_v4, %v4573_v32  ;;  %v2408_v45 = vlaneseq }
 0x300   : > { %v4744_v37 = vpop.permute.xlu1 %2049  ;;  %v4746_v53 = vpop.permute.xlu0 %2046  ;;  %v1756_v16 = vsub.f32 %v1543_v42, %v4559_v40  ;;  %v5546_v40 = vld [vmem:[#allocation49_spill] sm:$0xff]  ;;  %v1500_v42 = vmul.f32 0.00390625, %v5550_v25 }
 0x301   : > { %2322 = vperm.xlu0 %3735, %v1867_v34   ;;  %2367 = vperm.xlu1 %3736, %v1882_v11   ;;  %v5544_v11 = vld [vmem:[#allocation19_spill] sm:$0xff]  ;;  %v1869_v58 = vmul.f32 %v1741_v3, %v1741_v3  ;;  %v1514_v41 = vmul.f32 0.00390625, %v5546_v40  ;;  %v1885_v3 = vmul.f32 %v1757_v56, %v1757_v56 }
 0x302   : > { %v1484_v20 = vmul.f32 0.00390625, %v5544_v11  ;;  %v1884_v19 = vmul.f32 %v1756_v16, %v1756_v16  ;;  %v1826_v16 = vmul.f32 %v1698_v31, %v1698_v31  ;;  %v1713_v11 = vsub.f32 %v1500_v42, %v4589_v14  ;;  %v5558_v31 = vld [vmem:[#allocation51_spill] sm:$0xff]  ;;  %v5559_v42 = vld [vmem:[#allocation68_spill] sm:$0xff] }
 0x303   : > { %v1516_v25 = vmul.f32 0.00390625, %v5558_v31 }
 0x304   : > { %v4752_v27 = vpop.permute.xlu1 %2055  ;;  %v4754_v36 = vpop.permute.xlu0 %2052  ;;  %v1697_v28 = vsub.f32 %v1484_v20, %v4589_v14 }
 0x305   : > { %5532 = vst [vmem:[#allocation12_spill] sm:$0xff] %v4752_v27  ;;  %2190 = vperm.xlu0 %3735, %v1823_v18   ;;  %2235 = vperm.xlu1 %3736, %v1838_v24   ;;  %v1712_v18 = vsub.f32 %v1499_v48, %v4575_v13  ;;  %v5552_v48 = vld [vmem:[#allocation65_spill] sm:$0xff] }
 0x306   : > { %v1825_v21 = vmul.f32 %v1697_v28, %v1697_v28 }
 0x307   : > { %v1840_v35 = vmul.f32 %v1712_v18, %v1712_v18  ;;  %v1841_v18 = vmul.f32 %v1713_v11, %v1713_v11  ;;  %v1729_v11 = vsub.f32 %v1516_v25, %v4589_v14  ;;  %v5567_v25 = vld [vmem:[#allocation54_spill] sm:$0xff] }
 0x308   : > { %v4760_v52 = vpop.permute.xlu1 %2061  ;;  %v4762_v47 = vpop.permute.xlu0 %2058 }
 0x309   : > { %5535 = vst [vmem:[#allocation14_spill] sm:$0xff] %v4760_v52  ;;  %5536 = vst [vmem:[#allocation13_spill] sm:$0xff] %v4762_v47  ;;  %2280 = vperm.xlu0 %3735, %v1853_v44   ;;  %2325 = vperm.xlu1 %3736, %v1868_v10   ;;  %v1727_v44 = vsub.f32 %v1514_v41, %v4581_v23  ;;  %v1742_v10 = vsub.f32 %v1529_v46, %v4567_v9 }
 0x30c   : > { %v4768_v33 = vpop.permute.xlu1 %2067  ;;  %v4770_v63 = vpop.permute.xlu0 %2064 }
 0x30d   : > { %5539 = vst [vmem:[#allocation16_spill] sm:$0xff] %v4768_v33  ;;  %5540 = vst [vmem:[#allocation15_spill] sm:$0xff] %v4770_v63  ;;  %2370 = vperm.xlu0 %3735, %v1883_v60   ;;  %2193 = vperm.xlu1 %3736, %v1824_v1   ;;  %v1855_v60 = vmul.f32 %v1727_v44, %v1727_v44  ;;  %v1870_v1 = vmul.f32 %v1742_v10, %v1742_v10  ;;  %v5555_v10 = vld [vmem:[#allocation38_spill] sm:$0xff] }
 0x30e   : > { %v1501_v22 = vmul.f32 0.00390625, %v5555_v10 }
 0x310   : > { %v4776_v0 = vpop.permute.xlu1 %2073  ;;  %v4778_v34 = vpop.permute.xlu0 %2070 }
 0x311   : > { %5543 = vst [vmem:[#allocation18_spill] sm:$0xff] %v4778_v34  ;;  %2238 = vperm.xlu0 %3735, %v1839_v5   ;;  %2283 = vperm.xlu1 %3736, %v1854_v54   ;;  %v5551_v5 = vld [vmem:[#allocation52_spill] sm:$0xff] }
 0x312   : > { %v1515_v54 = vmul.f32 0.00390625, %v5551_v5  ;;  %v1531_v5 = vmul.f32 0.00390625, %v5559_v42  ;;  %v1517_v42 = vmul.f32 0.00390625, %v5567_v25 }
 0x314   : > { %v4784_v24 = vpop.permute.xlu1 %2079  ;;  %v4786_v29 = vpop.permute.xlu0 %2076  ;;  %v1728_v20 = vsub.f32 %v1515_v54, %v4575_v13  ;;  %v4830_v54 = vand.u32 127, %v2408_v45 }
 0x315   : > { %2328 = vperm.xlu0 %3735, %v1869_v58   ;;  %2373 = vperm.xlu1 %3736, %v1884_v19   ;;  %v1530_v58 = vmul.f32 0.00390625, %v5552_v48  ;;  %v5553_v19 = vld [vmem:[#allocation82_spill] sm:$0xff] }
 0x316   : > { %v1545_v28 = vmul.f32 0.00390625, %v5553_v19  ;;  %v1856_v40 = vmul.f32 %v1728_v20, %v1728_v20  ;;  %5560 = vst [vmem:[#allocation30_spill] sm:$0xff] %v4830_v54  ;;  %v1744_v20 = vsub.f32 %v1531_v5, %v4575_v13  ;;  %v5563_v19 = vld [vmem:[#allocation24_spill] sm:$0xff]  ;;  %v5568_v5 = vld [vmem:[#allocation23_spill] sm:$0xff] }
 0x317   : > { %v1743_v41 = vsub.f32 %v1530_v58, %v4581_v23 }
 0x318   : > { %v4792_v38 = vpop.permute.xlu1 %2085  ;;  %v4794_v61 = vpop.permute.xlu0 %2082  ;;  %v1758_v62 = vsub.f32 %v1545_v28, %v4567_v9  ;;  %v1487_v28 = vmul.f32 0.00390625, %v5563_v19 }
 0x319   : > { %2196 = vperm.xlu0 %3735, %v1825_v21   ;;  %2241 = vperm.xlu1 %3736, %v1840_v35   ;;  %v5554_v35 = vld [vmem:[#allocation21_spill] sm:$0xff]  ;;  %v1871_v50 = vmul.f32 %v1743_v41, %v1743_v41  ;;  %v4840_v41 = vshrl.u32 %v2408_v45, 7  ;;  %v2435_v45 = vadd.s32 4294967264, %v4830_v54 }
 0x31a   : > { %v1486_v44 = vmul.f32 0.00390625, %v5554_v35  ;;  %v1886_v51 = vmul.f32 %v1758_v62, %v1758_v62  ;;  %v2414_v62 = vadd.s32 4294967288, %v4830_v54  ;;  %v1857_v35 = vmul.f32 %v1729_v11, %v1729_v11 }
 0x31b   : > { %v1700_v10 = vsub.f32 %v1487_v28, %v4591_v39  ;;  %v2428_v11 = vadd.s32 4294967272, %v4830_v54  ;;  %v1730_v28 = vsub.f32 %v1517_v42, %v4583_v8  ;;  %v4868_v34 = vsub.s32 %v2435_v45, %v4840_v41 }
 0x31c   : > { %v4800_v59 = vpop.permute.xlu1 %2091  ;;  %v4802_v4 = vpop.permute.xlu0 %2088 }
 0x31d   : > { %2286 = vperm.xlu0 %3735, %v1855_v60   ;;  %2331 = vperm.xlu1 %3736, %v1870_v1   ;;  %v1699_v60 = vsub.f32 %v1486_v44, %v4597_v26  ;;  %v1714_v1 = vsub.f32 %v1501_v22, %v4583_v8  ;;  %v1872_v44 = vmul.f32 %v1744_v20, %v1744_v20 }
 0x31e   : > { %v1828_v20 = vmul.f32 %v1700_v10, %v1700_v10  ;;  %v2449_v10 = vadd.s32 4294967248, %v4830_v54  ;;  %v1858_v33 = vmul.f32 %v1730_v28, %v1730_v28 }
 0x320   : > { %v4808_v7 = vpop.permute.xlu1 %2097  ;;  %v4810_v32 = vpop.permute.xlu0 %2094 }
 0x321   : > { %2376 = vperm.xlu0 %3735, %v1885_v3   ;;  %2199 = vperm.xlu1 %3736, %v1826_v16   ;;  %v1827_v3 = vmul.f32 %v1699_v60, %v1699_v60  ;;  %v1842_v16 = vmul.f32 %v1714_v1, %v1714_v1  ;;  %v5566_v1 = vld [vmem:[#allocation37_spill] sm:$0xff] }
 0x322   : > { %v1502_v31 = vmul.f32 0.00390625, %v5566_v1 }
 0x324   : > { %v4816_v46 = vpop.permute.xlu1 %2103  ;;  %v4818_v21 = vpop.permute.xlu0 %2100 }
 0x325   : > { %2244 = vperm.xlu0 %3735, %v1841_v18   ;;  %2289 = vperm.xlu1 %3736, %v1856_v40   ;;  %v5564_v18 = vld [vmem:[#allocation81_spill] sm:$0xff] }
 0x326   : > { %v1546_v40 = vmul.f32 0.00390625, %v5564_v18  ;;  %v1715_v18 = vsub.f32 %v1502_v31, %v4597_v26  ;;  %v4874_v31 = vsub.s32 %v2428_v11, %v4840_v41 }
 0x328   : > { %v4824_v56 = vpop.permute.xlu1 %2109  ;;  %v4826_v9 = vpop.permute.xlu0 %2106  ;;  %v1759_v22 = vsub.f32 %v1546_v40, %v4581_v23  ;;  %v4857_v23 = vsub.s32 %v4830_v54, %v4840_v41  ;;  %v5569_v40 = vld [vmem:[#allocation67_spill] sm:$0xff] }
 0x329   : > { %5556 = vst [vmem:[#allocation27_spill] sm:$0xff] %v4824_v56  ;;  %5557 = vst [vmem:[#allocation28_spill] sm:$0xff] %v4826_v9  ;;  %2334 = vperm.xlu0 %3735, %v1871_v50   ;;  %2379 = vperm.xlu1 %3736, %v1886_v51   ;;  %v2421_v50 = vadd.s32 4294967280, %v4830_v54 }
 0x32a   : > { %v1887_v19 = vmul.f32 %v1759_v22, %v1759_v22 }
 0x32c   : > { %v4834_v48 = vpop.permute.xlu1 %2115  ;;  %v4836_v58 = vpop.permute.xlu0 %2112 }
 0x32d   : > { %5561 = vst [vmem:[#allocation44_spill] sm:$0xff] %v4834_v48  ;;  %5562 = vst [vmem:[#allocation29_spill] sm:$0xff] %v4836_v58  ;;  %2202 = vperm.xlu0 %3735, %v1827_v3   ;;  %2247 = vperm.xlu1 %3736, %v1842_v16   ;;  %v1488_v3 = vmul.f32 0.00390625, %v5568_v5  ;;  %v4853_v16 = vsub.s32 %v2414_v62, %v4840_v41  ;;  %v4865_v62 = vsub.s32 %v2421_v50, %v4840_v41 }
 0x330   : > { %v2122_v51 = vpop.permute.xlu1 %2121  ;;  %v4846_v60 = vpop.permute.xlu0 %2118 }
 0x331   : > { %5565 = vst [vmem:[#allocation43_spill] sm:$0xff] %v4846_v60  ;;  %2292 = vperm.xlu0 %3735, %v1857_v35   ;;  %2337 = vperm.xlu1 %3736, %v1872_v44   ;;  %v1532_v35 = vmul.f32 0.00390625, %v5569_v40  ;;  %v5570_v44 = vld [vmem:[#allocation84_spill] sm:$0xff]  ;;  %v2601_v22 = vrot.slane %v2122_v51, %v4857_v23  ;;  %v2442_v40 = vadd.s32 4294967256, %v4830_v54  ;;  %v1843_v60 = vmul.f32 %v1715_v18, %v1715_v18 }
 0x332   : > { %v1547_v1 = vmul.f32 0.00390625, %v5570_v44  ;;  %v5571_v51 = vld [vmem:[#allocation40_spill] sm:$0xff]  ;;  %v2456_v18 = vadd.s32 4294967240, %v4830_v54 }
 0x333   : > { %v1745_v48 = vsub.f32 %v1532_v35, %v4589_v14  ;;  %v1503_v63 = vmul.f32 0.00390625, %v5571_v51  ;;  %v4889_v28 = vsub.s32 %v2442_v40, %v4840_v41  ;;  %v1701_v51 = vsub.f32 %v1488_v3, %v4605_v30 }
 0x334   : > { %v2128_v25 = vpop.permute.xlu1 %2127  ;;  %v2125_v5 = vpop.permute.xlu0 %2124  ;;  %v1760_v44 = vsub.f32 %v1547_v1, %v4575_v13  ;;  %v2477_v3 = vadd.s32 4294967216, %v4830_v54 }
 0x335   : > { %v2605_v42 = vrot.slane %v2125_v5, %v4853_v16  ;;  %2205 = vperm.xlu1 %3736, %v1828_v20   ;;  %2382 = vperm.xlu0 %3735, %v1887_v19   ;;  %v2610_v50 = vrot.slane %v2128_v25, %v4865_v62  ;;  %v4883_v19 = vsub.s32 %v2449_v10, %v4840_v41  ;;  %v2463_v25 = vadd.s32 4294967232, %v4830_v54 }
 0x336   : > { %v1716_v5 = vsub.f32 %v1503_v63, %v4591_v39 }
 0x337   : > { %v2606_v45 = vsel %vm2419_vm0, %v2605_v42, %v2601_v22  ;;  %v1888_v22 = vmul.f32 %v1760_v44, %v1760_v44  ;;  %v1873_v42 = vmul.f32 %v1745_v48, %v1745_v48  ;;  %v4900_v56 = vsub.s32 %v2463_v25, %v4840_v41 }
 0x338   : > { %v2134_v20 = vpop.permute.xlu1 %2133  ;;  %v2131_v11 = vpop.permute.xlu0 %2130  ;;  %v2611_v35 = vsel %vm2426_vm1, %v2610_v50, %v2606_v45  ;;  %v4905_v48 = vsub.s32 %v2456_v18, %v4840_v41  ;;  %v2470_v44 = vadd.s32 4294967224, %v4830_v54  ;;  %v1844_v45 = vmul.f32 %v1716_v5, %v1716_v5 }
 0x339   : > { %v2620_v13 = vrot.slane %v2134_v20, %v4868_v34  ;;  %v2615_v1 = vrot.slane %v2131_v11, %v4874_v31  ;;  %2295 = vperm.xlu1 %3736, %v1858_v33   ;;  %2250 = vperm.xlu0 %3735, %v1843_v60   ;;  %v5572_v20 = vld [vmem:[#allocation53_spill] sm:$0xff]  ;;  %v5573_v11 = vld [vmem:[#allocation70_spill] sm:$0xff] }
 0x33a   : > { %v1518_v52 = vmul.f32 0.00390625, %v5572_v20  ;;  %v1533_v33 = vmul.f32 0.00390625, %v5573_v11 }
 0x33b   : > { %v2616_v10 = vsel %vm2433_vm2, %v2615_v1, %v2611_v35  ;;  %v1829_v1 = vmul.f32 %v1701_v51, %v1701_v51 }
 0x33c   : > { %v2140_v60 = vpop.permute.xlu1 %2139  ;;  %v2621_v40 = vsel %vm2440_vm3, %v2620_v13, %v2616_v10  ;;  %v2137_v58 = vpop.permute.xlu0 %2136  ;;  %v1746_v25 = vsub.f32 %v1533_v33, %v4583_v8  ;;  %v1731_v35 = vsub.f32 %v1518_v52, %v4597_v26  ;;  %v5574_v10 = vld [vmem:[#allocation26_spill] sm:$0xff]  ;;  %v4919_v52 = vsub.s32 %v2477_v3, %v4840_v41 }
 0x33d   : > { %v2630_v63 = vrot.slane %v2140_v60, %v4883_v19  ;;  %v2625_v50 = vrot.slane %v2137_v58, %v4889_v28  ;;  %2385 = vperm.xlu1 %3736, %v1888_v22   ;;  %2340 = vperm.xlu0 %3735, %v1873_v42   ;;  %v1489_v20 = vmul.f32 0.00390625, %v5574_v10  ;;  %v5575_v58 = vld [vmem:[#allocation83_spill] sm:$0xff]  ;;  %v2491_v60 = vadd.s32 4294967200, %v4830_v54 }
 0x33e   : > { %v1548_v22 = vmul.f32 0.00390625, %v5575_v58  ;;  %v4922_v33 = vsub.s32 %v2470_v44, %v4840_v41  ;;  %v1859_v10 = vmul.f32 %v1731_v35, %v1731_v35  ;;  %v2505_v35 = vadd.s32 4294967184, %v4830_v54 }
 0x33f   : > { %v2626_v13 = vsel %vm2447_vm4, %v2625_v50, %v2621_v40  ;;  %v2484_v40 = vadd.s32 4294967208, %v4830_v54  ;;  %v4932_v27 = vsub.s32 %v2491_v60, %v4840_v41 }
 0x340   : > { %v2146_v42 = vpop.permute.xlu1 %2145  ;;  %v2631_v18 = vsel %vm2454_vm5, %v2630_v63, %v2626_v13  ;;  %v2143_v11 = vpop.permute.xlu0 %2142  ;;  %v1702_v63 = vsub.f32 %v1489_v20, %v4599_v17  ;;  %v1874_v13 = vmul.f32 %v1746_v25, %v1746_v25  ;;  %v1761_v58 = vsub.f32 %v1548_v22, %v4589_v14 }
 0x341   : > { %v2640_v5 = vrot.slane %v2146_v42, %v4900_v56  ;;  %v2635_v51 = vrot.slane %v2143_v11, %v4905_v48  ;;  %2253 = vperm.xlu1 %3736, %v1844_v45   ;;  %2208 = vperm.xlu0 %3735, %v1829_v1   ;;  %v5576_v42 = vld [vmem:[#allocation39_spill] sm:$0xff]  ;;  %v5577_v45 = vld [vmem:[#allocation56_spill] sm:$0xff]  ;;  %5578 = vst [vmem:[#allocation46_spill] sm:$0xff] %v4932_v27  ;;  %v2498_v22 = vadd.s32 4294967192, %v4830_v54 }
 0x342   : > { %v1504_v11 = vmul.f32 0.00390625, %v5576_v42  ;;  %v1519_v1 = vmul.f32 0.00390625, %v5577_v45  ;;  %v4937_v14 = vsub.s32 %v2484_v40, %v4840_v41  ;;  %v1830_v60 = vmul.f32 %v1702_v63, %v1702_v63  ;;  %v5579_v42 = vld [vmem:[#allocation69_spill] sm:$0xff] }
 0x343   : > { %v2636_v50 = vsel %vm2461_vm6, %v2635_v51, %v2631_v18  ;;  %v1889_v51 = vmul.f32 %v1761_v58, %v1761_v58  ;;  %v1534_v45 = vmul.f32 0.00390625, %v5579_v42  ;;  %v4953_v63 = vsub.s32 %v2498_v22, %v4840_v41 }
 0x344   : > { %v2152_v3 = vpop.permute.xlu1 %2151  ;;  %v2641_v47 = vsel %vm2468_vm7, %v2640_v5, %v2636_v50  ;;  %v2149_v44 = vpop.permute.xlu0 %2148  ;;  %v1732_v18 = vsub.f32 %v1519_v1, %v4591_v39  ;;  %v1717_v50 = vsub.f32 %v1504_v11, %v4605_v30  ;;  %v2512_v58 = vadd.s32 4294967176, %v4830_v54 }
 0x345   : > { %v2650_v20 = vrot.slane %v2152_v3, %v4919_v52  ;;  %v2645_v25 = vrot.slane %v2149_v44, %v4922_v33  ;;  %2343 = vperm.xlu1 %3736, %v1874_v13   ;;  %2298 = vperm.xlu0 %3735, %v1859_v10   ;;  %v5580_v3 = vld [vmem:[#allocation86_spill] sm:$0xff]  ;;  %v1747_v42 = vsub.f32 %v1534_v45, %v4597_v26 }
 0x346   : > { %v1549_v13 = vmul.f32 0.00390625, %v5580_v3 }
 0x347   : > { %v2646_v5 = vsel %vm2475_vm8, %v2645_v25, %v2641_v47  ;;  %v4950_v47 = vsub.s32 %v2505_v35, %v4840_v41  ;;  %v1860_v25 = vmul.f32 %v1732_v18, %v1732_v18 }
 0x348   : > { %v2158_v10 = vpop.permute.xlu1 %2157  ;;  %v2651_v40 = vsel %vm2482_vm9, %v2650_v20, %v2646_v5  ;;  %v2155_v44 = vpop.permute.xlu0 %2154  ;;  %v1762_v11 = vsub.f32 %v1549_v13, %v4583_v8  ;;  %v1845_v5 = vmul.f32 %v1717_v50, %v1717_v50  ;;  %v4965_v8 = vsub.s32 %v2512_v58, %v4840_v41 }
 0x349   : > { %v2660_v9 = vrot.slane %v2158_v10, %v4932_v27  ;;  %v2655_v1 = vrot.slane %v2155_v44, %v4937_v14  ;;  %2211 = vperm.xlu1 %3736, %v1830_v60   ;;  %2388 = vperm.xlu0 %3735, %v1889_v51   ;;  %v5581_v10 = vld [vmem:[#allocation25_spill] sm:$0xff]  ;;  %v5582_v44 = vld [vmem:[#allocation42_spill] sm:$0xff] }
 0x34a   : > { %v1490_v35 = vmul.f32 0.00390625, %v5581_v10  ;;  %v1505_v27 = vmul.f32 0.00390625, %v5582_v44  ;;  %v1890_v18 = vmul.f32 %v1762_v11, %v1762_v11 }
 0x34b   : > { %v2656_v20 = vsel %vm2489_vm10, %v2655_v1, %v2651_v40  ;;  %v5583_v40 = vld [vmem:[#allocation72_spill] sm:$0xff] }
 0x34c   : > { %v2164_v3 = vpop.permute.xlu1 %2163  ;;  %v2661_v60 = vsel %vm2496_vm11, %v2660_v9, %v2656_v20  ;;  %v2161_v51 = vpop.permute.xlu0 %2160  ;;  %v1875_v9 = vmul.f32 %v1747_v42, %v1747_v42  ;;  %v1718_v45 = vsub.f32 %v1505_v27, %v4599_v17  ;;  %v1703_v13 = vsub.f32 %v1490_v35, %v4611_v15  ;;  %v5585_v42 = vld [vmem:[#allocation41_spill] sm:$0xff] }
 0x34d   : > { %v2670_v22 = vrot.slane %v2164_v3, %v4950_v47  ;;  %v2665_v54 = vrot.slane %v2161_v51, %v4953_v63  ;;  %2301 = vperm.xlu1 %3736, %v1860_v25   ;;  %2256 = vperm.xlu0 %3735, %v1845_v5   ;;  %v1535_v1 = vmul.f32 0.00390625, %v5583_v40  ;;  %v5584_v5 = vld [vmem:[#allocation55_spill] sm:$0xff] }
 0x34e   : > { %v1520_v51 = vmul.f32 0.00390625, %v5584_v5  ;;  %v1846_v27 = vmul.f32 %v1718_v45, %v1718_v45  ;;  %v1831_v58 = vmul.f32 %v1703_v13, %v1703_v13  ;;  %v5587_v5 = vld [vmem:[#allocation71_spill] sm:$0xff] }
 0x34f   : > { %v2666_v50 = vsel %vm2503_vm12, %v2665_v54, %v2661_v60  ;;  %v1748_v54 = vsub.f32 %v1535_v1, %v4591_v39  ;;  %v1506_v60 = vmul.f32 0.00390625, %v5585_v42 }
 0x350   : > { %v2170_v20 = vpop.permute.xlu1 %2169  ;;  %v2671_v3 = vsel %vm2510_vm13, %v2670_v22, %v2666_v50  ;;  %v2167_v25 = vpop.permute.xlu0 %2166  ;;  %v1733_v11 = vsub.f32 %v1520_v51, %v4605_v30  ;;  %v5586_v22 = vld [vmem:[#allocation85_spill] sm:$0xff]  ;;  %v1536_v51 = vmul.f32 0.00390625, %v5587_v5  ;;  %v5590_v5 = vld [vmem:[#allocation88_spill] sm:$0xff] }
 0x351   : > { %v2675_v10 = vrot.slane %v2167_v25, %v4965_v8  ;;  %2391 = vperm.xlu1 %3736, %v1890_v18   ;;  %2346 = vperm.xlu0 %3735, %v1875_v9   ;;  %v1550_v50 = vmul.f32 0.00390625, %v5586_v22  ;;  %v2680_v40 = vrot.slane %v2170_v20, %v4857_v23  ;;  %v1719_v1 = vsub.f32 %v1506_v60, %v4611_v15  ;;  %v5588_v22 = vld [vmem:[#allocation58_spill] sm:$0xff] }
 0x352   : > { %v1876_v13 = vmul.f32 %v1748_v54, %v1748_v54 }
 0x353   : > { %v4976_v41 = vsel %vm2517_vm14, %v2675_v10, %v2671_v3  ;;  %v1861_v3 = vmul.f32 %v1733_v11, %v1733_v11  ;;  %v1763_v25 = vsub.f32 %v1550_v50, %v4597_v26  ;;  %v1847_v11 = vmul.f32 %v1719_v1, %v1719_v1 }
 0x354   : > { %v2176_v35 = vpop.permute.xlu1 %2175  ;;  %v2173_v44 = vpop.permute.xlu0 %2172 }
 0x355   : > { %v2689_v18 = vrot.slane %v2176_v35, %v4865_v62  ;;  %v2684_v9 = vrot.slane %v2173_v44, %v4853_v16  ;;  %2259 = vperm.xlu1 %3736, %v1846_v27   ;;  %2214 = vperm.xlu0 %3735, %v1831_v58   ;;  %v1521_v35 = vmul.f32 0.00390625, %v5588_v22  ;;  %v1749_v58 = vsub.f32 %v1536_v51, %v4605_v30  ;;  %v5591_v22 = vld [vmem:[#allocation87_spill] sm:$0xff] }
 0x356   : > { %v1891_v26 = vmul.f32 %v1763_v25, %v1763_v25 }
 0x357   : > { %v2685_v45 = vsel %vm2419_vm0, %v2684_v9, %v2680_v40  ;;  %v1734_v60 = vsub.f32 %v1521_v35, %v4599_v17  ;;  %v5589_v9 = vld [vmem:[#allocation57_spill] sm:$0xff]  ;;  %v1552_v35 = vmul.f32 0.00390625, %v5591_v22 }
 0x358   : > { %v2182_v10 = vpop.permute.xlu1 %2181  ;;  %v2690_v42 = vsel %vm2426_vm1, %v2689_v18, %v2685_v45  ;;  %v2179_v20 = vpop.permute.xlu0 %2178  ;;  %v1522_v45 = vmul.f32 0.00390625, %v5589_v9 }
 0x359   : > { %v2699_v44 = vrot.slane %v2182_v10, %v4868_v34  ;;  %v2694_v27 = vrot.slane %v2179_v20, %v4874_v31  ;;  %2349 = vperm.xlu1 %3736, %v1876_v13   ;;  %2304 = vperm.xlu0 %3735, %v1861_v3   ;;  %v1551_v10 = vmul.f32 0.00390625, %v5590_v5  ;;  %v1877_v3 = vmul.f32 %v1749_v58, %v1749_v58 }
 0x35a   : > { %v1862_v25 = vmul.f32 %v1734_v60, %v1734_v60  ;;  %v1735_v51 = vsub.f32 %v1522_v45, %v4611_v15  ;;  %v5593_v45 = vld [vmem:[#allocation90_spill] sm:$0xff] }
 0x35b   : > { %v2695_v54 = vsel %vm2433_vm2, %v2694_v27, %v2690_v42  ;;  %v1764_v42 = vsub.f32 %v1551_v10, %v4591_v39  ;;  %v1553_v5 = vmul.f32 0.00390625, %v5593_v45 }
 0x35c   : > { %v2188_v50 = vpop.permute.xlu1 %2187  ;;  %v2700_v40 = vsel %vm2440_vm3, %v2699_v44, %v2695_v54  ;;  %v2185_v18 = vpop.permute.xlu0 %2184  ;;  %v1863_v39 = vmul.f32 %v1735_v51, %v1735_v51 }
 0x35d   : > { %v2709_v20 = vrot.slane %v2188_v50, %v4883_v19  ;;  %v2704_v13 = vrot.slane %v2185_v18, %v4889_v28  ;;  %2262 = vperm.xlu1 %3736, %v1847_v11   ;;  %2394 = vperm.xlu0 %3735, %v1891_v26   ;;  %v5592_v50 = vld [vmem:[#allocation74_spill] sm:$0xff]  ;;  %v1765_v26 = vsub.f32 %v1552_v35, %v4605_v30 }
 0x35e   : > { %v1537_v9 = vmul.f32 0.00390625, %v5592_v50 }
 0x35f   : > { %v2705_v1 = vsel %vm2447_vm4, %v2704_v13, %v2700_v40  ;;  %v1892_v40 = vmul.f32 %v1764_v42, %v1764_v42  ;;  %v5594_v13 = vld [vmem:[#allocation73_spill] sm:$0xff] }
 0x360   : > { %v2221_v44 = vpop.permute.xlu1 %2220  ;;  %v2218_v27 = vpop.permute.xlu0 %2217  ;;  %v5005_v54 = vsel %vm2454_vm5, %v2709_v20, %v2705_v1  ;;  %v1750_v18 = vsub.f32 %v1537_v9, %v4599_v17  ;;  %v1538_v1 = vmul.f32 0.00390625, %v5594_v13  ;;  %v5595_v42 = vld [vmem:[#allocation89_spill] sm:$0xff] }
 0x361   : > { %v2763_v11 = vrot.slane %v2221_v44, %v4853_v16  ;;  %v2759_v58 = vrot.slane %v2218_v27, %v4857_v23  ;;  %2352 = vperm.xlu1 %3736, %v1877_v3   ;;  %2307 = vperm.xlu0 %3735, %v1862_v25   ;;  %v1766_v3 = vsub.f32 %v1553_v5, %v4599_v17  ;;  %v1554_v44 = vmul.f32 0.00390625, %v5595_v42 }
 0x362   : > { %v1893_v25 = vmul.f32 %v1765_v26, %v1765_v26  ;;  %v1878_v35 = vmul.f32 %v1750_v18, %v1750_v18  ;;  %v1751_v51 = vsub.f32 %v1538_v1, %v4611_v15 }
 0x363   : > { %v2764_v60 = vsel %vm2419_vm0, %v2763_v11, %v2759_v58  ;;  %v1767_v17 = vsub.f32 %v1554_v44, %v4611_v15 }
 0x364   : > { %v2266_v10 = vpop.permute.xlu1 %2265  ;;  %v2224_v20 = vpop.permute.xlu0 %2223 }
 0x365   : > { %v2768_v22 = vrot.slane %v2224_v20, %v4865_v62  ;;  %2310 = vperm.xlu1 %3736, %v1863_v39   ;;  %2397 = vperm.xlu0 %3735, %v1892_v40   ;;  %v2838_v9 = vrot.slane %v2266_v10, %v4857_v23  ;;  %v1894_v39 = vmul.f32 %v1766_v3, %v1766_v3 }
 0x366   : > { %v1879_v40 = vmul.f32 %v1751_v51, %v1751_v51  ;;  %v1895_v20 = vmul.f32 %v1767_v17, %v1767_v17 }
 0x367   : > { %v2769_v30 = vsel %vm2426_vm1, %v2768_v22, %v2764_v60 }
 0x368   : > { %v2227_v27 = vpop.permute.xlu1 %2226  ;;  %v2269_v50 = vpop.permute.xlu0 %2268 }
 0x369   : > { %v2773_v11 = vrot.slane %v2227_v27, %v4874_v31  ;;  %v2842_v58 = vrot.slane %v2269_v50, %v4853_v16  ;;  %2400 = vperm.xlu1 %3736, %v1893_v25   ;;  %2355 = vperm.xlu0 %3735, %v1878_v35  }
 0x36b   : > { %v2774_v60 = vsel %vm2433_vm2, %v2773_v11, %v2769_v30  ;;  %v2843_v26 = vsel %vm2419_vm0, %v2842_v58, %v2838_v9 }
 0x36c   : > { %v2314_v18 = vpop.permute.xlu1 %2313  ;;  %v2272_v45 = vpop.permute.xlu0 %2271 }
 0x36d   : > { %v2847_v5 = vrot.slane %v2272_v45, %v4865_v62  ;;  %2403 = vperm.xlu1 %3736, %v1894_v39   ;;  %2358 = vperm.xlu0 %3735, %v1879_v40   ;;  %v2917_v22 = vrot.slane %v2314_v18, %v4857_v23 }
 0x36f   : > { %v2848_v10 = vsel %vm2426_vm1, %v2847_v5, %v2843_v26 }
 0x370   : > { %v2230_v13 = vpop.permute.xlu1 %2229  ;;  %v2317_v1 = vpop.permute.xlu0 %2316 }
 0x371   : > { %v2778_v15 = vrot.slane %v2230_v13, %v4868_v34  ;;  %v2921_v30 = vrot.slane %v2317_v1, %v4853_v16  ;;  %2406 = vperm.xlu0 %3735, %v1895_v20  }
 0x373   : > { %v2779_v3 = vsel %vm2440_vm3, %v2778_v15, %v2774_v60  ;;  %v2922_v25 = vsel %vm2419_vm0, %v2921_v30, %v2917_v22 }
 0x374   : > { %v2320_v35 = vpop.permute.xlu1 %2319  ;;  %v2275_v51 = vpop.permute.xlu0 %2274 }
 0x375   : > { %v2926_v42 = vrot.slane %v2320_v35, %v4865_v62  ;;  %v2852_v44 = vrot.slane %v2275_v51, %v4874_v31 }
 0x377   : > { %v2927_v27 = vsel %vm2426_vm1, %v2926_v42, %v2922_v25  ;;  %v2853_v50 = vsel %vm2433_vm2, %v2852_v44, %v2848_v10 }
 0x378   : > { %v2365_v9 = vpop.permute.xlu1 %2364  ;;  %v2362_v11 = vpop.permute.xlu0 %2361 }
 0x379   : > { %v3000_v58 = vrot.slane %v2365_v9, %v4853_v16  ;;  %v2996_v17 = vrot.slane %v2362_v11, %v4857_v23 }
 0x37b   : > { %v3001_v60 = vsel %vm2419_vm0, %v3000_v58, %v2996_v17 }
 0x37c   : > { %v2278_v26 = vpop.permute.xlu1 %2277  ;;  %v2233_v39 = vpop.permute.xlu0 %2232 }
 0x37d   : > { %v2857_v40 = vrot.slane %v2278_v26, %v4868_v34  ;;  %v2783_v18 = vrot.slane %v2233_v39, %v4889_v28 }
 0x37f   : > { %v2858_v45 = vsel %vm2440_vm3, %v2857_v40, %v2853_v50  ;;  %v2784_v5 = vsel %vm2447_vm4, %v2783_v18, %v2779_v3 }
 0x380   : > { %v2368_v20 = vpop.permute.xlu1 %2367  ;;  %v2323_v10 = vpop.permute.xlu0 %2322 }
 0x381   : > { %v3005_v13 = vrot.slane %v2368_v20, %v4865_v62  ;;  %v2931_v1 = vrot.slane %v2323_v10, %v4874_v31 }
 0x383   : > { %v3006_v22 = vsel %vm2426_vm1, %v3005_v13, %v3001_v60  ;;  %v2932_v15 = vsel %vm2433_vm2, %v2931_v1, %v2927_v27 }
 0x384   : > { %v2236_v30 = vpop.permute.xlu1 %2235  ;;  %v2191_v25 = vpop.permute.xlu0 %2190 }
 0x385   : > { %v2788_v35 = vrot.slane %v2236_v30, %v4883_v19  ;;  %v2714_v51 = vrot.slane %v2191_v25, %v4905_v48 }
 0x387   : > { %v2789_v42 = vsel %vm2454_vm5, %v2788_v35, %v2784_v5  ;;  %v2715_v3 = vsel %vm2461_vm6, %v2714_v51, %v5005_v54 }
 0x388   : > { %v2326_v44 = vpop.permute.xlu1 %2325  ;;  %v2281_v50 = vpop.permute.xlu0 %2280 }
 0x389   : > { %v2936_v9 = vrot.slane %v2326_v44, %v4868_v34  ;;  %v2862_v11 = vrot.slane %v2281_v50, %v4889_v28 }
 0x38b   : > { %v2937_v58 = vsel %vm2440_vm3, %v2936_v9, %v2932_v15  ;;  %v2863_v27 = vsel %vm2447_vm4, %v2862_v11, %v2858_v45 }
 0x38c   : > { %v2194_v17 = vpop.permute.xlu1 %2193  ;;  %v2371_v60 = vpop.permute.xlu0 %2370 }
 0x38d   : > { %v2719_v26 = vrot.slane %v2194_v17, %v4900_v56  ;;  %v3010_v39 = vrot.slane %v2371_v60, %v4874_v31 }
 0x38f   : > { %v2720_v40 = vsel %vm2468_vm7, %v2719_v26, %v2715_v3  ;;  %v3011_v54 = vsel %vm2433_vm2, %v3010_v39, %v3006_v22 }
 0x390   : > { %v2284_v18 = vpop.permute.xlu1 %2283  ;;  %v2239_v5 = vpop.permute.xlu0 %2238 }
 0x391   : > { %v2867_v20 = vrot.slane %v2284_v18, %v4883_v19  ;;  %v2793_v10 = vrot.slane %v2239_v5, %v4905_v48 }
 0x393   : > { %v2868_v13 = vsel %vm2454_vm5, %v2867_v20, %v2863_v27  ;;  %v2794_v45 = vsel %vm2461_vm6, %v2793_v10, %v2789_v42 }
 0x394   : > { %v2374_v1 = vpop.permute.xlu1 %2373  ;;  %v2329_v15 = vpop.permute.xlu0 %2328 }
 0x395   : > { %v3015_v30 = vrot.slane %v2374_v1, %v4868_v34  ;;  %v2941_v25 = vrot.slane %v2329_v15, %v4889_v28 }
 0x397   : > { %v3016_v35 = vsel %vm2440_vm3, %v3015_v30, %v3011_v54  ;;  %v2942_v22 = vsel %vm2447_vm4, %v2941_v25, %v2937_v58 }
 0x398   : > { %v2242_v51 = vpop.permute.xlu1 %2241  ;;  %v2197_v3 = vpop.permute.xlu0 %2196 }
 0x399   : > { %v2798_v44 = vrot.slane %v2242_v51, %v4900_v56  ;;  %v2724_v50 = vrot.slane %v2197_v3, %v4922_v33 }
 0x39b   : > { %v2799_v9 = vsel %vm2468_vm7, %v2798_v44, %v2794_v45  ;;  %v2725_v42 = vsel %vm2475_vm8, %v2724_v50, %v2720_v40  ;;  %v2526_v50 = vrot.slane %v4786_v29, %v4853_v16  ;;  %v2536_v29 = vrot.slane %v4794_v61, %v4874_v31 }
 0x39c   : > { %v2332_v11 = vpop.permute.xlu1 %2331  ;;  %v2287_v27 = vpop.permute.xlu0 %2286  ;;  %v2546_v61 = vrot.slane %v4802_v4, %v4889_v28 }
 0x39d   : > { %v2946_v17 = vrot.slane %v2332_v11, %v4883_v19  ;;  %v2872_v60 = vrot.slane %v2287_v27, %v4905_v48  ;;  %v2531_v27 = vrot.slane %v4784_v24, %v4865_v62  ;;  %v2432_v24 = vrot.slane %v4730_v55, %v4874_v31 }
 0x39e   : > { %v2446_v31 = vrot.slane %v4738_v49, %v4889_v28 }
 0x39f   : > { %v5076_v26 = vsel %vm2454_vm5, %v2946_v17, %v2942_v22  ;;  %v2873_v58 = vsel %vm2461_vm6, %v2872_v60, %v2868_v13  ;;  %v2418_v17 = vrot.slane %v4714_v57, %v4853_v16  ;;  %v2413_v60 = vrot.slane %v4720_v2, %v4857_v23 }
 0x3a0   : > { %v2200_v39 = vpop.permute.xlu1 %2199  ;;  %v2377_v54 = vpop.permute.xlu0 %2376  ;;  %v2541_v57 = vrot.slane %v4792_v38, %v4868_v34 }
 0x3a1   : > { %v2729_v18 = vrot.slane %v2200_v39, %v4919_v52  ;;  %v3020_v5 = vrot.slane %v2377_v54, %v4889_v28  ;;  %v2425_v39 = vrot.slane %v4722_v43, %v4865_v62  ;;  %v2420_v16 = vsel %vm2419_vm0, %v2418_v17, %v2413_v60 }
 0x3a2   : > { %v2439_v62 = vrot.slane %v4728_v6, %v4868_v34  ;;  %v2453_v6 = vrot.slane %v4736_v12, %v4883_v19  ;;  %v2561_v28 = vrot.slane %v4808_v7, %v4900_v56  ;;  %v2566_v12 = vrot.slane %v4818_v21, %v4922_v33 }
 0x3a3   : > { %v5082_v20 = vsel %vm2482_vm9, %v2729_v18, %v2725_v42  ;;  %v5085_v40 = vsel %vm2447_vm4, %v3020_v5, %v3016_v35  ;;  %v2427_v43 = vsel %vm2426_vm1, %v2425_v39, %v2420_v16  ;;  %v2551_v5 = vrot.slane %v4800_v59, %v4883_v19 }
 0x3a4   : > { %v2290_v10 = vpop.permute.xlu1 %2289  ;;  %v2245_v45 = vpop.permute.xlu0 %2244  ;;  %v2434_v38 = vsel %vm2433_vm2, %v2432_v24, %v2427_v43  ;;  %v2460_v59 = vrot.slane %v4746_v53, %v4905_v48  ;;  %v2474_v7 = vrot.slane %v4754_v36, %v4922_v33  ;;  %v5597_v24 = vld [vmem:[#allocation12_spill] sm:$0xff]  ;;  %v5599_v43 = vld [vmem:[#allocation46_spill] sm:$0xff] }
 0x3a5   : > { %v2877_v1 = vrot.slane %v2290_v10, %v4900_v56  ;;  %v2803_v15 = vrot.slane %v2245_v45, %v4922_v33  ;;  %v2556_v45 = vrot.slane %v4810_v32, %v4905_v48  ;;  %v2441_v34 = vsel %vm2440_vm3, %v2439_v62, %v2434_v38  ;;  %v5600_v62 = vld [vmem:[#allocation27_spill] sm:$0xff] }
 0x3a6   : > { %v2448_v49 = vsel %vm2447_vm4, %v2446_v31, %v2441_v34  ;;  %v2581_v38 = vrot.slane %v5600_v62, %v5599_v43 }
 0x3a7   : > { %v5090_v13 = vsel %vm2468_vm7, %v2877_v1, %v2873_v58  ;;  %v5093_v30 = vsel %vm2475_vm8, %v2803_v15, %v2799_v9  ;;  %v2522_v9 = vrot.slane %v4776_v0, %v4857_v23 }
 0x3a8   : > { %v5095_v25 = vpop.permute.xlu1 %2379  ;;  %v5097_v22 = vpop.permute.xlu0 %2334 }
 0x3a9   : > { %v2527_v58 = vsel %vm2419_vm0, %v2526_v50, %v2522_v9  ;;  %v2467_v9 = vrot.slane %v4744_v37, %v4900_v56  ;;  %v5596_v37 = vld [vmem:[#allocation28_spill] sm:$0xff]  ;;  %vm3074_vm0 = vcmask 1042434  }
 0x3aa   : > { %v2532_v2 = vsel %vm2426_vm1, %v2531_v27, %v2527_v58  ;;  %v2455_v27 = vsel %vm2454_vm5, %v2453_v6, %v2448_v49  ;;  %v2571_v58 = vrot.slane %v4816_v46, %v4919_v52  ;;  %v2576_v39 = vrot.slane %v5596_v37, %v4937_v14 }
 0x3ab   : > { %v2537_v23 = vsel %vm2433_vm2, %v2536_v29, %v2532_v2  ;;  %v2462_v53 = vsel %vm2461_vm6, %v2460_v59, %v2455_v27  ;;  %vm3076_vm1 = vcmask 1043459   ;;  %vm3078_vm2 = vcmask 1044484  }
 0x3ac   : > { %v5099_v51 = vpop.permute.xlu1 %2247  ;;  %v5101_v35 = vpop.permute.xlu0 %2202  ;;  %v2542_v10 = vsel %vm2440_vm3, %v2541_v57, %v2537_v23  ;;  %v2481_v57 = vrot.slane %v5597_v24, %v4919_v52  ;;  %v2469_v2 = vsel %vm2468_vm7, %v2467_v9, %v2462_v53  ;;  %vm3080_vm3 = vcmask 1045509  }
 0x3ad   : > { %v2547_v4 = vsel %vm2447_vm4, %v2546_v61, %v2542_v10  ;;  %v2476_v36 = vsel %vm2475_vm8, %v2474_v7, %v2469_v2  ;;  %v5598_v61 = vld [vmem:[#allocation13_spill] sm:$0xff]  ;;  %v5605_v7 = vld [vmem:[#allocation43_spill] sm:$0xff]  ;;  %vm3082_vm4 = vcmask 1046534  }
 0x3ae   : > { %v2552_v50 = vsel %vm2454_vm5, %v2551_v5, %v2547_v4  ;;  %v2488_v46 = vrot.slane %v5598_v61, %v4937_v14  ;;  %v5601_v10 = vld [vmem:[#allocation29_spill] sm:$0xff]  ;;  %v2483_v34 = vsel %vm2482_vm9, %v2481_v57, %v2476_v36  ;;  %v5607_v61 = vld [vmem:[#allocation18_spill] sm:$0xff] }
 0x3af   : > { %v2557_v32 = vsel %vm2461_vm6, %v2556_v45, %v2552_v50  ;;  %v2586_v4 = vrot.slane %v5601_v10, %v4953_v63  ;;  %v5602_v45 = vld [vmem:[#allocation14_spill] sm:$0xff]  ;;  %v5603_v50 = vld [vmem:[#allocation15_spill] sm:$0xff] }
 0x3b0   : > { %v5103_v3 = vpop.permute.xlu1 %2337  ;;  %v5105_v44 = vpop.permute.xlu0 %2292  ;;  %v2562_v29 = vsel %vm2468_vm7, %v2561_v28, %v2557_v32  ;;  %v2495_v6 = vrot.slane %v5602_v45, %v5599_v43  ;;  %v2490_v28 = vsel %vm2489_vm10, %v2488_v46, %v2483_v34  ;;  %v2502_v32 = vrot.slane %v5603_v50, %v4953_v63 }
 0x3b1   : > { %v2567_v21 = vsel %vm2475_vm8, %v2566_v12, %v2562_v29  ;;  %v5604_v12 = vld [vmem:[#allocation44_spill] sm:$0xff]  ;;  %v2734_v29 = vrot.slane %v5101_v35, %v4937_v14  ;;  %v2516_v46 = vrot.slane %v5607_v61, %v4965_v8 }
 0x3b2   : > { %v2572_v31 = vsel %vm2482_vm9, %v2571_v58, %v2567_v21  ;;  %v2591_v9 = vrot.slane %v5604_v12, %v4950_v47  ;;  %v2596_v58 = vrot.slane %v5605_v7, %v4965_v8  ;;  %v5606_v21 = vld [vmem:[#allocation16_spill] sm:$0xff] }
 0x3b3   : > { %v2577_v5 = vsel %vm2489_vm10, %v2576_v39, %v2572_v31  ;;  %v2509_v37 = vrot.slane %v5606_v21, %v4950_v47  ;;  %v2497_v39 = vsel %vm2496_vm11, %v2495_v6, %v2490_v28  ;;  %v2808_v28 = vrot.slane %v5099_v51, %v4919_v52 }
 0x3b4   : > { %v5109_v42 = vpop.permute.xlu1 %2205  ;;  %v5111_v11 = vpop.permute.xlu0 %2382  ;;  %v2582_v27 = vsel %vm2496_vm11, %v2581_v38, %v2577_v5  ;;  %v2504_v36 = vsel %vm2503_vm12, %v2502_v32, %v2497_v39 }
 0x3b5   : > { %v2587_v53 = vsel %vm2503_vm12, %v2586_v4, %v2582_v27  ;;  %v2739_v24 = vrot.slane %v5109_v42, %v5599_v43  ;;  %v2735_v42 = vsel %vm2489_vm10, %v2734_v29, %v5082_v20  ;;  %v2511_v5 = vsel %vm2510_vm13, %v2509_v37, %v2504_v36 }
 0x3b6   : > { %v2592_v35 = vsel %vm2510_vm13, %v2591_v9, %v2587_v53  ;;  %v2518_v6 = vsel %vm2517_vm14, %v2516_v46, %v2511_v5  ;;  %v2809_v51 = vsel %vm2482_vm9, %v2808_v28, %v5093_v30  ;;  %v3030_v28 = vrot.slane %v5111_v11, %v4905_v48 }
 0x3b7   : > { %v2597_v31 = vsel %vm2517_vm14, %v2596_v58, %v2592_v35  ;;  %v2740_v10 = vsel %vm2496_vm11, %v2739_v24, %v2735_v42 }
 0x3b8   : > { %v5126_v54 = vpop.permute.xlu1 %2295  ;;  %v5128_v0 = vpop.permute.xlu0 %2250  ;;  %v3073_v34 = vsel %vm3072_vm15, %v2597_v31, %v2518_v6 }
 0x3b9   : > { %v3075_v50 = vsel %vm3074_vm0, %v4976_v41, %v3073_v34  ;;  %v2813_v32 = vrot.slane %v5128_v0, %v4937_v14  ;;  %v2887_v30 = vrot.slane %v5126_v54, %v4919_v52 }
 0x3bb   : > { %v2814_v41 = vsel %vm2489_vm10, %v2813_v32, %v2809_v51 }
 0x3bc   : > { %v5142_v18 = vpop.permute.xlu1 %2385  ;;  %v5144_v55 = vpop.permute.xlu0 %2340 }
 0x3c0   : > { %v5158_v1 = vpop.permute.xlu1 %2253  ;;  %v2209_v15 = vpop.permute.xlu0 %2208 }
 0x3c1   : > { %v2744_v62 = vrot.slane %v2209_v15, %v4953_v63  ;;  %v2818_v9 = vrot.slane %v5158_v1, %v5599_v43  ;;  %v2882_v1 = vrot.slane %v5105_v44, %v4922_v33 }
 0x3c3   : > { %v2745_v15 = vsel %vm2503_vm12, %v2744_v62, %v2740_v10  ;;  %v2819_v21 = vsel %vm2496_vm11, %v2818_v9, %v2814_v41 }
 0x3c4   : > { %v5172_v17 = vpop.permute.xlu1 %2343  ;;  %v5174_v60 = vpop.permute.xlu0 %2298 }
 0x3c5   : > { %v2892_v36 = vrot.slane %v5174_v60, %v4937_v14  ;;  %v2951_v60 = vrot.slane %v5097_v22, %v4905_v48  ;;  %v3025_v22 = vrot.slane %v5095_v25, %v4883_v19  ;;  %v3035_v19 = vrot.slane %v5142_v18, %v4900_v56 }
 0x3c7   : > { %v2952_v34 = vsel %vm2461_vm6, %v2951_v60, %v5076_v26  ;;  %v3096_v60 = vld [vmem:[%s4087_s12] sm:$0xff] }
 0x3c8   : > { %v2212_v16 = vpop.permute.xlu1 %2211  ;;  %v5188_v23 = vpop.permute.xlu0 %2388 }
 0x3c9   : > { %v2749_v38 = vrot.slane %v2212_v16, %v4950_v47  ;;  %v3040_v48 = vrot.slane %v5188_v23, %v4922_v33 }
 0x3cb   : > { %v2750_v20 = vsel %vm2510_vm13, %v2749_v38, %v2745_v15  ;;  %v2883_v38 = vsel %vm2475_vm8, %v2882_v1, %v5090_v13  ;;  %v2961_v13 = vrot.slane %v5144_v55, %v4922_v33 }
 0x3cc   : > { %v5202_v49 = vpop.permute.xlu1 %2301  ;;  %v2257_v59 = vpop.permute.xlu0 %2256  ;;  %v2888_v54 = vsel %vm2482_vm9, %v2887_v30, %v2883_v38 }
 0x3cd   : > { %v2823_v58 = vrot.slane %v2257_v59, %v4953_v63  ;;  %v2897_v46 = vrot.slane %v5202_v49, %v5599_v43  ;;  %v2893_v5 = vsel %vm2489_vm10, %v2892_v36, %v2888_v54  ;;  %v2956_v49 = vrot.slane %v5103_v3, %v4900_v56 }
 0x3cf   : > { %v2824_v39 = vsel %vm2503_vm12, %v2823_v58, %v2819_v21  ;;  %v2898_v10 = vsel %vm2496_vm11, %v2897_v46, %v2893_v5 }
 0x3d0   : > { %v5220_v57 = vpop.permute.xlu1 %2391  ;;  %v5222_v2 = vpop.permute.xlu0 %2346 }
 0x3d1   : > { %v2971_v55 = vrot.slane %v5222_v2, %v4937_v14  ;;  %v3026_v2 = vsel %vm2454_vm5, %v3025_v22, %v5085_v40  ;;  %v3045_v56 = vrot.slane %v5220_v57, %v4919_v52  ;;  %vm3084_vm5 = vcmask 1047559  }
 0x3d4   : > { %v2260_v4 = vpop.permute.xlu1 %2259  ;;  %v2215_v45 = vpop.permute.xlu0 %2214 }
 0x3d5   : > { %v2754_v16 = vrot.slane %v2215_v45, %v4965_v8  ;;  %v2828_v29 = vrot.slane %v2260_v4, %v4950_v47 }
 0x3d7   : > { %v2755_v12 = vsel %vm2517_vm14, %v2754_v16, %v2750_v20  ;;  %v2829_v24 = vsel %vm2510_vm13, %v2828_v29, %v2824_v39  ;;  %v2966_v16 = vrot.slane %v5172_v17, %v4919_v52 }
 0x3d8   : > { %v3077_v27 = vsel %vm3076_vm1, %v2755_v12, %v3075_v50  ;;  %v2350_v53 = vpop.permute.xlu1 %2349  ;;  %v2305_v7 = vpop.permute.xlu0 %2304  ;;  %v2957_v50 = vsel %vm2468_vm7, %v2956_v49, %v2952_v34 }
 0x3d9   : > { %v2902_v31 = vrot.slane %v2305_v7, %v4953_v63  ;;  %v2976_v25 = vrot.slane %v2350_v53, %v5599_v43  ;;  %v2962_v26 = vsel %vm2475_vm8, %v2961_v13, %v2957_v50 }
 0x3da   : > { %v2967_v9 = vsel %vm2482_vm9, %v2966_v16, %v2962_v26 }
 0x3db   : > { %v2903_v6 = vsel %vm2503_vm12, %v2902_v31, %v2898_v10  ;;  %v2972_v53 = vsel %vm2489_vm10, %v2971_v55, %v2967_v9 }
 0x3dc   : > { %v2263_v0 = vpop.permute.xlu1 %2262  ;;  %v5253_v37 = vpop.permute.xlu0 %2394  ;;  %v2977_v23 = vsel %vm2496_vm11, %v2976_v25, %v2972_v53 }
 0x3dd   : > { %v2833_v59 = vrot.slane %v2263_v0, %v4965_v8  ;;  %v3050_v7 = vrot.slane %v5253_v37, %v4937_v14 }
 0x3df   : > { %v2834_v61 = vsel %vm2517_vm14, %v2833_v59, %v2829_v24 }
 0x3e0   : > { %v3079_v62 = vsel %vm3078_vm2, %v2834_v61, %v3077_v27  ;;  %v2353_v44 = vpop.permute.xlu1 %2352  ;;  %v2308_v35 = vpop.permute.xlu0 %2307  ;;  %v3031_v27 = vsel %vm2461_vm6, %v3030_v28, %v3026_v2  ;;  %vm3103_vm6 = vcmask 7168  }
 0x3e1   : > { %v2907_v42 = vrot.slane %v2308_v35, %v4950_v47  ;;  %v2981_v11 = vrot.slane %v2353_v44, %v4953_v63  ;;  %v3036_v33 = vsel %vm2468_vm7, %v3035_v19, %v3031_v27 }
 0x3e2   : > { %v3041_v52 = vsel %vm2475_vm8, %v3040_v48, %v3036_v33 }
 0x3e3   : > { %v2908_v3 = vsel %vm2510_vm13, %v2907_v42, %v2903_v6  ;;  %v2982_v57 = vsel %vm2503_vm12, %v2981_v11, %v2977_v23  ;;  %v3046_v21 = vsel %vm2482_vm9, %v3045_v56, %v3041_v52  ;;  %v3125_v6 = vsel %vm3103_vm6, %v3096_v60, 0.0 }
 0x3e4   : > { %v2311_v4 = vpop.permute.xlu1 %2310  ;;  %v2398_v45 = vpop.permute.xlu0 %2397 }
 0x3e5   : > { %v2912_v15 = vrot.slane %v2311_v4, %v4965_v8  ;;  %v3055_v40 = vrot.slane %v2398_v45, %v5599_v43  ;;  %v3051_v43 = vsel %vm2489_vm10, %v3050_v7, %v3046_v21 }
 0x3e7   : > { %v2913_v20 = vsel %vm2517_vm14, %v2912_v15, %v2908_v3  ;;  %v3056_v1 = vsel %vm2496_vm11, %v3055_v40, %v3051_v43 }
 0x3e8   : > { %v2401_v17 = vpop.permute.xlu1 %2400  ;;  %v2356_v32 = vpop.permute.xlu0 %2355  ;;  %v3081_v12 = vsel %vm3080_vm3, %v2913_v20, %v3079_v62 }
 0x3e9   : > { %v2986_v18 = vrot.slane %v2356_v32, %v4950_v47  ;;  %v3060_v29 = vrot.slane %v2401_v17, %v4953_v63 }
 0x3eb   : > { %v2987_v14 = vsel %vm2510_vm13, %v2986_v18, %v2982_v57  ;;  %v3061_v30 = vsel %vm2503_vm12, %v3060_v29, %v3056_v1 }
 0x3ec   : > { %v2404_v58 = vpop.permute.xlu1 %2403  ;;  %v2359_v51 = vpop.permute.xlu0 %2358 }
 0x3ed   : > { %v2991_v41 = vrot.slane %v2359_v51, %v4965_v8  ;;  %v3065_v0 = vrot.slane %v2404_v58, %v4950_v47  ;;  %v3097_v47 = vld [vmem:[%s4092_s10] sm:$0xff] }
 0x3ee   : > { %v3135_v46 = vsel %vm3103_vm6, %v3097_v47, 0.0  ;;  %v5608_v51 = vld [vmem:[#allocation30_spill] sm:$0xff] }
 0x3ef   : > { %v2992_v37 = vsel %vm2517_vm14, %v2991_v41, %v2987_v14  ;;  %v3066_v24 = vsel %vm2510_vm13, %v3065_v0, %v3061_v30  ;;  %vm3148_vm9 = vcmp.eq.s32.totalorder %v5608_v51, 3  ;;  %vm3147_vm10 = vcmp.eq.s32.totalorder %v5608_v51, 2 }
 0x3f0   : > { %v2407_v39 = vpop.permute.xlu0 %2406  ;;  %v3083_v59 = vsel %vm3082_vm4, %v2992_v37, %v3081_v12  ;;  %vm3146_vm11 = vcmp.eq.s32.totalorder %v5608_v51, 1  ;;  %vm3145_vm12 = vcmp.eq.s32.totalorder %v5608_v51, 0 }
 0x3f1   : > { %v3070_v63 = vrot.slane %v2407_v39, %v4965_v8 }
 0x3f3   : > { %v3071_v36 = vsel %vm2517_vm14, %v3070_v63, %v3066_v24 }
 0x3f4   : > { %v3085_v61 = vsel %vm3084_vm5, %v3071_v36, %v3083_v59 }
 0x3f5   : > { %3087 = vadd.xlane.f32.xlu1 %v3085_v61 }
 0x3f9   : > { %3136 = vadd.xlane.f32.xlu1 %v3135_v46 }
 0x482   : > { %v3088_v62 = vpop.xlane.xlu1 %3087 }
 0x483   : > { %3737 = vrsqrt.f32 %v3088_v62  ;;  %vm3091_vm7 = vcmp.eq.f32.partialorder %v3088_v62, inf  ;;  %v3094_v38 = vand.u32 2147483648, %v3088_v62  ;;  %vm3093_vm8 = vcmp.eq.f32.partialorder %v3088_v62, 0.0 }
 0x486   : > { %v3137_v15 = vpop.xlane.xlu1 %3136 }
 0x487   : > { %v3138_v16 = vrot.slane %v3137_v15, 4 }
 0x489   : > { %v3139_v28 = vadd.f32 %v3138_v16, %v3137_v15 }
 0x48b   : > { %v3140_v17 = vrot.slane %v3139_v28, 2 }
 0x48d   : > { %v3738_v44 = vpop.eup %3737  ;;  %v3141_v56 = vadd.f32 %v3140_v17, %v3139_v28 }
 0x48e   : > { %v3090_v35 = vmul.f32 %v3738_v44, %v3088_v62 }
 0x48f   : > { %v3142_v33 = vrot.slane %v3141_v56, 1 }
 0x490   : > { %v3092_v8 = vsel %vm3091_vm7, %v3088_v62, %v3090_v35 }
 0x491   : > { %v3095_v31 = vsel %vm3093_vm8, %v3094_v38, %v3092_v8  ;;  %v3143_v58 = vadd.f32 %v3142_v33, %v3141_v56 }
 0x492   : > { %v3295_v54 = vadd.f32 -0.05, %v3095_v31  ;;  %v3100_v42 = vsub.f32 1.5, %v3095_v31 }
 0x494   : > { %v3099_v5 = vmax.f32 %v3295_v54, 0.0  ;;  %v3101_v49 = vmax.f32 %v3100_v42, 0.0 }
 0x496   : > { %v3102_v10 = vmul.f32 %v3099_v5, %v3096_v60  ;;  %v3114_v45 = vmul.f32 %v3101_v49, %v3097_v47 }
 0x498   : > { %v3104_v4 = vsel %vm3103_vm6, %v3102_v10, 0.0  ;;  %v3115_v13 = vsel %vm3103_vm6, %v3114_v45, 0.0 }
 0x499   : > { %3105 = vadd.xlane.f32.xlu0 %v3104_v4 }
 0x49d   : > { %3116 = vadd.xlane.f32.xlu0 %v3115_v13 }
 0x4a1   : > { %3126 = vadd.xlane.f32.xlu0 %v3125_v6 }
 0x526   : > { %v3106_v22 = vpop.xlane.xlu0 %3105 }
 0x527   : > { %v3107_v3 = vrot.slane %v3106_v22, 4 }
 0x529   : > { %v3108_v34 = vadd.f32 %v3107_v3, %v3106_v22 }
 0x52a   : > { %v3117_v55 = vpop.xlane.xlu0 %3116 }
 0x52b   : > { %v3109_v20 = vrot.slane %v3108_v34, 2  ;;  %v3118_v50 = vrot.slane %v3117_v55, 4 }
 0x52d   : > { %v3119_v19 = vadd.f32 %v3118_v50, %v3117_v55  ;;  %v3110_v25 = vadd.f32 %v3109_v20, %v3108_v34 }
 0x52e   : > { %v3127_v32 = vpop.xlane.xlu0 %3126 }
 0x52f   : > { %v3120_v12 = vrot.slane %v3119_v19, 2  ;;  %v3128_v26 = vrot.slane %v3127_v32, 4  ;;  %v3111_v48 = vrot.slane %v3110_v25, 1 }
 0x531   : > { %v3129_v11 = vadd.f32 %v3128_v26, %v3127_v32  ;;  %v3112_v2 = vadd.f32 %v3111_v48, %v3110_v25  ;;  %v3121_v9 = vadd.f32 %v3120_v12, %v3119_v19 }
 0x533   : > { %v3130_v18 = vrot.slane %v3129_v11, 2  ;;  %3620 = vpush %v3112_v2  ;;  %v3122_v27 = vrot.slane %v3121_v9, 1 }
 0x535   : > { %v3131_v53 = vadd.f32 %v3130_v18, %v3129_v11  ;;  %v3123_v7 = vadd.f32 %v3122_v27, %v3121_v9 }
 0x537   : > { %3622 = vpush %v3123_v7  ;;  %v3132_v23 = vrot.slane %v3131_v53, 1 }
 0x539   : > { %v3133_v40 = vadd.f32 %v3132_v23, %v3131_v53 }
 0x53b   : > { %3624 = vpush %v3133_v40 }
 0x53c   : > { %3626 = vpush %v3143_v58 }
 0x564   : > { %s3621_s28 = spop %3620 }
 0x565   : > { %v3155_v14 = vstv %s3621_s28 }
 0x568   : > { %s3623_s27 = spop %3622 }
 0x569   : > { %v3153_v41 = vstv %s3623_s27 }
 0x56c   : > { %s3625_s26 = spop %3624 }
 0x56d   : > { %v3151_v52 = vstv %s3625_s26  ;;  %s3627_s6 = spop %3626 }
 0x56e   : > { %v3149_v57 = vstv %s3627_s6 }
 0x56f   : > { %v3150_v29 = vsel %vm3148_vm9, %v3149_v57, 0.0 }
 0x570   : > { %v3152_v21 = vsel %vm3147_vm10, %v3151_v52, %v3150_v29 }
 0x571   : > { %v3154_v0 = vsel %vm3146_vm11, %v3153_v41, %v3152_v21 }
 0x572   : > { %v3156_v43 = vsel %vm3145_vm12, %v3155_v14, %v3154_v0 }
 0x573   : > { %3157 = vst [vmem:[%s257_s18] sm:$0xff] %v3156_v43 }
 0x574 PF: > { %s3297_s5 = sshll.u32 %s3879_s22, 7  ;;  %s3172_s10 = sshll.u32 %s257_s18, 4  ;;  %s3173_s10 = int_to_ptr.vmem [resolvable:$true] %s3172_s10 }
 0x575   : > { %s5345_s8 = scalar_lea.hbm %s5409_s4, %s3297_s5  ;;  %s3159_s21 = scalar_lea.sflag [#allocation5], %s255_s29 }
 0x576   : > { %s3769_s7 = scalar_lea.vmem %s3173_s10, 128  ;;  %p5609_p0 = scmp.ne.s32.totalorder %s5421_s11, 0 }
 0x577   : > { %p3770_p4 = scmp.ne.s32.totalorder %s3173_s10, %s3769_s7  ;;  %s3899_s28 = smov [#allocation6]  }
 0x578   : > { %s3773_s27 = sshll.u32 %s3899_s28, 4  ;;  %s3774_s27 = int_to_ptr.vmem [resolvable:$false] %s3773_s27 }
 0x579   : > { %p3771_p1 = pnand %p3770_p4, %p5609_p0  ;;  %s3775_s26 = scalar_lea.vmem %s3774_s27, 256 }
 0x57a   : > { %p3776_p8 = scmp.lt.s32.totalorder %s3173_s10, %s3774_s27  ;;  %p3777_p3 = scmp.lt.s32.totalorder %s3775_s26, %s3769_s7 }
 0x57b   : > { %p3772_p5 = pneg %p3771_p1 }
 0x57c   : > { %p3778_p10 = por %p3777_p3, %p3776_p8 }
 0x57e   : > { %p3779_p11 = pnand %p3778_p10, %p3772_p5 }
 0x580   : > { %3782 = shalt.err (!%p3779_p11)
}
 0x581   : > { %s3783_s22 = scalar_lea.hbm %s5345_s8, 128  ;;  %s3787_s18 = scalar_lea.hbm %s5409_s4, 256 }
 0x582   : > { %p3784_p6 = scmp.ne.s32.totalorder %s5345_s8, %s3783_s22  ;;  %p3788_p12 = scmp.lt.u32.totalorder %s5345_s8, %s5409_s4 }
 0x583   : > { %p3789_p7 = scmp.lt.u32.totalorder %s3787_s18, %s3783_s22  ;;  %p3791_p4 = scmp.lt.u32.totalorder %s3783_s22, %s5345_s8 }
 0x584   : > { %p3785_p9 = pnand %p3784_p6, %p5609_p0 }
 0x585   : > { %p3790_p2 = por %p3789_p7, %p3788_p12 }
 0x586   : > { %p3786_p13 = pneg %p3785_p9 }
 0x587   : > { %p3792_p1 = por %p3791_p4, %p3790_p2 }
 0x589   : > { %p3793_p5 = pnand %p3792_p1, %p3786_p13 }
 0x58b   : > { %3796 = shalt.err (!%p3793_p5)
}
 0x58c   : > { %3630 = dma.vmem_to_hbm [thread:$0]  (%p5609_p0), %s3173_s10, 128, %s5345_s8, %s3159_s21  }
 0x58d PF: > { %p3641_p8 = scmp.ge.s32.totalorder %s3891_s25, 2  ;;  %s3184_s12 = sand.u32 1, %s3851_s15  }
 0x58e   : > { %p5610_p3 = scmp.ne.s32.totalorder %s5423_s14, 0  ;;  %s3185_s9 = scalar_lea.sflag [#allocation5], %s3184_s12 }
 0x590   : > { %p3637_p10 = pnand %p3641_p8, %p5610_p3 }
 0x592   : > { %3846 = dma.done.wait (!%p3637_p10), %s3185_s9, 128  }
 0x593   : > { %3848 = vsyncadd (!%p3637_p10), %s3185_s9, 4294967168  ;;  %s20_s25 = sadd.s32 1, %s3891_s25   ;;  %s5611_s7 = sld [smem:[#allocation11_spill]] }
 0x594   : > { %p17_p11 = scmp.ge.s32.totalorder %s20_s25, 6   ;;  %s5612_s11 = sld [smem:[#allocation9_spill]] }
 0x595   : > { %s5613_s8 = sld [smem:[#allocation10_spill]]  ;;  %s5614_s15 = smov %s3855_s16 }
 0x596   : > { %s5615_s16 = smov %s3859_s17  ;;  %s5617_s18 = smov %s3867_s19 }
 0x597   : > { %s5618_s19 = smov %s3871_s20  ;;  %s5619_s20 = smov %s4015_s13 }
 0x598   : > { %s5620_s21 = smov %s3883_s23  ;;  %s5621_s22 = smov %s3887_s24 }
 0x599   : > { %s5616_s17 = smov %s5611_s7  ;;  %19 = sbr.rel (!%p17_p11) target bundleno = 9 (0x9), region = 95 }
 0x59a   : > { %s5622_s23 = smov %s5612_s11 }
 0x59b   : > { %s5623_s24 = smov %s5613_s8 }
 0x5a0   :  { %3190 = vsyncpa [#allocation4], 1 }
 0x5a1   :  { %3192 = vsyncpa [#allocation4 + $0x1], 1 }
 0x5a2   :  { %3193 = vsyncpa [#allocation5], 1 }
 0x5a3   :  { %3195 = vsyncpa [#allocation5 + $0x1], 1 }

</bundles_post_ra>
